<compile_context>
chip_gen: v6e
topology: v6e:2x2x1
jax: 0.10.0
libtpu: 0.0.40
codegen_flags: <defaults>
</compile_context>

<pallas_src>
import functools

import numpy as np
import jax
import jax.numpy as jnp
from jax import lax
from jax.experimental import pallas as pl
from jax.experimental.pallas import tpu as pltpu

IMG_CHS = 1
IMG = 28
N_CLASSES = 10
OUT_PAD = 128              # lane-dense padded logits width (kernel-internal)
HIDDEN = 32
FLAT = 24 * 3 * 3          # 216
BN_EPS = 1e-5

# (Win, Cin, Cout) of the three conv blocks (28x28 input is forced by FLAT).
_CONV_GEOM = ((28, 1, 8), (14, 8, 16), (7, 16, 24))


# ---------------------------------------------------------------------------
# In-kernel fused layer: conv3x3(pad=1) + folded BN + ReLU + maxpool(2,2)
# ---------------------------------------------------------------------------
def _conv_bn_relu_pool(pad_ref, t_ref, st_ref, bt_ref, hs_ref,
                       tb, Hin, Win, Cin, Cout):
    """pad_ref: (tb, Hin+2, (Win+2)*Cin) zero-bordered activations.
    Returns (tb*Ho, Wo*Cout) pooled activations, rows=(n,i), lanes=(j,c)."""
    Ho, Wo = Hin // 2, Win // 2
    H2 = 2 * Ho                      # even crop == what the floor-mode pool uses
    K = (Win + 2) * Cin
    half = Wo * Cout

    # im2col along H only: 3 row-shifted views stacked on lanes -> one matmul
    # covers all 9 taps AND both w-parities of every pooled column.
    a = jnp.concatenate([pad_ref[:, kh:kh + H2, :] for kh in range(3)], axis=-1)
    a = a.reshape(tb * H2, 3 * K).astype(jnp.bfloat16)
    y = jnp.dot(a, t_ref[...], preferred_element_type=jnp.float32)   # (tb*H2, 2*half)

    # folded BatchNorm (+conv bias) and ReLU, in f32 on the VPU
    y = jnp.maximum(y * st_ref[...] + bt_ref[...], 0.0)

    # 2x2 max pool: w-pairs sit in the two lane halves (col = q*half + j*Cout + c)
    y = jnp.maximum(y[:, :half], y[:, half:])                         # (tb*H2, half)

    # h-pairs are adjacent rows -> stride-2 sublane reads via a staging scratch
    hs_ref[0:tb * H2, 0:half] = y
    y = jnp.maximum(hs_ref[pl.ds(0, tb * Ho, stride=2), 0:half],
                    hs_ref[pl.ds(1, tb * Ho, stride=2), 0:half])      # (tb*Ho, half)
    return y


def _mnist_kernel(x_ref, t1, st1, bt1, t2, st2, bt2, t3, st3, bt3,
                  wf1, bf1, wf2, bf2, out_ref, p1, p2, p3, hs, *, tb):
    # Zero-bordered padded-activation buffers (re-zeroed every grid step so the
    # kernel is safe under "parallel" megacore partitioning).
    p1[...] = jnp.zeros(p1.shape, jnp.float32)
    p2[...] = jnp.zeros(p2.shape, jnp.float32)
    p3[...] = jnp.zeros(p3.shape, jnp.float32)

    # Stage the 28x28 image into the interior of the 30x30 padded buffer.
    p1[:, 1:1 + IMG, 1:1 + IMG] = x_ref[...]

    # conv1 + BN + ReLU + maxpool  -> (tb*14, 14*8)
    y = _conv_bn_relu_pool(p1, t1, st1, bt1, hs, tb, 28, 28, 1, 8)
    p2[:, 1:15, 8:120] = y.reshape(tb, 14, 14 * 8)

    # conv2 + BN + ReLU (+Dropout(0.2): identity) + maxpool -> (tb*7, 7*16)
    y = _conv_bn_relu_pool(p2, t2, st2, bt2, hs, tb, 14, 14, 8, 16)
    p3[:, 1:8, 16:128] = y.reshape(tb, 7, 7 * 16)

    # conv3 + BN + ReLU + maxpool -> (tb*3, 3*24)
    y = _conv_bn_relu_pool(p3, t3, st3, bt3, hs, tb, 7, 7, 16, 24)

    # Flatten to (tb, 216) in (h, w, c) order (fc1 rows were pre-permuted).
    hs[0:tb * 3, 0:72] = y
    flat = jnp.concatenate([hs[pl.ds(i, tb, stride=3), 0:72] for i in range(3)],
                           axis=-1)                                   # (tb, 216)

    # Linear(216->32) + Dropout(0.3)[identity] + ReLU + Linear(32->128 padded)
    h = jnp.dot(flat.astype(jnp.bfloat16), wf1[...],
                preferred_element_type=jnp.float32)
    h = jnp.maximum(h + bf1[...], 0.0)
    logits = jnp.dot(h.astype(jnp.bfloat16), wf2[...],
                     preferred_element_type=jnp.float32)
    out_ref[...] = logits + bf2[...]        # full-width unmasked lane-dense store


# ---------------------------------------------------------------------------
# pallas_call wrapper
# ---------------------------------------------------------------------------
def _const_spec(arr):
    nd = arr.ndim
    return pl.BlockSpec(arr.shape, lambda i: (0,) * nd)


@functools.partial(jax.jit, static_argnames=("block_batch",))
def mnist_cnn_forward(x_nchw, params, block_batch=8):
    n = x_nchw.shape[0]
    tb = block_batch
    x = x_nchw.astype(jnp.float32).reshape(n, IMG, IMG)     # NCHW, C=1 -> (N,28,28)
    pad = (-n) % tb
    if pad:
        x = jnp.concatenate([x, jnp.zeros((pad, IMG, IMG), jnp.float32)], axis=0)
    n_pad = n + pad

    weight_args = (params["t1"], params["st1"], params["bt1"],
                   params["t2"], params["st2"], params["bt2"],
                   params["t3"], params["st3"], params["bt3"],
                   params["wfc1"], params["bfc1"], params["wfc2"], params["bfc2"])

    out = pl.pallas_call(
        functools.partial(_mnist_kernel, tb=tb),
        out_shape=jax.ShapeDtypeStruct((n_pad, OUT_PAD), jnp.float32),
        grid=(n_pad // tb,),
        in_specs=[pl.BlockSpec((tb, IMG, IMG), lambda i: (i, 0, 0))]
                 + [_const_spec(w) for w in weight_args],
        out_specs=pl.BlockSpec((tb, OUT_PAD), lambda i: (i, 0)),
        scratch_shapes=[
            pltpu.VMEM((tb, IMG + 2, IMG + 2), jnp.float32),   # padded layer-1 input
            pltpu.VMEM((tb, 16, 16 * 8), jnp.float32),         # padded layer-2 input
            pltpu.VMEM((tb, 9, 9 * 16), jnp.float32),          # padded layer-3 input
            pltpu.VMEM((tb * IMG, 14 * 8), jnp.float32),       # pool / flatten staging
        ],
        compiler_params=pltpu.CompilerParams(
            dimension_semantics=("parallel",),
            vmem_limit_bytes=32 * 1024 * 1024),
    )(x, *weight_args)
    return out[:n, :N_CLASSES]


# ---------------------------------------------------------------------------
# Parameter construction (PyTorch layouts) and kernel-layout preparation
# ---------------------------------------------------------------------------
def make_torch_style_params(key):
    ks = iter(jax.random.split(key, 24))
    p = {}

    def conv(cin, cout):
        fan = cin * 9
        return dict(
            w=jax.random.normal(next(ks), (cout, cin, 3, 3), jnp.float32) / np.sqrt(fan),
            b=0.05 * jax.random.normal(next(ks), (cout,), jnp.float32),
            gamma=1.0 + 0.1 * jax.random.normal(next(ks), (cout,), jnp.float32),
            beta=0.05 * jax.random.normal(next(ks), (cout,), jnp.float32),
            mean=0.05 * jax.random.normal(next(ks), (cout,), jnp.float32),
            var=0.5 + jnp.abs(0.2 * jax.random.normal(next(ks), (cout,), jnp.float32)),
        )

    p["conv1"], p["conv2"], p["conv3"] = conv(1, 8), conv(8, 16), conv(16, 24)
    p["fc1_w"] = jax.random.normal(next(ks), (HIDDEN, FLAT), jnp.float32) / np.sqrt(FLAT)
    p["fc1_b"] = 0.05 * jax.random.normal(next(ks), (HIDDEN,), jnp.float32)
    p["fc2_w"] = jax.random.normal(next(ks), (N_CLASSES, HIDDEN), jnp.float32) / np.sqrt(HIDDEN)
    p["fc2_b"] = 0.05 * jax.random.normal(next(ks), (N_CLASSES,), jnp.float32)
    return p


def _toeplitz_conv_table(w_oihw, win):
    """OIHW conv weight -> (3*(win+2)*Cin, 2*(win//2)*Cout) matmul table whose
    columns are ordered (w_parity q, pooled col j, out channel)."""
    w = np.transpose(np.asarray(w_oihw, np.float32), (2, 3, 1, 0))   # (kh,kw,ci,co)
    _, _, cin, cout = w.shape
    wo, k = win // 2, (win + 2) * cin
    t = np.zeros((3 * k, 2 * wo * cout), np.float32)
    for kh in range(3):
        for q in range(2):
            for j in range(wo):
                for kw in range(3):
                    xp = 2 * j + q + kw                               # padded input col
                    r0 = kh * k + xp * cin
                    c0 = q * wo * cout + j * cout
                    t[r0:r0 + cin, c0:c0 + cout] = w[kh, kw]
    return t


def prepare_kernel_params(p):
    out = {}
    for idx, (name, (win, _cin, _cout)) in enumerate(
            zip(("conv1", "conv2", "conv3"), _CONV_GEOM), 1):
        c = p[name]
        scale = np.asarray(c["gamma"], np.float32) / np.sqrt(np.asarray(c["var"], np.float32) + BN_EPS)
        bias = (np.asarray(c["b"], np.float32) - np.asarray(c["mean"], np.float32)) * scale \
               + np.asarray(c["beta"], np.float32)
        wo = win // 2
        out[f"t{idx}"] = jnp.asarray(_toeplitz_conv_table(c["w"], win), jnp.bfloat16)
        out[f"st{idx}"] = jnp.asarray(np.tile(scale, 2 * wo)[None, :], jnp.float32)
        out[f"bt{idx}"] = jnp.asarray(np.tile(bias, 2 * wo)[None, :], jnp.float32)
    # fc1: permute rows from PyTorch's (c,h,w) flatten order to the kernel's (h,w,c)
    w1 = np.asarray(p["fc1_w"], np.float32).T.reshape(24, 3, 3, HIDDEN)
    w1 = np.transpose(w1, (1, 2, 0, 3)).reshape(FLAT, HIDDEN)
    out["wfc1"] = jnp.asarray(w1, jnp.bfloat16)
    out["bfc1"] = jnp.asarray(np.asarray(p["fc1_b"], np.float32)[None, :], jnp.float32)
    # fc2: zero-pad the 10 output columns to 128 lanes for an unmasked store.
    w2 = np.zeros((HIDDEN, OUT_PAD), np.float32)
    w2[:, :N_CLASSES] = np.asarray(p["fc2_w"], np.float32).T
    b2 = np.zeros((1, OUT_PAD), np.float32)
    b2[0, :N_CLASSES] = np.asarray(p["fc2_b"], np.float32)
    out["wfc2"] = jnp.asarray(w2, jnp.bfloat16)
    out["bfc2"] = jnp.asarray(b2, jnp.float32)
    return out


# ---------------------------------------------------------------------------
# Pure-JAX reference (PyTorch semantics; weights rounded to bf16 to mirror the
# kernel's stored weight precision -- activations stay f32).
# ---------------------------------------------------------------------------
def reference_forward(x_nchw, p):
    def bf16(v):
        return v.astype(jnp.bfloat16).astype(jnp.float32)

    x = jnp.transpose(x_nchw.astype(jnp.float32), (0, 2, 3, 1))       # NHWC
    for name in ("conv1", "conv2", "conv3"):
        c = p[name]
        w = jnp.transpose(bf16(c["w"]), (2, 3, 1, 0))                 # HWIO
        y = lax.conv_general_dilated(x, w, (1, 1), ((1, 1), (1, 1)),
                                     dimension_numbers=("NHWC", "HWIO", "NHWC"))
        y = y + c["b"]
        y = (y - c["mean"]) / jnp.sqrt(c["var"] + BN_EPS) * c["gamma"] + c["beta"]
        y = jnp.maximum(y, 0.0)
        n, hh, ww, cc = y.shape
        ho, wo = hh // 2, ww // 2
        x = y[:, :2 * ho, :2 * wo, :].reshape(n, ho, 2, wo, 2, cc).max(axis=(2, 4))
    n = x.shape[0]
    flat = jnp.transpose(x, (0, 3, 1, 2)).reshape(n, FLAT)            # torch (C,H,W) flatten
    h = jnp.maximum(flat @ bf16(p["fc1_w"]).T + p["fc1_b"], 0.0)
    return h @ bf16(p["fc2_w"]).T + p["fc2_b"]


if __name__ == "__main__":
    key = jax.random.PRNGKey(0)
    kx, kp = jax.random.split(key)

    batch = 16                                   # 2 grid steps of 8 images each
    x = jax.random.normal(kx, (batch, IMG_CHS, IMG, IMG), jnp.float32)
    torch_params = make_torch_style_params(kp)
    kparams = prepare_kernel_params(torch_params)

    logits = mnist_cnn_forward(x, kparams)
    logits = jax.block_until_ready(logits)

    assert logits.shape == (batch, N_CLASSES), logits.shape
    assert logits.dtype == jnp.float32
    assert bool(jnp.all(jnp.isfinite(logits)))

    ref = reference_forward(x, torch_params)
    max_err = float(jnp.max(jnp.abs(logits - ref)))
    assert max_err < 0.15, f"kernel/reference mismatch: max|err|={max_err}"

    print("KERNEL_OK")
</pallas_src>

<mosaic_0001>
module attributes {stable_mosaic.version = 11 : i64} {
  func.func @_mnist_kernel(%arg0: i32, %arg1: memref<8x28x28xf32, #tpu.memory_space<vmem>>, %arg2: memref<90x224xbf16, #tpu.memory_space<vmem>>, %arg3: memref<1x224xf32, #tpu.memory_space<vmem>>, %arg4: memref<1x224xf32, #tpu.memory_space<vmem>>, %arg5: memref<384x224xbf16, #tpu.memory_space<vmem>>, %arg6: memref<1x224xf32, #tpu.memory_space<vmem>>, %arg7: memref<1x224xf32, #tpu.memory_space<vmem>>, %arg8: memref<432x144xbf16, #tpu.memory_space<vmem>>, %arg9: memref<1x144xf32, #tpu.memory_space<vmem>>, %arg10: memref<1x144xf32, #tpu.memory_space<vmem>>, %arg11: memref<216x32xbf16, #tpu.memory_space<vmem>>, %arg12: memref<1x32xf32, #tpu.memory_space<vmem>>, %arg13: memref<32x128xbf16, #tpu.memory_space<vmem>>, %arg14: memref<1x128xf32, #tpu.memory_space<vmem>>, %arg15: memref<8x128xf32, #tpu.memory_space<vmem>>, %arg16: memref<8x30x30xf32, #tpu.memory_space<vmem>>, %arg17: memref<8x16x128xf32, #tpu.memory_space<vmem>>, %arg18: memref<8x9x144xf32, #tpu.memory_space<vmem>>, %arg19: memref<224x112xf32, #tpu.memory_space<vmem>>) attributes {dimension_semantics = [#tpu.dimension_semantics<parallel>], iteration_bounds = array<i64: 2>, scalar_prefetch = 0 : i64, scratch_operands = 4 : i64, tpu.core_type = #tpu.core_type<tc>, window_params = [{transform_indices = @transform_0, window_bounds = array<i64: 8, 28, 28>}, {pipeline_mode = #tpu.pipeline_mode<synchronous>, transform_indices = @transform_1, window_bounds = array<i64: 90, 224>}, {pipeline_mode = #tpu.pipeline_mode<synchronous>, transform_indices = @transform_2, window_bounds = array<i64: 1, 224>}, {pipeline_mode = #tpu.pipeline_mode<synchronous>, transform_indices = @transform_3, window_bounds = array<i64: 1, 224>}, {pipeline_mode = #tpu.pipeline_mode<synchronous>, transform_indices = @transform_4, window_bounds = array<i64: 384, 224>}, {pipeline_mode = #tpu.pipeline_mode<synchronous>, transform_indices = @transform_5, window_bounds = array<i64: 1, 224>}, {pipeline_mode = #tpu.pipeline_mode<synchronous>, transform_indices = @transform_6, window_bounds = array<i64: 1, 224>}, {pipeline_mode = #tpu.pipeline_mode<synchronous>, transform_indices = @transform_7, window_bounds = array<i64: 432, 144>}, {pipeline_mode = #tpu.pipeline_mode<synchronous>, transform_indices = @transform_8, window_bounds = array<i64: 1, 144>}, {pipeline_mode = #tpu.pipeline_mode<synchronous>, transform_indices = @transform_9, window_bounds = array<i64: 1, 144>}, {pipeline_mode = #tpu.pipeline_mode<synchronous>, transform_indices = @transform_10, window_bounds = array<i64: 216, 32>}, {pipeline_mode = #tpu.pipeline_mode<synchronous>, transform_indices = @transform_11, window_bounds = array<i64: 1, 32>}, {pipeline_mode = #tpu.pipeline_mode<synchronous>, transform_indices = @transform_12, window_bounds = array<i64: 32, 128>}, {pipeline_mode = #tpu.pipeline_mode<synchronous>, transform_indices = @transform_13, window_bounds = array<i64: 1, 128>}, {transform_indices = @transform_14, window_bounds = array<i64: 8, 128>}]} {
    %cst = arith.constant 0.000000e+00 : f32
    %0 = vector.broadcast %cst : f32 to vector<8x30x30xf32>
    %c0 = arith.constant 0 : index
    %c0_0 = arith.constant 0 : index
    %c0_1 = arith.constant 0 : index
    %1 = vector.load %arg16[%c0, %c0_0, %c0_1] : memref<8x30x30xf32, #tpu.memory_space<vmem>>, vector<8x30x30xf32>
    tpu.vector_store %arg16[%c0, %c0_0, %c0_1], %0 {strides = array<i32>} : memref<8x30x30xf32, #tpu.memory_space<vmem>>, vector<8x30x30xf32>,
    %cst_2 = arith.constant 0.000000e+00 : f32
    %2 = vector.broadcast %cst_2 : f32 to vector<8x16x128xf32>
    %c0_3 = arith.constant 0 : index
    %c0_4 = arith.constant 0 : index
    %c0_5 = arith.constant 0 : index
    %3 = vector.load %arg17[%c0_3, %c0_4, %c0_5] : memref<8x16x128xf32, #tpu.memory_space<vmem>>, vector<8x16x128xf32>
    tpu.vector_store %arg17[%c0_3, %c0_4, %c0_5], %2 {strides = array<i32>} : memref<8x16x128xf32, #tpu.memory_space<vmem>>, vector<8x16x128xf32>,
    %cst_6 = arith.constant 0.000000e+00 : f32
    %4 = vector.broadcast %cst_6 : f32 to vector<8x9x144xf32>
    %c0_7 = arith.constant 0 : index
    %c0_8 = arith.constant 0 : index
    %c0_9 = arith.constant 0 : index
    %5 = vector.load %arg18[%c0_7, %c0_8, %c0_9] : memref<8x9x144xf32, #tpu.memory_space<vmem>>, vector<8x9x144xf32>
    tpu.vector_store %arg18[%c0_7, %c0_8, %c0_9], %4 {strides = array<i32>} : memref<8x9x144xf32, #tpu.memory_space<vmem>>, vector<8x9x144xf32>,
    %c0_10 = arith.constant 0 : index
    %c0_11 = arith.constant 0 : index
    %c0_12 = arith.constant 0 : index
    %6 = vector.load %arg1[%c0_10, %c0_11, %c0_12] : memref<8x28x28xf32, #tpu.memory_space<vmem>>, vector<8x28x28xf32>
    %c0_13 = arith.constant 0 : index
    %c1 = arith.constant 1 : index
    %c1_14 = arith.constant 1 : index
    %7 = vector.load %arg16[%c0_13, %c1, %c1_14] : memref<8x30x30xf32, #tpu.memory_space<vmem>>, vector<8x28x28xf32>
    tpu.vector_store %arg16[%c0_13, %c1, %c1_14], %6 {strides = array<i32>} : memref<8x30x30xf32, #tpu.memory_space<vmem>>, vector<8x28x28xf32>,
    %c0_15 = arith.constant 0 : index
    %c0_16 = arith.constant 0 : index
    %c0_17 = arith.constant 0 : index
    %8 = vector.load %arg16[%c0_15, %c0_16, %c0_17] : memref<8x30x30xf32, #tpu.memory_space<vmem>>, vector<8x28x30xf32>
    %c0_18 = arith.constant 0 : index
    %c1_19 = arith.constant 1 : index
    %c0_20 = arith.constant 0 : index
    %9 = vector.load %arg16[%c0_18, %c1_19, %c0_20] : memref<8x30x30xf32, #tpu.memory_space<vmem>>, vector<8x28x30xf32>
    %c0_21 = arith.constant 0 : index
    %c2 = arith.constant 2 : index
    %c0_22 = arith.constant 0 : index
    %10 = vector.load %arg16[%c0_21, %c2, %c0_22] : memref<8x30x30xf32, #tpu.memory_space<vmem>>, vector<8x28x30xf32>
    %11 = tpu.concatenate %8, %9, %10 in 2 : vector<8x28x30xf32>, vector<8x28x30xf32>, vector<8x28x30xf32> -> vector<8x28x90xf32>
    %12 = vector.shape_cast %11 : vector<8x28x90xf32> to vector<224x90xf32>
    %13 = arith.truncf %12 : vector<224x90xf32> to vector<224x90xbf16>
    %c0_23 = arith.constant 0 : index
    %c0_24 = arith.constant 0 : index
    %14 = vector.load %arg2[%c0_23, %c0_24] : memref<90x224xbf16, #tpu.memory_space<vmem>>, vector<90x224xbf16>
    %cst_25 = arith.constant dense<0.000000e+00> : vector<224x224xf32>
    %15 = tpu.matmul %13, %14, %cst_25 {dimension_numbers = #tpu.dot_dimension_numbers<[1], [0], [0], [1], [0, 0, 1, 1], [], []>} : vector<224x90xbf16>, vector<90x224xbf16>, vector<224x224xf32> -> vector<224x224xf32>
    %c0_26 = arith.constant 0 : index
    %c0_27 = arith.constant 0 : index
    %16 = vector.load %arg3[%c0_26, %c0_27] : memref<1x224xf32, #tpu.memory_space<vmem>>, vector<1x224xf32>
    %17 = vector.broadcast %16 : vector<1x224xf32> to vector<224x224xf32>
    %18 = arith.mulf %15, %17 : vector<224x224xf32>
    %c0_28 = arith.constant 0 : index
    %c0_29 = arith.constant 0 : index
    %19 = vector.load %arg4[%c0_28, %c0_29] : memref<1x224xf32, #tpu.memory_space<vmem>>, vector<1x224xf32>
    %20 = vector.broadcast %19 : vector<1x224xf32> to vector<224x224xf32>
    %21 = arith.addf %18, %20 : vector<224x224xf32>
    %cst_30 = arith.constant 0.000000e+00 : f32
    %22 = vector.broadcast %cst_30 : f32 to vector<224x224xf32>
    %23 = arith.maximumf %21, %22 : vector<224x224xf32>
    %24 = vector.extract_strided_slice %23 {offsets = [0, 0], sizes = [224, 112], strides = [1, 1]} : vector<224x224xf32> to vector<224x112xf32>
    %25 = vector.extract_strided_slice %23 {offsets = [0, 112], sizes = [224, 112], strides = [1, 1]} : vector<224x224xf32> to vector<224x112xf32>
    %26 = arith.maximumf %24, %25 : vector<224x112xf32>
    %c0_31 = arith.constant 0 : index
    %c0_32 = arith.constant 0 : index
    %27 = vector.load %arg19[%c0_31, %c0_32] : memref<224x112xf32, #tpu.memory_space<vmem>>, vector<224x112xf32>
    tpu.vector_store %arg19[%c0_31, %c0_32], %26 {strides = array<i32>} : memref<224x112xf32, #tpu.memory_space<vmem>>, vector<224x112xf32>,
    %c0_33 = arith.constant 0 : index
    %c0_34 = arith.constant 0 : index
    %28 = tpu.strided_load %arg19[%c0_33, %c0_34] {strides = array<i32: 2, 1>} : memref<224x112xf32, #tpu.memory_space<vmem>>, vector<112x112xf32>
    %c1_35 = arith.constant 1 : index
    %c0_36 = arith.constant 0 : index
    %29 = tpu.strided_load %arg19[%c1_35, %c0_36] {strides = array<i32: 2, 1>} : memref<224x112xf32, #tpu.memory_space<vmem>>, vector<112x112xf32>
    %30 = arith.maximumf %28, %29 : vector<112x112xf32>
    %31 = vector.shape_cast %30 : vector<112x112xf32> to vector<8x14x112xf32>
    %c0_37 = arith.constant 0 : index
    %c1_38 = arith.constant 1 : index
    %c8 = arith.constant 8 : index
    %32 = vector.load %arg17[%c0_37, %c1_38, %c8] : memref<8x16x128xf32, #tpu.memory_space<vmem>>, vector<8x14x112xf32>
    tpu.vector_store %arg17[%c0_37, %c1_38, %c8], %31 {strides = array<i32>} : memref<8x16x128xf32, #tpu.memory_space<vmem>>, vector<8x14x112xf32>,
    %c0_39 = arith.constant 0 : index
    %c0_40 = arith.constant 0 : index
    %c0_41 = arith.constant 0 : index
    %33 = vector.load %arg17[%c0_39, %c0_40, %c0_41] : memref<8x16x128xf32, #tpu.memory_space<vmem>>, vector<8x14x128xf32>
    %c0_42 = arith.constant 0 : index
    %c1_43 = arith.constant 1 : index
    %c0_44 = arith.constant 0 : index
    %34 = vector.load %arg17[%c0_42, %c1_43, %c0_44] : memref<8x16x128xf32, #tpu.memory_space<vmem>>, vector<8x14x128xf32>
    %c0_45 = arith.constant 0 : index
    %c2_46 = arith.constant 2 : index
    %c0_47 = arith.constant 0 : index
    %35 = vector.load %arg17[%c0_45, %c2_46, %c0_47] : memref<8x16x128xf32, #tpu.memory_space<vmem>>, vector<8x14x128xf32>
    %36 = tpu.concatenate %33, %34, %35 in 2 : vector<8x14x128xf32>, vector<8x14x128xf32>, vector<8x14x128xf32> -> vector<8x14x384xf32>
    %37 = vector.shape_cast %36 : vector<8x14x384xf32> to vector<112x384xf32>
    %38 = arith.truncf %37 : vector<112x384xf32> to vector<112x384xbf16>
    %c0_48 = arith.constant 0 : index
    %c0_49 = arith.constant 0 : index
    %39 = vector.load %arg5[%c0_48, %c0_49] : memref<384x224xbf16, #tpu.memory_space<vmem>>, vector<384x224xbf16>
    %cst_50 = arith.constant dense<0.000000e+00> : vector<112x224xf32>
    %40 = tpu.matmul %38, %39, %cst_50 {dimension_numbers = #tpu.dot_dimension_numbers<[1], [0], [0], [1], [0, 0, 1, 1], [], []>} : vector<112x384xbf16>, vector<384x224xbf16>, vector<112x224xf32> -> vector<112x224xf32>
    %c0_51 = arith.constant 0 : index
    %c0_52 = arith.constant 0 : index
    %41 = vector.load %arg6[%c0_51, %c0_52] : memref<1x224xf32, #tpu.memory_space<vmem>>, vector<1x224xf32>
    %42 = vector.broadcast %41 : vector<1x224xf32> to vector<112x224xf32>
    %43 = arith.mulf %40, %42 : vector<112x224xf32>
    %c0_53 = arith.constant 0 : index
    %c0_54 = arith.constant 0 : index
    %44 = vector.load %arg7[%c0_53, %c0_54] : memref<1x224xf32, #tpu.memory_space<vmem>>, vector<1x224xf32>
    %45 = vector.broadcast %44 : vector<1x224xf32> to vector<112x224xf32>
    %46 = arith.addf %43, %45 : vector<112x224xf32>
    %cst_55 = arith.constant 0.000000e+00 : f32
    %47 = vector.broadcast %cst_55 : f32 to vector<112x224xf32>
    %48 = arith.maximumf %46, %47 : vector<112x224xf32>
    %49 = vector.extract_strided_slice %48 {offsets = [0, 0], sizes = [112, 112], strides = [1, 1]} : vector<112x224xf32> to vector<112x112xf32>
    %50 = vector.extract_strided_slice %48 {offsets = [0, 112], sizes = [112, 112], strides = [1, 1]} : vector<112x224xf32> to vector<112x112xf32>
    %51 = arith.maximumf %49, %50 : vector<112x112xf32>
    %c0_56 = arith.constant 0 : index
    %c0_57 = arith.constant 0 : index
    %52 = vector.load %arg19[%c0_56, %c0_57] : memref<224x112xf32, #tpu.memory_space<vmem>>, vector<112x112xf32>
    tpu.vector_store %arg19[%c0_56, %c0_57], %51 {strides = array<i32>} : memref<224x112xf32, #tpu.memory_space<vmem>>, vector<112x112xf32>,
    %c0_58 = arith.constant 0 : index
    %c0_59 = arith.constant 0 : index
    %53 = tpu.strided_load %arg19[%c0_58, %c0_59] {strides = array<i32: 2, 1>} : memref<224x112xf32, #tpu.memory_space<vmem>>, vector<56x112xf32>
    %c1_60 = arith.constant 1 : index
    %c0_61 = arith.constant 0 : index
    %54 = tpu.strided_load %arg19[%c1_60, %c0_61] {strides = array<i32: 2, 1>} : memref<224x112xf32, #tpu.memory_space<vmem>>, vector<56x112xf32>
    %55 = arith.maximumf %53, %54 : vector<56x112xf32>
    %56 = vector.shape_cast %55 : vector<56x112xf32> to vector<8x7x112xf32>
    %c0_62 = arith.constant 0 : index
    %c1_63 = arith.constant 1 : index
    %c16 = arith.constant 16 : index
    %57 = vector.load %arg18[%c0_62, %c1_63, %c16] : memref<8x9x144xf32, #tpu.memory_space<vmem>>, vector<8x7x112xf32>
    tpu.vector_store %arg18[%c0_62, %c1_63, %c16], %56 {strides = array<i32>} : memref<8x9x144xf32, #tpu.memory_space<vmem>>, vector<8x7x112xf32>,
    %c0_64 = arith.constant 0 : index
    %c0_65 = arith.constant 0 : index
    %c0_66 = arith.constant 0 : index
    %58 = vector.load %arg18[%c0_64, %c0_65, %c0_66] : memref<8x9x144xf32, #tpu.memory_space<vmem>>, vector<8x6x144xf32>
    %c0_67 = arith.constant 0 : index
    %c1_68 = arith.constant 1 : index
    %c0_69 = arith.constant 0 : index
    %59 = vector.load %arg18[%c0_67, %c1_68, %c0_69] : memref<8x9x144xf32, #tpu.memory_space<vmem>>, vector<8x6x144xf32>
    %c0_70 = arith.constant 0 : index
    %c2_71 = arith.constant 2 : index
    %c0_72 = arith.constant 0 : index
    %60 = vector.load %arg18[%c0_70, %c2_71, %c0_72] : memref<8x9x144xf32, #tpu.memory_space<vmem>>, vector<8x6x144xf32>
    %61 = tpu.concatenate %58, %59, %60 in 2 : vector<8x6x144xf32>, vector<8x6x144xf32>, vector<8x6x144xf32> -> vector<8x6x432xf32>
    %62 = vector.shape_cast %61 : vector<8x6x432xf32> to vector<48x432xf32>
    %63 = arith.truncf %62 : vector<48x432xf32> to vector<48x432xbf16>
    %c0_73 = arith.constant 0 : index
    %c0_74 = arith.constant 0 : index
    %64 = vector.load %arg8[%c0_73, %c0_74] : memref<432x144xbf16, #tpu.memory_space<vmem>>, vector<432x144xbf16>
    %cst_75 = arith.constant dense<0.000000e+00> : vector<48x144xf32>
    %65 = tpu.matmul %63, %64, %cst_75 {dimension_numbers = #tpu.dot_dimension_numbers<[1], [0], [0], [1], [0, 0, 1, 1], [], []>} : vector<48x432xbf16>, vector<432x144xbf16>, vector<48x144xf32> -> vector<48x144xf32>
    %c0_76 = arith.constant 0 : index
    %c0_77 = arith.constant 0 : index
    %66 = vector.load %arg9[%c0_76, %c0_77] : memref<1x144xf32, #tpu.memory_space<vmem>>, vector<1x144xf32>
    %67 = vector.broadcast %66 : vector<1x144xf32> to vector<48x144xf32>
    %68 = arith.mulf %65, %67 : vector<48x144xf32>
    %c0_78 = arith.constant 0 : index
    %c0_79 = arith.constant 0 : index
    %69 = vector.load %arg10[%c0_78, %c0_79] : memref<1x144xf32, #tpu.memory_space<vmem>>, vector<1x144xf32>
    %70 = vector.broadcast %69 : vector<1x144xf32> to vector<48x144xf32>
    %71 = arith.addf %68, %70 : vector<48x144xf32>
    %cst_80 = arith.constant 0.000000e+00 : f32
    %72 = vector.broadcast %cst_80 : f32 to vector<48x144xf32>
    %73 = arith.maximumf %71, %72 : vector<48x144xf32>
    %74 = vector.extract_strided_slice %73 {offsets = [0, 0], sizes = [48, 72], strides = [1, 1]} : vector<48x144xf32> to vector<48x72xf32>
    %75 = vector.extract_strided_slice %73 {offsets = [0, 72], sizes = [48, 72], strides = [1, 1]} : vector<48x144xf32> to vector<48x72xf32>
    %76 = arith.maximumf %74, %75 : vector<48x72xf32>
    %c0_81 = arith.constant 0 : index
    %c0_82 = arith.constant 0 : index
    %77 = vector.load %arg19[%c0_81, %c0_82] : memref<224x112xf32, #tpu.memory_space<vmem>>, vector<48x72xf32>
    tpu.vector_store %arg19[%c0_81, %c0_82], %76 {strides = array<i32>} : memref<224x112xf32, #tpu.memory_space<vmem>>, vector<48x72xf32>,
    %c0_83 = arith.constant 0 : index
    %c0_84 = arith.constant 0 : index
    %78 = tpu.strided_load %arg19[%c0_83, %c0_84] {strides = array<i32: 2, 1>} : memref<224x112xf32, #tpu.memory_space<vmem>>, vector<24x72xf32>
    %c1_85 = arith.constant 1 : index
    %c0_86 = arith.constant 0 : index
    %79 = tpu.strided_load %arg19[%c1_85, %c0_86] {strides = array<i32: 2, 1>} : memref<224x112xf32, #tpu.memory_space<vmem>>, vector<24x72xf32>
    %80 = arith.maximumf %78, %79 : vector<24x72xf32>
    %c0_87 = arith.constant 0 : index
    %c0_88 = arith.constant 0 : index
    %81 = vector.load %arg19[%c0_87, %c0_88] : memref<224x112xf32, #tpu.memory_space<vmem>>, vector<24x72xf32>
    tpu.vector_store %arg19[%c0_87, %c0_88], %80 {strides = array<i32>} : memref<224x112xf32, #tpu.memory_space<vmem>>, vector<24x72xf32>,
    %c0_89 = arith.constant 0 : index
    %c0_90 = arith.constant 0 : index
    %82 = tpu.strided_load %arg19[%c0_89, %c0_90] {strides = array<i32: 3, 1>} : memref<224x112xf32, #tpu.memory_space<vmem>>, vector<8x72xf32>
    %c1_91 = arith.constant 1 : index
    %c0_92 = arith.constant 0 : index
    %83 = tpu.strided_load %arg19[%c1_91, %c0_92] {strides = array<i32: 3, 1>} : memref<224x112xf32, #tpu.memory_space<vmem>>, vector<8x72xf32>
    %c2_93 = arith.constant 2 : index
    %c0_94 = arith.constant 0 : index
    %84 = tpu.strided_load %arg19[%c2_93, %c0_94] {strides = array<i32: 3, 1>} : memref<224x112xf32, #tpu.memory_space<vmem>>, vector<8x72xf32>
    %85 = tpu.concatenate %82, %83, %84 in 1 : vector<8x72xf32>, vector<8x72xf32>, vector<8x72xf32> -> vector<8x216xf32>
    %86 = arith.truncf %85 : vector<8x216xf32> to vector<8x216xbf16>
    %c0_95 = arith.constant 0 : index
    %c0_96 = arith.constant 0 : index
    %87 = vector.load %arg11[%c0_95, %c0_96] : memref<216x32xbf16, #tpu.memory_space<vmem>>, vector<216x32xbf16>
    %cst_97 = arith.constant dense<0.000000e+00> : vector<8x32xf32>
    %88 = tpu.matmul %86, %87, %cst_97 {dimension_numbers = #tpu.dot_dimension_numbers<[1], [0], [0], [1], [0, 0, 1, 1], [], []>} : vector<8x216xbf16>, vector<216x32xbf16>, vector<8x32xf32> -> vector<8x32xf32>
    %c0_98 = arith.constant 0 : index
    %c0_99 = arith.constant 0 : index
    %89 = vector.load %arg12[%c0_98, %c0_99] : memref<1x32xf32, #tpu.memory_space<vmem>>, vector<1x32xf32>
    %90 = vector.broadcast %89 : vector<1x32xf32> to vector<8x32xf32>
    %91 = arith.addf %88, %90 : vector<8x32xf32>
    %cst_100 = arith.constant 0.000000e+00 : f32
    %92 = vector.broadcast %cst_100 : f32 to vector<8x32xf32>
    %93 = arith.maximumf %91, %92 : vector<8x32xf32>
    %94 = arith.truncf %93 : vector<8x32xf32> to vector<8x32xbf16>
    %c0_101 = arith.constant 0 : index
    %c0_102 = arith.constant 0 : index
    %95 = vector.load %arg13[%c0_101, %c0_102] : memref<32x128xbf16, #tpu.memory_space<vmem>>, vector<32x128xbf16>
    %cst_103 = arith.constant dense<0.000000e+00> : vector<8x128xf32>
    %96 = tpu.matmul %94, %95, %cst_103 {dimension_numbers = #tpu.dot_dimension_numbers<[1], [0], [0], [1], [0, 0, 1, 1], [], []>} : vector<8x32xbf16>, vector<32x128xbf16>, vector<8x128xf32> -> vector<8x128xf32>
    %c0_104 = arith.constant 0 : index
    %c0_105 = arith.constant 0 : index
    %97 = vector.load %arg14[%c0_104, %c0_105] : memref<1x128xf32, #tpu.memory_space<vmem>>, vector<1x128xf32>
    %98 = vector.broadcast %97 : vector<1x128xf32> to vector<8x128xf32>
    %99 = arith.addf %96, %98 : vector<8x128xf32>
    %c0_106 = arith.constant 0 : index
    %c0_107 = arith.constant 0 : index
    %100 = vector.load %arg15[%c0_106, %c0_107] : memref<8x128xf32, #tpu.memory_space<vmem>>, vector<8x128xf32>
    tpu.vector_store %arg15[%c0_106, %c0_107], %99 {strides = array<i32>} : memref<8x128xf32, #tpu.memory_space<vmem>>, vector<8x128xf32>,
    return
  }
  func.func @transform_0(%arg0: i32) -> (i32, i32, i32) {
    %c0_i32 = arith.constant 0 : i32
    %c0_i32_0 = arith.constant 0 : i32
    %c0_i32_1 = arith.constant 0 : i32
    return %arg0, %c0_i32, %c0_i32_0 : i32, i32, i32
  }
  func.func @transform_1(%arg0: i32) -> (i32, i32) {
    %c0_i32 = arith.constant 0 : i32
    %c0_i32_0 = arith.constant 0 : i32
    %c0_i32_1 = arith.constant 0 : i32
    return %c0_i32, %c0_i32_0 : i32, i32
  }
  func.func @transform_2(%arg0: i32) -> (i32, i32) {
    %c0_i32 = arith.constant 0 : i32
    %c0_i32_0 = arith.constant 0 : i32
    %c0_i32_1 = arith.constant 0 : i32
    return %c0_i32, %c0_i32_0 : i32, i32
  }
  func.func @transform_3(%arg0: i32) -> (i32, i32) {
    %c0_i32 = arith.constant 0 : i32
    %c0_i32_0 = arith.constant 0 : i32
    %c0_i32_1 = arith.constant 0 : i32
    return %c0_i32, %c0_i32_0 : i32, i32
  }
  func.func @transform_4(%arg0: i32) -> (i32, i32) {
    %c0_i32 = arith.constant 0 : i32
    %c0_i32_0 = arith.constant 0 : i32
    %c0_i32_1 = arith.constant 0 : i32
    return %c0_i32, %c0_i32_0 : i32, i32
  }
  func.func @transform_5(%arg0: i32) -> (i32, i32) {
    %c0_i32 = arith.constant 0 : i32
    %c0_i32_0 = arith.constant 0 : i32
    %c0_i32_1 = arith.constant 0 : i32
    return %c0_i32, %c0_i32_0 : i32, i32
  }
  func.func @transform_6(%arg0: i32) -> (i32, i32) {
    %c0_i32 = arith.constant 0 : i32
    %c0_i32_0 = arith.constant 0 : i32
    %c0_i32_1 = arith.constant 0 : i32
    return %c0_i32, %c0_i32_0 : i32, i32
  }
  func.func @transform_7(%arg0: i32) -> (i32, i32) {
    %c0_i32 = arith.constant 0 : i32
    %c0_i32_0 = arith.constant 0 : i32
    %c0_i32_1 = arith.constant 0 : i32
    return %c0_i32, %c0_i32_0 : i32, i32
  }
  func.func @transform_8(%arg0: i32) -> (i32, i32) {
    %c0_i32 = arith.constant 0 : i32
    %c0_i32_0 = arith.constant 0 : i32
    %c0_i32_1 = arith.constant 0 : i32
    return %c0_i32, %c0_i32_0 : i32, i32
  }
  func.func @transform_9(%arg0: i32) -> (i32, i32) {
    %c0_i32 = arith.constant 0 : i32
    %c0_i32_0 = arith.constant 0 : i32
    %c0_i32_1 = arith.constant 0 : i32
    return %c0_i32, %c0_i32_0 : i32, i32
  }
  func.func @transform_10(%arg0: i32) -> (i32, i32) {
    %c0_i32 = arith.constant 0 : i32
    %c0_i32_0 = arith.constant 0 : i32
    %c0_i32_1 = arith.constant 0 : i32
    return %c0_i32, %c0_i32_0 : i32, i32
  }
  func.func @transform_11(%arg0: i32) -> (i32, i32) {
    %c0_i32 = arith.constant 0 : i32
    %c0_i32_0 = arith.constant 0 : i32
    %c0_i32_1 = arith.constant 0 : i32
    return %c0_i32, %c0_i32_0 : i32, i32
  }
  func.func @transform_12(%arg0: i32) -> (i32, i32) {
    %c0_i32 = arith.constant 0 : i32
    %c0_i32_0 = arith.constant 0 : i32
    %c0_i32_1 = arith.constant 0 : i32
    return %c0_i32, %c0_i32_0 : i32, i32
  }
  func.func @transform_13(%arg0: i32) -> (i32, i32) {
    %c0_i32 = arith.constant 0 : i32
    %c0_i32_0 = arith.constant 0 : i32
    %c0_i32_1 = arith.constant 0 : i32
    return %c0_i32, %c0_i32_0 : i32, i32
  }
  func.func @transform_14(%arg0: i32) -> (i32, i32) {
    %c0_i32 = arith.constant 0 : i32
    %c0_i32_0 = arith.constant 0 : i32
    return %arg0, %c0_i32 : i32, i32
  }
}

</mosaic_0001>

<bundles_post_ra>
// kernel: mnist_cnn_forward.1
= control target key start
LH: loop header
LB: loop body
LE: loop exit
PB: predicated region body
PF: predicated region fallthrough
CT: control target
= control target key end

     0   :  { %s10036_s0 = inlined_call_operand.vmem [shape: f32[16,28,28], index: 0, kind: input, shape index: {}]   ;;  %s10037_s1 = inlined_call_operand.vmem [shape: bf16[90,224], index: 1, kind: input, shape index: {}]   ;;  %s10038_s2 = inlined_call_operand.vmem [shape: f32[1,224], index: 2, kind: input, shape index: {}]   ;;  %s10039_s3 = inlined_call_operand.vmem [shape: f32[1,224], index: 3, kind: input, shape index: {}]   ;;  %s10040_s4 = inlined_call_operand.vmem [shape: bf16[384,224], index: 4, kind: input, shape index: {}]   ;;  %s10041_s5 = inlined_call_operand.vmem [shape: f32[1,224], index: 5, kind: input, shape index: {}]   ;;  %s10042_s6 = inlined_call_operand.vmem [shape: f32[1,224], index: 6, kind: input, shape index: {}]   ;;  %s10043_s7 = inlined_call_operand.vmem [shape: bf16[432,144], index: 7, kind: input, shape index: {}]   ;;  %s10044_s8 = inlined_call_operand.vmem [shape: f32[1,144], index: 8, kind: input, shape index: {}]   ;;  %s10045_s9 = inlined_call_operand.vmem [shape: f32[1,144], index: 9, kind: input, shape index: {}]   ;;  %s10046_s10 = inlined_call_operand.vmem [shape: bf16[216,32], index: 10, kind: input, shape index: {}]   ;;  %s10047_s11 = inlined_call_operand.vmem [shape: f32[1,32], index: 11, kind: input, shape index: {}]   ;;  %s10048_s12 = inlined_call_operand.vmem [shape: bf16[32,128], index: 12, kind: input, shape index: {}]   ;;  %s10049_s13 = inlined_call_operand.vmem [shape: f32[1,128], index: 13, kind: input, shape index: {}]   ;;  %s10050_s14 = inlined_call_operand.hbm [shape: f32[16,128], index: 14, kind: output, shape index: {}]  }
   0x1   :  { %10069 = sst [smem:[#allocation11_spill]] %s10036_s0 }
   0x2   :  { %10070 = sst [smem:[#allocation12_spill]] %s10037_s1 }
   0x3   :  { %10071 = sst [smem:[#allocation13_spill]] %s10038_s2 }
   0x4   :  { %19 = vsyncpa [#allocation7], 0 }
   0x5   :  { %21 = vsyncpa [#allocation7 + $0x1], 0  ;;  %s7786_s29 = smov 0   ;;  %s7788_s30 = smov 0  }
   0x6   :  { %s7790_s15 = smov 0   ;;  %s7792_s16 = smov 0  }
   0x7 LB: > { %10072 = sst [smem:[#allocation9_spill]] %s7691_s15  ;;  %s7807_s17 = sadd.s32 4294967295, %s7695_s16   ;;  %s7695_s16 = sphi %s7792_s16, %s10098_s16   ;;  %s7691_s15 = sphi %s7790_s15, %s10095_s15   ;;  %s7687_s30 = sphi %s7788_s30, %s10097_s30   ;;  %s7683_s29 = sphi %s7786_s29, %s10096_s29  }
   0x8   : > { %s7153_s18 = sadd.s32 4294967294, %s7695_s16   ;;  %s7811_s19 = sadd.s32 1, %s7695_s16  }
   0x9   : > { %s333_s20 = sadd.s32 1, %s7691_s15  ;;  %s330_s21 = ssub.s32 %s7695_s16, %s7811_s19 }
   0xa   : > { %p343_p0 = scmp.ne.s32.totalorder %s7691_s15, %s7687_s30  ;;  %p331_p1 = scmp.eq.s32.totalorder %s330_s21, 0 }
   0xb   : > { %p344_p2 = scmp.eq.s32.totalorder %s7807_s17, 1  ;;  %p349_p3 = scmp.ne.s32.totalorder %s7687_s30, %s7683_s29 }
   0xc   : > { %p350_p4 = scmp.eq.s32.totalorder %s7153_s18, 1  ;;  %p7156_p7 = scmp.ge.s32.totalorder %s7695_s16, 1 }
   0xd   : > { %s7822_s22 = scalar_select %p331_p1, %s7691_s15, %s333_s20  }
   0xe   : > { %p7824_p5 = por %p344_p2, %p343_p0  ;;  %p7828_p6 = por %p350_p4, %p349_p3 }
   0xf   : > { %10073 = sst [smem:[#allocation10_spill]] %s7822_s22  ;;  %p417_p8 = scmp.lt.s32.totalorder %s7695_s16, 3 }
  0x11   : > { %p418_p9 = pnand %p7156_p7, %p417_p8 }
  0x12   : > { %s7158_s25 = sshll.u32 (!%p418_p9), %s7807_s17, 3  ;;  %s10077_s0 = sld [smem:[#allocation11_spill]] (!%p418_p9) }
  0x13   : > { %421 = sbr.rel (%p418_p9) target bundleno = 2429 (0x97d), region = 76  ;;  %p7837_p10 = scmp.lt.s32.totalorder (!%p418_p9), %s7158_s25, 15 }
  0x14   : > { %s7698_s21 = smov (!%p418_p9), 1   ;;  %s10078_s1 = sld [smem:[#allocation12_spill]] (!%p418_p9) }
  0x15   : > { %s7701_s18 = smov (!%p418_p9), 60   ;;  %s10079_s2 = sld [smem:[#allocation13_spill]] (!%p418_p9) }
  0x16   : > { %s7704_s15 = smov (!%p418_p9), 8  }
  0x18   : > { %vm472_vm0 = vcmask 244736   ;;  %vm476_vm1 = vcmask 242688   ;;  %v7697_v0 = vmov 0.0   ;;  %s10100_s25 = smov (!%p7837_p10, %s7158_s25), 15  ;;  %vm1406_vm2 = vcmask 1044480  }
  0x19   : > { %475 = vst.msk [vmem:[#allocation2 + $0x10] sm:$0xff] %vm472_vm0, %v7697_v0  ;;  %473 = vst.msk [vmem:[#allocation2] sm:$0xff] %vm472_vm0, %v7697_v0  ;;  %s7375_s27 = sshll.u32 %s10100_s25, 5  ;;  %vm716_vm3 = vcmask 236552   ;;  %vm720_vm4 = vcmask 232456   ;;  %v10052_v59 = vmov 0  }
  0x1a   : > { %477 = vst.msk [vmem:[#allocation2 + $0x18] sm:$0x3f] %vm476_vm1, %v7697_v0  ;;  %481 = vst.msk [vmem:[#allocation2 + $0x38] sm:$0x3f] %vm476_vm1, %v7697_v0  ;;  %s7880_s20 = scalar_lea.vmem %s10077_s0, %s7375_s27  ;;  %v1301_v36 = vld [vmem:[%s10078_s1 + $0x40] sm:$0xff]  ;;  %v1302_v37 = vld [vmem:[%s10078_s1 + $0x48] sm:$0xff]  ;;  %1445 = vmatprep.mubr.bf16.mxu0 %v10052_v59 }
  0x1b   : > { %474 = vst.msk [vmem:[#allocation2 + $0x8] sm:$0xff] %vm472_vm0, %v7697_v0  ;;  %478 = vst.msk [vmem:[#allocation2 + $0x20] sm:$0xff] %vm472_vm0, %v7697_v0  ;;  %v558_v1 = vld [vmem:[%s7880_s20 + $0x10] sm:$0xff]  ;;  %v556_v2 = vld [vmem:[%s7880_s20] sm:$0xff]  ;;  %v7169_v39 = vcombine.low %v1301_v36, %v1302_v37  ;;  %s7699_s0 = smov 30   ;;  %vm1134_vm5 = vcmask 490496  }
  0x1c   : > { %479 = vst.msk [vmem:[#allocation2 + $0x28] sm:$0xff] %vm472_vm0, %v7697_v0  ;;  %480 = vst.msk [vmem:[#allocation2 + $0x30] sm:$0xff] %vm472_vm0, %v7697_v0  ;;  %624 = vrot.lane.b32.xlu1 %v558_v1, %s7698_s21  ;;  %620 = vrot.lane.b32.xlu0 %v556_v2, %s7698_s21  ;;  %v559_v3 = vld [vmem:[%s7880_s20 + $0x18] sm:$0xf]  ;;  %v557_v4 = vld [vmem:[%s7880_s20 + $0x8] sm:$0xff]  ;;  %vm1363_vm6 = vcmask 736256  }
  0x1d   : > { %482 = vst.msk [vmem:[#allocation2 + $0x40] sm:$0xff] %vm472_vm0, %v7697_v0  ;;  %483 = vst.msk [vmem:[#allocation2 + $0x48] sm:$0xff] %vm472_vm0, %v7697_v0  ;;  %v561_v5 = vld [vmem:[%s7880_s20 + $0x28] sm:$0xff]  ;;  %v560_v6 = vld [vmem:[%s7880_s20 + $0x20] sm:$0xff]  ;;  %vm523_vm7 = vcmask 130048   ;;  %s10067_s27 = smov 16  }
  0x1e   : > { %484 = vst.msk [vmem:[#allocation2 + $0x50] sm:$0xff] %vm472_vm0, %v7697_v0  ;;  %486 = vst.msk [vmem:[#allocation2 + $0x60] sm:$0xff] %vm472_vm0, %v7697_v0  ;;  %v562_v7 = vld [vmem:[%s7880_s20 + $0x30] sm:$0xff]  ;;  %v563_v8 = vld [vmem:[%s7880_s20 + $0x38] sm:$0xf]  ;;  %vm2030_vm8 = vcmask 916480  }
  0x1f   : > { %485 = vst.msk [vmem:[#allocation2 + $0x58] sm:$0x3f] %vm476_vm1, %v7697_v0  ;;  %489 = vst.msk [vmem:[#allocation2 + $0x78] sm:$0x3f] %vm476_vm1, %v7697_v0  ;;  %v564_v9 = vld [vmem:[%s7880_s20 + $0x40] sm:$0xff]  ;;  %v565_v10 = vld [vmem:[%s7880_s20 + $0x48] sm:$0xff] }
  0x20   : > { %487 = vst.msk [vmem:[#allocation2 + $0x68] sm:$0xff] %vm472_vm0, %v7697_v0  ;;  %488 = vst.msk [vmem:[#allocation2 + $0x70] sm:$0xff] %vm472_vm0, %v7697_v0  ;;  %626 = vrot.lane.b32.xlu1 %v559_v3, %s7698_s21  ;;  %622 = vrot.lane.b32.xlu0 %v557_v4, %s7698_s21  ;;  %v566_v11 = vld [vmem:[%s7880_s20 + $0x50] sm:$0xff]  ;;  %v567_v12 = vld [vmem:[%s7880_s20 + $0x58] sm:$0xf]  ;;  %vm2692_vm9 = vcmask 982080  }
  0x21   : > { %490 = vst.msk [vmem:[#allocation2 + $0x80] sm:$0xff] %vm472_vm0, %v7697_v0  ;;  %491 = vst.msk [vmem:[#allocation2 + $0x88] sm:$0xff] %vm472_vm0, %v7697_v0  ;;  %v568_v13 = vld [vmem:[%s7880_s20 + $0x60] sm:$0xff]  ;;  %v569_v14 = vld [vmem:[%s7880_s20 + $0x68] sm:$0xff]  ;;  %vm2694_vm10 = vcmask 980032   ;;  %vm5440_vm11 = vcmask 1047681  }
  0x22   : > { %492 = vst.msk [vmem:[#allocation2 + $0x90] sm:$0xff] %vm472_vm0, %v7697_v0  ;;  %494 = vst.msk [vmem:[#allocation2 + $0xa0] sm:$0xff] %vm472_vm0, %v7697_v0  ;;  %v570_v15 = vld [vmem:[%s7880_s20 + $0x70] sm:$0xff]  ;;  %v571_v16 = vld [vmem:[%s7880_s20 + $0x78] sm:$0xf]  ;;  %vm5649_vm12 = vcmask 261120  }
  0x23   : > { %493 = vst.msk [vmem:[#allocation2 + $0x98] sm:$0x3f] %vm476_vm1, %v7697_v0  ;;  %497 = vst.msk [vmem:[#allocation2 + $0xb8] sm:$0x3f] %vm476_vm1, %v7697_v0  ;;  %v572_v17 = vld [vmem:[%s7880_s20 + $0x80] sm:$0xff]  ;;  %v573_v18 = vld [vmem:[%s7880_s20 + $0x88] sm:$0xff] }
  0x24   : > { %495 = vst.msk [vmem:[#allocation2 + $0xa8] sm:$0xff] %vm472_vm0, %v7697_v0  ;;  %496 = vst.msk [vmem:[#allocation2 + $0xb0] sm:$0xff] %vm472_vm0, %v7697_v0  ;;  %630 = vrot.lane.b32.xlu1 %v561_v5, %s7698_s21  ;;  %628 = vrot.lane.b32.xlu0 %v560_v6, %s7698_s21  ;;  %v574_v19 = vld [vmem:[%s7880_s20 + $0x90] sm:$0xff]  ;;  %v575_v20 = vld [vmem:[%s7880_s20 + $0x98] sm:$0xf]  ;;  %vm6562_vm13 = vcmask 392192  }
  0x25   : > { %498 = vst.msk [vmem:[#allocation2 + $0xc0] sm:$0xff] %vm472_vm0, %v7697_v0  ;;  %499 = vst.msk [vmem:[#allocation2 + $0xc8] sm:$0xff] %vm472_vm0, %v7697_v0  ;;  %v576_v21 = vld [vmem:[%s7880_s20 + $0xa0] sm:$0xff]  ;;  %v577_v22 = vld [vmem:[%s7880_s20 + $0xa8] sm:$0xff]  ;;  %vm6967_vm14 = vcmask 1043456   ;;  %vm6794_vm15 = vcmask 457728  }
  0x26   : > { %500 = vst.msk [vmem:[#allocation2 + $0xd0] sm:$0xff] %vm472_vm0, %v7697_v0  ;;  %502 = vst.msk [vmem:[#allocation2 + $0xe0] sm:$0xff] %vm472_vm0, %v7697_v0  ;;  %v578_v23 = vld [vmem:[%s7880_s20 + $0xb0] sm:$0xff]  ;;  %v581_v24 = vld [vmem:[%s7880_s20 + $0xc8] sm:$0xff] }
  0x27   : > { %501 = vst.msk [vmem:[#allocation2 + $0xd8] sm:$0x3f] %vm476_vm1, %v7697_v0  ;;  %505 = vst.msk [vmem:[#allocation2 + $0xf8] sm:$0x3f] %vm476_vm1, %v7697_v0  ;;  %v579_v25 = vld [vmem:[%s7880_s20 + $0xb8] sm:$0xf] }
  0x28   : > { %503 = vst.msk [vmem:[#allocation2 + $0xe8] sm:$0xff] %vm472_vm0, %v7697_v0  ;;  %504 = vst.msk [vmem:[#allocation2 + $0xf0] sm:$0xff] %vm472_vm0, %v7697_v0  ;;  %632 = vrot.lane.b32.xlu0 %v562_v7, %s7698_s21  ;;  %634 = vrot.lane.b32.xlu1 %v563_v8, %s7698_s21  ;;  %v583_v26 = vld [vmem:[%s7880_s20 + $0xd8] sm:$0xf]  ;;  %v580_v27 = vld [vmem:[%s7880_s20 + $0xc0] sm:$0xff]  ;;  %vm6963_vm1 = vcmask 719872  }
  0x29   : > { %506 = vst [vmem:[#allocation3] sm:$0xff] %v7697_v0  ;;  %507 = vst [vmem:[#allocation3 + $0x8] sm:$0xff] %v7697_v0  ;;  %v585_v28 = vld [vmem:[%s7880_s20 + $0xe8] sm:$0xff]  ;;  %v582_v29 = vld [vmem:[%s7880_s20 + $0xd0] sm:$0xff] }
  0x2a   : > { %508 = vst [vmem:[#allocation3 + $0x10] sm:$0xff] %v7697_v0  ;;  %509 = vst [vmem:[#allocation3 + $0x18] sm:$0xff] %v7697_v0  ;;  %v587_v30 = vld [vmem:[%s7880_s20 + $0xf8] sm:$0xf]  ;;  %v584_v31 = vld [vmem:[%s7880_s20 + $0xe0] sm:$0xff] }
  0x2b   : > { %510 = vst [vmem:[#allocation3 + $0x20] sm:$0xff] %v7697_v0  ;;  %511 = vst [vmem:[#allocation3 + $0x28] sm:$0xff] %v7697_v0  ;;  %v586_v32 = vld [vmem:[%s7880_s20 + $0xf0] sm:$0xff]  ;;  %v7442_v38 = vld [vmem:[%s10078_s1 + $0x44] ss:$8 sps:$4 sm:$0xff]   ;;  %s10093_s20 = smov 32  }
  0x2c   : > { %512 = vst [vmem:[#allocation3 + $0x30] sm:$0xff] %v7697_v0  ;;  %513 = vst [vmem:[#allocation3 + $0x38] sm:$0xff] %v7697_v0  ;;  %636 = vrot.lane.b32.xlu0 %v564_v9, %s7698_s21  ;;  %638 = vrot.lane.b32.xlu1 %v565_v10, %s7698_s21  ;;  %v7439_v33 = vld [vmem:[%s10078_s1 + $0x54] ss:$8 sps:$4 sm:$0x1f]  }
  0x2d   : > { %514 = vst [vmem:[#allocation3 + $0x40] sm:$0xff] %v7697_v0  ;;  %515 = vst [vmem:[#allocation3 + $0x48] sm:$0xff] %v7697_v0  ;;  %v7441_v34 = vld [vmem:[%s10078_s1 + $0x50] ss:$8 sps:$4 sm:$0x1f]   ;;  %7173 = vmatprep.subr.msk.bf16.mxu0 %vm1406_vm2, %v7439_v33 }
  0x2e   : > { %516 = vst [vmem:[#allocation3 + $0x50] sm:$0xff] %v7697_v0  ;;  %517 = vst [vmem:[#allocation3 + $0x58] sm:$0xff] %v7697_v0  ;;  %v1408_v35 = vsel %vm1406_vm2, %v7441_v34, 0  ;;  %v7444_v40 = vld [vmem:[%s10078_s1 + $0x34] ss:$8 sps:$4 sm:$0xff]   ;;  %vm7709_vm2 = vmmov 0  }
  0x2f   : > { %518 = vst [vmem:[#allocation3 + $0x60] sm:$0xff] %v7697_v0  ;;  %519 = vst [vmem:[#allocation3 + $0x68] sm:$0xff] %v7697_v0  ;;  %1418 = vmatpush1.bf16.msra.mxu0 %v1408_v35  ;;  %v7446_v41 = vld [vmem:[%s10078_s1 + $0x30] ss:$8 sps:$4 sm:$0xff]   ;;  %v7447_v42 = vld [vmem:[%s10078_s1 + $0x24] ss:$8 sps:$4 sm:$0xff]  }
  0x30   : > { %520 = vst [vmem:[#allocation3 + $0x70] sm:$0xff] %v7697_v0  ;;  %521 = vst [vmem:[#allocation3 + $0x78] sm:$0xff] %v7697_v0  ;;  %640 = vrot.lane.b32.xlu0 %v566_v11, %s7698_s21  ;;  %642 = vrot.lane.b32.xlu1 %v567_v12, %s7698_s21  ;;  %v7449_v45 = vld [vmem:[%s10078_s1 + $0x20] ss:$8 sps:$4 sm:$0xff]   ;;  %v7450_v46 = vld [vmem:[%s10078_s1 + $0x14] ss:$8 sps:$4 sm:$0xff]  }
  0x31   : > { %522 = vst [vmem:[#allocation4] sm:$0xff] %v7697_v0  ;;  %528 = vst [vmem:[#allocation4 + $0x20] sm:$0xff] %v7697_v0  ;;  %1419 = vmatprep.subr.bf16.mxu0 %v7442_v38  ;;  %v7452_v49 = vld [vmem:[%s10078_s1 + $0x10] ss:$8 sps:$4 sm:$0xff]   ;;  %v7453_v50 = vld [vmem:[%s10078_s1 + $0x4] ss:$8 sps:$4 sm:$0xff]  }
  0x32   : > { %532 = vst [vmem:[#allocation4 + $0x40] sm:$0xff] %v7697_v0  ;;  %536 = vst [vmem:[#allocation4 + $0x60] sm:$0xff] %v7697_v0  ;;  %v7455_v54 = vld [vmem:[%s10078_s1] ss:$8 sps:$4 sm:$0xff]   ;;  %s10092_s1 = smov 16  }
  0x33   : > { %540 = vst [vmem:[#allocation4 + $0x80] sm:$0xff] %v7697_v0  ;;  %544 = vst [vmem:[#allocation4 + $0xa0] sm:$0xff] %v7697_v0  ;;  %1420 = vmatpush1.bf16.msra.mxu0 %v7169_v39 }
  0x34   : > { %548 = vst [vmem:[#allocation4 + $0xc0] sm:$0xff] %v7697_v0  ;;  %552 = vst [vmem:[#allocation4 + $0xe0] sm:$0xff] %v7697_v0  ;;  %644 = vrot.lane.b32.xlu0 %v568_v13, %s7698_s21  ;;  %646 = vrot.lane.b32.xlu1 %v569_v14, %s7698_s21 }
  0x35   : > { %1421 = vmatprep.subr.bf16.mxu0 %v7444_v40 }
  0x37   : > { %1422 = vmatpush1.bf16.msra.mxu0 %v7446_v41 }
  0x38   : > { %648 = vrot.lane.b32.xlu0 %v570_v15, %s7698_s21  ;;  %650 = vrot.lane.b32.xlu1 %v571_v16, %s7698_s21 }
  0x39   : > { %1423 = vmatprep.subr.bf16.mxu0 %v7447_v42 }
  0x3b   : > { %1424 = vmatpush1.bf16.msra.mxu0 %v7449_v45 }
  0x3c   : > { %652 = vrot.lane.b32.xlu0 %v572_v17, %s7698_s21  ;;  %654 = vrot.lane.b32.xlu1 %v573_v18, %s7698_s21 }
  0x3d   : > { %1425 = vmatprep.subr.bf16.mxu0 %v7450_v46 }
  0x3f   : > { %1426 = vmatpush1.bf16.msra.mxu0 %v7452_v49 }
  0x40   : > { %656 = vrot.lane.b32.xlu0 %v574_v19, %s7698_s21  ;;  %658 = vrot.lane.b32.xlu1 %v575_v20, %s7698_s21 }
  0x41   : > { %1427 = vmatprep.subr.bf16.mxu0 %v7453_v50 }
  0x43   : > { %1428 = vmatpush1.bf16.msra.mxu0 %v7455_v54 }
  0x44   : > { %660 = vrot.lane.b32.xlu0 %v576_v21, %s7698_s21  ;;  %662 = vrot.lane.b32.xlu1 %v577_v22, %s7698_s21 }
  0x48   : > { %664 = vrot.lane.b32.xlu0 %v578_v23, %s7698_s21  ;;  %670 = vrot.lane.b32.xlu1 %v581_v24, %s7698_s21 }
  0x4c   : > { %666 = vrot.lane.b32.xlu0 %v579_v25, %s7698_s21  ;;  %674 = vrot.lane.b32.xlu1 %v583_v26, %s7698_s21 }
  0x50   : > { %668 = vrot.lane.b32.xlu0 %v580_v27, %s7698_s21  ;;  %678 = vrot.lane.b32.xlu1 %v585_v28, %s7698_s21 }
  0x54   : > { %672 = vrot.lane.b32.xlu0 %v582_v29, %s7698_s21  ;;  %682 = vrot.lane.b32.xlu1 %v587_v30, %s7698_s21 }
  0x58   : > { %676 = vrot.lane.b32.xlu0 %v584_v31, %s7698_s21 }
  0x5c   : > { %680 = vrot.lane.b32.xlu0 %v586_v32, %s7698_s21  ;;  %s7372_s21 = sshll.u32 %s7807_s17, 7  ;;  %s7710_s17 = smov [#allocation6]  }
  0x5d   : > { %s9995_s28 = scalar_lea.hbm %s10050_s14, %s7372_s21 }
  0x8e   : > { %v625_v43 = vpop.permute.xlu1 %624  ;;  %v621_v44 = vpop.permute.xlu0 %620 }
  0x8f   : > { %719 = vst.msk [vmem:[#allocation2 + $0x11] sm:$0xff] %vm716_vm3, %v625_v43  ;;  %717 = vst.msk [vmem:[#allocation2 + $0x1] sm:$0xff] %vm716_vm3, %v621_v44 }
  0x92   : > { %v627_v47 = vpop.permute.xlu1 %626  ;;  %v623_v48 = vpop.permute.xlu0 %622 }
  0x93   : > { %721 = vst.msk [vmem:[#allocation2 + $0x19] sm:$0xf] %vm720_vm4, %v627_v47 }
  0x94   : > { %718 = vst.msk [vmem:[#allocation2 + $0x9] sm:$0xff] %vm716_vm3, %v623_v48 }
  0x96   : > { %v782_v51 = vld [vmem:[#allocation2 + $0x1] sm:$0xff]  ;;  %v631_v52 = vpop.permute.xlu1 %630  ;;  %v629_v53 = vpop.permute.xlu0 %628  ;;  %v784_v60 = vld [vmem:[#allocation2 + $0x11] sm:$0xff] }
  0x97   : > { %878 = vrot.lane.b32.xlu1 %v782_v51, %s7699_s0  ;;  %723 = vst.msk [vmem:[#allocation2 + $0x29] sm:$0xff] %vm716_vm3, %v631_v52  ;;  %722 = vst.msk [vmem:[#allocation2 + $0x21] sm:$0xff] %vm716_vm3, %v629_v53 }
  0x9a   : > { %v633_v57 = vpop.permute.xlu0 %632  ;;  %v635_v58 = vpop.permute.xlu1 %634  ;;  %v785_v0 = vld [vmem:[#allocation2 + $0x19] sm:$0xf] }
  0x9b   : > { %v815_v55 = vld [vmem:[#allocation2 + $0xa] sm:$0xff]  ;;  %724 = vst.msk [vmem:[#allocation2 + $0x31] sm:$0xff] %vm716_vm3, %v633_v57  ;;  %v814_v61 = vld [vmem:[#allocation2 + $0x2] sm:$0xff]  ;;  %v816_v1 = vld [vmem:[#allocation2 + $0x12] sm:$0xff] }
  0x9c   : > { %v783_v56 = vld [vmem:[#allocation2 + $0x9] sm:$0xff]  ;;  %1008 = vrot.lane.b32.xlu1 %v815_v55, %s7701_s18  ;;  %725 = vst.msk [vmem:[#allocation2 + $0x39] sm:$0xf] %vm720_vm4, %v635_v58  ;;  %v817_v5 = vld [vmem:[#allocation2 + $0x1a] sm:$0xf] }
  0x9d   : > { %880 = vrot.lane.b32.xlu0 %v783_v56, %s7699_s0 }
  0x9e   : > { %v637_v62 = vpop.permute.xlu0 %636  ;;  %v639_v63 = vpop.permute.xlu1 %638  ;;  %v786_v4 = vld [vmem:[#allocation2 + $0x21] sm:$0xff]  ;;  %v787_v8 = vld [vmem:[#allocation2 + $0x29] sm:$0xff] }
  0x9f   : > { %726 = vst.msk [vmem:[#allocation2 + $0x41] sm:$0xff] %vm716_vm3, %v637_v62  ;;  %727 = vst.msk [vmem:[#allocation2 + $0x49] sm:$0xff] %vm716_vm3, %v639_v63  ;;  %v818_v9 = vld [vmem:[#allocation2 + $0x22] sm:$0xff] }
  0xa0   : > { %882 = vrot.lane.b32.xlu1 %v784_v60, %s7699_s0 }
  0xa1   : > { %1006 = vrot.lane.b32.xlu0 %v814_v61, %s7701_s18 }
  0xa2   : > { %v641_v2 = vpop.permute.xlu0 %640  ;;  %v643_v3 = vpop.permute.xlu1 %642  ;;  %v788_v12 = vld [vmem:[#allocation2 + $0x31] sm:$0xff] }
  0xa3   : > { %728 = vst.msk [vmem:[#allocation2 + $0x51] sm:$0xff] %vm716_vm3, %v641_v2  ;;  %v819_v13 = vld [vmem:[#allocation2 + $0x2a] sm:$0xff]  ;;  %v820_v17 = vld [vmem:[#allocation2 + $0x32] sm:$0xff]  ;;  %v821_v24 = vld [vmem:[#allocation2 + $0x3a] sm:$0xf] }
  0xa4   : > { %1010 = vrot.lane.b32.xlu1 %v816_v1, %s7701_s18  ;;  %729 = vst.msk [vmem:[#allocation2 + $0x59] sm:$0xf] %vm720_vm4, %v643_v3  ;;  %v789_v21 = vld [vmem:[#allocation2 + $0x39] sm:$0xf] }
  0xa5   : > { %884 = vrot.lane.b32.xlu0 %v785_v0, %s7699_s0 }
  0xa6   : > { %v645_v6 = vpop.permute.xlu0 %644  ;;  %v647_v7 = vpop.permute.xlu1 %646  ;;  %v790_v16 = vld [vmem:[#allocation2 + $0x41] sm:$0xff]  ;;  %v791_v25 = vld [vmem:[#allocation2 + $0x49] sm:$0xff] }
  0xa7   : > { %730 = vst.msk [vmem:[#allocation2 + $0x61] sm:$0xff] %vm716_vm3, %v645_v6  ;;  %731 = vst.msk [vmem:[#allocation2 + $0x69] sm:$0xff] %vm716_vm3, %v647_v7  ;;  %v822_v20 = vld [vmem:[#allocation2 + $0x42] sm:$0xff] }
  0xa8   : > { %886 = vrot.lane.b32.xlu1 %v786_v4, %s7699_s0 }
  0xa9   : > { %1012 = vrot.lane.b32.xlu0 %v817_v5, %s7701_s18 }
  0xaa   : > { %v649_v10 = vpop.permute.xlu0 %648  ;;  %v651_v11 = vpop.permute.xlu1 %650  ;;  %v792_v29 = vld [vmem:[#allocation2 + $0x51] sm:$0xff] }
  0xab   : > { %732 = vst.msk [vmem:[#allocation2 + $0x71] sm:$0xff] %vm716_vm3, %v649_v10  ;;  %v824_v28 = vld [vmem:[#allocation2 + $0x52] sm:$0xff]  ;;  %v823_v33 = vld [vmem:[#allocation2 + $0x4a] sm:$0xff]  ;;  %v825_v41 = vld [vmem:[#allocation2 + $0x5a] sm:$0xf] }
  0xac   : > { %1014 = vrot.lane.b32.xlu1 %v818_v9, %s7701_s18  ;;  %733 = vst.msk [vmem:[#allocation2 + $0x79] sm:$0xf] %vm720_vm4, %v651_v11  ;;  %v793_v37 = vld [vmem:[#allocation2 + $0x59] sm:$0xf] }
  0xad   : > { %888 = vrot.lane.b32.xlu0 %v787_v8, %s7699_s0 }
  0xae   : > { %v653_v14 = vpop.permute.xlu0 %652  ;;  %v655_v15 = vpop.permute.xlu1 %654  ;;  %v794_v32 = vld [vmem:[#allocation2 + $0x61] sm:$0xff]  ;;  %v795_v40 = vld [vmem:[#allocation2 + $0x69] sm:$0xff] }
  0xaf   : > { %734 = vst.msk [vmem:[#allocation2 + $0x81] sm:$0xff] %vm716_vm3, %v653_v14  ;;  %735 = vst.msk [vmem:[#allocation2 + $0x89] sm:$0xff] %vm716_vm3, %v655_v15  ;;  %v826_v36 = vld [vmem:[#allocation2 + $0x62] sm:$0xff] }
  0xb0   : > { %1016 = vrot.lane.b32.xlu1 %v819_v13, %s7701_s18 }
  0xb1   : > { %890 = vrot.lane.b32.xlu0 %v788_v12, %s7699_s0 }
  0xb2   : > { %v657_v18 = vpop.permute.xlu0 %656  ;;  %v659_v19 = vpop.permute.xlu1 %658  ;;  %v796_v43 = vld [vmem:[#allocation2 + $0x71] sm:$0xff] }
  0xb3   : > { %736 = vst.msk [vmem:[#allocation2 + $0x91] sm:$0xff] %vm716_vm3, %v657_v18  ;;  %v827_v44 = vld [vmem:[#allocation2 + $0x6a] sm:$0xff]  ;;  %v797_v46 = vld [vmem:[#allocation2 + $0x79] sm:$0xf] }
  0xb4   : > { %1018 = vrot.lane.b32.xlu1 %v820_v17, %s7701_s18  ;;  %737 = vst.msk [vmem:[#allocation2 + $0x99] sm:$0xf] %vm720_vm4, %v659_v19  ;;  %v828_v47 = vld [vmem:[#allocation2 + $0x72] sm:$0xff]  ;;  %v829_v49 = vld [vmem:[#allocation2 + $0x7a] sm:$0xf] }
  0xb5   : > { %894 = vrot.lane.b32.xlu0 %v790_v16, %s7699_s0  ;;  %v751_v16 = vld [vmem:[#allocation2 + $0x8] sm:$0xff] }
  0xb6   : > { %v661_v22 = vpop.permute.xlu0 %660  ;;  %v663_v23 = vpop.permute.xlu1 %662  ;;  %v798_v48 = vld [vmem:[#allocation2 + $0x81] sm:$0xff]  ;;  %v799_v50 = vld [vmem:[#allocation2 + $0x89] sm:$0xff] }
  0xb7   : > { %738 = vst.msk [vmem:[#allocation2 + $0xa1] sm:$0xff] %vm716_vm3, %v661_v22  ;;  %739 = vst.msk [vmem:[#allocation2 + $0xa9] sm:$0xff] %vm716_vm3, %v663_v23  ;;  %v830_v51 = vld [vmem:[#allocation2 + $0x82] sm:$0xff] }
  0xb8   : > { %1022 = vrot.lane.b32.xlu1 %v822_v20, %s7701_s18 }
  0xb9   : > { %892 = vrot.lane.b32.xlu0 %v789_v21, %s7699_s0  ;;  %v750_v21 = vld [vmem:[#allocation2] sm:$0xff] }
  0xba   : > { %v665_v26 = vpop.permute.xlu0 %664  ;;  %v671_v27 = vpop.permute.xlu1 %670  ;;  %v800_v52 = vld [vmem:[#allocation2 + $0x91] sm:$0xff] }
  0xbb   : > { %740 = vst.msk [vmem:[#allocation2 + $0xb1] sm:$0xff] %vm716_vm3, %v665_v26  ;;  %743 = vst.msk [vmem:[#allocation2 + $0xc9] sm:$0xff] %vm716_vm3, %v671_v27  ;;  %v831_v53 = vld [vmem:[#allocation2 + $0x8a] sm:$0xff]  ;;  %v801_v54 = vld [vmem:[#allocation2 + $0x99] sm:$0xf] }
  0xbc   : > { %1020 = vrot.lane.b32.xlu1 %v821_v24, %s7701_s18  ;;  %v832_v55 = vld [vmem:[#allocation2 + $0x92] sm:$0xff]  ;;  %v833_v57 = vld [vmem:[#allocation2 + $0x9a] sm:$0xf] }
  0xbd   : > { %896 = vrot.lane.b32.xlu0 %v791_v25, %s7699_s0 }
  0xbe   : > { %v667_v30 = vpop.permute.xlu0 %666  ;;  %v675_v31 = vpop.permute.xlu1 %674  ;;  %v802_v56 = vld [vmem:[#allocation2 + $0xa1] sm:$0xff]  ;;  %v803_v58 = vld [vmem:[#allocation2 + $0xa9] sm:$0xff] }
  0xbf   : > { %741 = vst.msk [vmem:[#allocation2 + $0xb9] sm:$0xf] %vm720_vm4, %v667_v30  ;;  %745 = vst.msk [vmem:[#allocation2 + $0xd9] sm:$0xf] %vm720_vm4, %v675_v31  ;;  %v834_v60 = vld [vmem:[#allocation2 + $0xa2] sm:$0xff] }
  0xc0   : > { %898 = vrot.lane.b32.xlu1 %v792_v29, %s7699_s0 }
  0xc1   : > { %1026 = vrot.lane.b32.xlu0 %v824_v28, %s7701_s18 }
  0xc2   : > { %v669_v34 = vpop.permute.xlu0 %668  ;;  %v679_v35 = vpop.permute.xlu1 %678  ;;  %v804_v61 = vld [vmem:[#allocation2 + $0xb1] sm:$0xff]  ;;  %v807_v4 = vld [vmem:[#allocation2 + $0xc9] sm:$0xff] }
  0xc3   : > { %742 = vst.msk [vmem:[#allocation2 + $0xc1] sm:$0xff] %vm716_vm3, %v669_v34  ;;  %747 = vst.msk [vmem:[#allocation2 + $0xe9] sm:$0xff] %vm716_vm3, %v679_v35  ;;  %v835_v62 = vld [vmem:[#allocation2 + $0xaa] sm:$0xff] }
  0xc4   : > { %1024 = vrot.lane.b32.xlu1 %v823_v33, %s7701_s18  ;;  %v752_v34 = vld [vmem:[#allocation2 + $0x10] sm:$0xff] }
  0xc5   : > { %902 = vrot.lane.b32.xlu0 %v794_v32, %s7699_s0 }
  0xc6   : > { %v673_v38 = vpop.permute.xlu0 %672  ;;  %v683_v39 = vpop.permute.xlu1 %682  ;;  %v836_v0 = vld [vmem:[#allocation2 + $0xb2] sm:$0xff]  ;;  %v837_v3 = vld [vmem:[#allocation2 + $0xba] sm:$0xf] }
  0xc7   : > { %744 = vst.msk [vmem:[#allocation2 + $0xd1] sm:$0xff] %vm716_vm3, %v673_v38  ;;  %v805_v2 = vld [vmem:[#allocation2 + $0xb9] sm:$0xf] }
  0xc8   : > { %1030 = vrot.lane.b32.xlu1 %v826_v36, %s7701_s18  ;;  %749 = vst.msk [vmem:[#allocation2 + $0xf9] sm:$0xf] %vm720_vm4, %v683_v39  ;;  %v809_v10 = vld [vmem:[#allocation2 + $0xd9] sm:$0xf] }
  0xc9   : > { %900 = vrot.lane.b32.xlu0 %v793_v37, %s7699_s0  ;;  %v841_v13 = vld [vmem:[#allocation2 + $0xda] sm:$0xf] }
  0xca   : > { %v677_v42 = vpop.permute.xlu0 %676  ;;  %v806_v63 = vld [vmem:[#allocation2 + $0xc1] sm:$0xff]  ;;  %v811_v12 = vld [vmem:[#allocation2 + $0xe9] sm:$0xff] }
  0xcb   : > { %746 = vst.msk [vmem:[#allocation2 + $0xe1] sm:$0xff] %vm716_vm3, %v677_v42  ;;  %v838_v1 = vld [vmem:[#allocation2 + $0xc2] sm:$0xff]  ;;  %v753_v42 = vld [vmem:[#allocation2 + $0x18] sm:$0xf] }
  0xcc   : > { %904 = vrot.lane.b32.xlu1 %v795_v40, %s7699_s0 }
  0xcd   : > { %1028 = vrot.lane.b32.xlu0 %v825_v41, %s7701_s18 }
  0xce   : > { %v681_v45 = vpop.permute.xlu0 %680  ;;  %v808_v5 = vld [vmem:[#allocation2 + $0xd1] sm:$0xff] }
  0xcf   : > { %748 = vst.msk [vmem:[#allocation2 + $0xf1] sm:$0xff] %vm716_vm3, %v681_v45  ;;  %v839_v6 = vld [vmem:[#allocation2 + $0xca] sm:$0xff]  ;;  %v840_v8 = vld [vmem:[#allocation2 + $0xd2] sm:$0xff]  ;;  %v845_v35 = vld [vmem:[#allocation2 + $0xfa] sm:$0xf] }
  0xd0   : > { %1032 = vrot.lane.b32.xlu1 %v827_v44, %s7701_s18  ;;  %v813_v28 = vld [vmem:[#allocation2 + $0xf9] sm:$0xf] }
  0xd1   : > { %906 = vrot.lane.b32.xlu0 %v796_v43, %s7699_s0  ;;  %v754_v43 = vld [vmem:[#allocation2 + $0x20] sm:$0xff] }
  0xd2   : > { %v810_v7 = vld [vmem:[#allocation2 + $0xe1] sm:$0xff] }
  0xd3   : > { %v842_v9 = vld [vmem:[#allocation2 + $0xe2] sm:$0xff] }
  0xd4   : > { %1034 = vrot.lane.b32.xlu1 %v828_v47, %s7701_s18 }
  0xd5   : > { %908 = vrot.lane.b32.xlu0 %v797_v46, %s7699_s0 }
  0xd6   : > { %v812_v14 = vld [vmem:[#allocation2 + $0xf1] sm:$0xff] }
  0xd7   : > { %v843_v19 = vld [vmem:[#allocation2 + $0xea] sm:$0xff]  ;;  %v844_v27 = vld [vmem:[#allocation2 + $0xf2] sm:$0xff] }
  0xd8   : > { %1036 = vrot.lane.b32.xlu1 %v829_v49, %s7701_s18 }
  0xd9   : > { %910 = vrot.lane.b32.xlu0 %v798_v48, %s7699_s0 }
  0xdc   : > { %912 = vrot.lane.b32.xlu1 %v799_v50, %s7699_s0 }
  0xdd   : > { %1038 = vrot.lane.b32.xlu0 %v830_v51, %s7701_s18 }
  0xe0   : > { %1040 = vrot.lane.b32.xlu1 %v831_v53, %s7701_s18 }
  0xe1   : > { %914 = vrot.lane.b32.xlu0 %v800_v52, %s7699_s0  ;;  %v755_v52 = vld [vmem:[#allocation2 + $0x28] sm:$0xff] }
  0xe4   : > { %1042 = vrot.lane.b32.xlu1 %v832_v55, %s7701_s18 }
  0xe5   : > { %916 = vrot.lane.b32.xlu0 %v801_v54, %s7699_s0 }
  0xe8   : > { %918 = vrot.lane.b32.xlu1 %v802_v56, %s7699_s0 }
  0xe9   : > { %1044 = vrot.lane.b32.xlu0 %v833_v57, %s7701_s18 }
  0xec   : > { %1046 = vrot.lane.b32.xlu1 %v834_v60, %s7701_s18 }
  0xed   : > { %920 = vrot.lane.b32.xlu0 %v803_v58, %s7699_s0  ;;  %v756_v58 = vld [vmem:[#allocation2 + $0x30] sm:$0xff] }
  0xf0   : > { %1048 = vrot.lane.b32.xlu1 %v835_v62, %s7701_s18 }
  0xf1   : > { %922 = vrot.lane.b32.xlu0 %v804_v61, %s7699_s0 }
  0xf4   : > { %1050 = vrot.lane.b32.xlu1 %v836_v0, %s7701_s18 }
  0xf5   : > { %926 = vrot.lane.b32.xlu0 %v806_v63, %s7699_s0 }
  0xf8   : > { %1054 = vrot.lane.b32.xlu1 %v838_v1, %s7701_s18 }
  0xf9   : > { %924 = vrot.lane.b32.xlu0 %v805_v2, %s7699_s0 }
  0xfc   : > { %1052 = vrot.lane.b32.xlu1 %v837_v3, %s7701_s18 }
  0xfd   : > { %928 = vrot.lane.b32.xlu0 %v807_v4, %s7699_s0  ;;  %v758_v4 = vld [vmem:[#allocation2 + $0x40] sm:$0xff] }
 0x100   : > { %930 = vrot.lane.b32.xlu1 %v808_v5, %s7699_s0 }
 0x101   : > { %1056 = vrot.lane.b32.xlu0 %v839_v6, %s7701_s18 }
 0x104   : > { %1058 = vrot.lane.b32.xlu1 %v840_v8, %s7701_s18 }
 0x105   : > { %934 = vrot.lane.b32.xlu0 %v810_v7, %s7699_s0 }
 0x108   : > { %1062 = vrot.lane.b32.xlu1 %v842_v9, %s7701_s18 }
 0x109   : > { %932 = vrot.lane.b32.xlu0 %v809_v10, %s7699_s0  ;;  %v879_v11 = vpop.permute.xlu1 %878 }
 0x10a   : > { %v1102_v22 = vsel %vm472_vm0, %v750_v21, %v879_v11  ;;  %v757_v11 = vld [vmem:[#allocation2 + $0x38] sm:$0xf]  ;;  %v760_v21 = vld [vmem:[#allocation2 + $0x50] sm:$0xff] }
 0x10c   : > { %936 = vrot.lane.b32.xlu1 %v811_v12, %s7699_s0 }
 0x10d   : > { %1060 = vrot.lane.b32.xlu0 %v841_v13, %s7701_s18 }
 0x10e   : > { %v1009_v15 = vpop.permute.xlu1 %1008 }
 0x10f   : > { %v881_v17 = vpop.permute.xlu0 %880 }
 0x110   : > { %v1103_v18 = vsel %vm472_vm0, %v751_v16, %v881_v17  ;;  %1064 = vrot.lane.b32.xlu1 %v843_v19, %s7701_s18 }
 0x111   : > { %v1136_v20 = vsel %vm1134_vm5, %v1103_v18, %v1009_v15  ;;  %938 = vrot.lane.b32.xlu0 %v812_v14, %s7699_s0 }
 0x112   : > { %v1200_v23 = vcombine.high %v1136_v20, %v1136_v20  ;;  %v883_v24 = vpop.permute.xlu1 %882 }
 0x113   : > { %v1007_v25 = vpop.permute.xlu0 %1006  ;;  %v1104_v36 = vsel %vm472_vm0, %v752_v34, %v883_v24 }
 0x114   : > { %v1135_v26 = vsel %vm1134_vm5, %v1102_v22, %v1007_v25  ;;  %1066 = vrot.lane.b32.xlu1 %v844_v27, %s7701_s18  ;;  %v1224_v30 = vcombine.low %v1136_v20, %v1200_v23  ;;  %v759_v25 = vld [vmem:[#allocation2 + $0x48] sm:$0xff] }
 0x115   : > { %v1199_v29 = vcombine.high %v1135_v26, %v1135_v26  ;;  %940 = vrot.lane.b32.xlu0 %v813_v28, %s7699_s0  ;;  %s7707_s0 = smov 56  }
 0x116   : > { %v1011_v32 = vpop.permute.xlu1 %1010 }
 0x117   : > { %v1223_v31 = vcombine.low %v1135_v26, %v1199_v29  ;;  %v885_v33 = vpop.permute.xlu0 %884  ;;  %v1137_v38 = vsel %vm1134_vm5, %v1104_v36, %v1011_v32 }
 0x118   : > { %1068 = vrot.lane.b32.xlu1 %v845_v35, %s7701_s18  ;;  %v1201_v41 = vcombine.high %v1137_v38, %v1137_v38  ;;  %v1105_v44 = vsel %vm472_vm0, %v753_v42, %v885_v33  ;;  %v761_v42 = vld [vmem:[#allocation2 + $0x58] sm:$0xf]  ;;  %s10065_s18 = smov 32  }
 0x119   : > { %v1279_v37 = vpack.c.bf16 %v1224_v30, %v1223_v31 }
 0x11a   : > { %v887_v39 = vpop.permute.xlu1 %886  ;;  %v1225_v50 = vcombine.low %v1137_v38, %v1201_v41 }
 0x11b   : > { %7174 = vmatmul.mubr.msk.bf16.vlgmr.msra.gmra.mxu0 %vm1363_vm6, %v1279_v37  ;;  %v1013_v40 = vpop.permute.xlu0 %1012  ;;  %v1106_v45 = vsel %vm472_vm0, %v754_v43, %v887_v39  ;;  %v762_v37 = vld [vmem:[#allocation2 + $0x60] sm:$0xff] }
 0x11c   : > { %1455 = vmatprep.mubr.bf16.mxu0 %v10052_v59  ;;  %v1138_v48 = vsel %vm1134_vm5, %v1105_v44, %v1013_v40  ;;  %v763_v44 = vld [vmem:[#allocation2 + $0x68] sm:$0xff] }
 0x11e   : > { %v1015_v46 = vpop.permute.xlu1 %1014 }
 0x11f   : > { %v889_v47 = vpop.permute.xlu0 %888  ;;  %v1139_v49 = vsel %vm1134_vm5, %v1106_v45, %v1015_v46 }
 0x120   : > { %v1226_v51 = vcombine.low %v1138_v48, %v1139_v49  ;;  %v1107_v54 = vsel %vm472_vm0, %v755_v52, %v889_v47  ;;  %v1202_v60 = vcombine.high %v1139_v49, %v1139_v49 }
 0x122   : > { %v1280_v53 = vpack.c.bf16 %v1226_v51, %v1225_v50  ;;  %v1017_v55 = vpop.permute.xlu1 %1016 }
 0x123   : > { %v891_v56 = vpop.permute.xlu0 %890  ;;  %v1140_v57 = vsel %vm1134_vm5, %v1107_v54, %v1017_v55 }
 0x124   : > { %7175 = vmatmul.mubr.msk.bf16.gmra.mxu0 %vm1363_vm6, %v1280_v53  ;;  %v1203_v61 = vcombine.high %v1140_v57, %v1140_v57  ;;  %v1108_v62 = vsel %vm472_vm0, %v756_v58, %v891_v56  ;;  %v1227_v2 = vcombine.low %v1202_v60, %v1140_v57  ;;  %v764_v53 = vld [vmem:[#allocation2 + $0x70] sm:$0xff]  ;;  %v765_v60 = vld [vmem:[#allocation2 + $0x78] sm:$0xf] }
 0x125   : > { %1465 = vmatprep.mubr.bf16.mxu0 %v10052_v59 }
 0x126   : > { %v1019_v63 = vpop.permute.xlu1 %1018 }
 0x127   : > { %v895_v0 = vpop.permute.xlu0 %894  ;;  %v1141_v1 = vsel %vm1134_vm5, %v1108_v62, %v1019_v63 }
 0x128   : > { %v1228_v3 = vcombine.low %v1203_v61, %v1141_v1  ;;  %v1110_v6 = vsel %vm472_vm0, %v758_v4, %v895_v0  ;;  %v1204_v12 = vcombine.high %v1141_v1, %v1141_v1 }
 0x12a   : > { %v1281_v5 = vpack.c.bf16 %v1228_v3, %v1227_v2  ;;  %v1023_v7 = vpop.permute.xlu1 %1022 }
 0x12b   : > { %v893_v8 = vpop.permute.xlu0 %892  ;;  %v1143_v9 = vsel %vm1134_vm5, %v1110_v6, %v1023_v7 }
 0x12c   : > { %v1205_v10 = vcombine.high %v1143_v9, %v1143_v9  ;;  %7176 = vmatmul.mubr.msk.bf16.gmra.mxu0 %vm1363_vm6, %v1281_v5  ;;  %v1109_v13 = vsel %vm472_vm0, %v757_v11, %v893_v8  ;;  %v766_v5 = vld [vmem:[#allocation2 + $0x80] sm:$0xff]  ;;  %v767_v11 = vld [vmem:[#allocation2 + $0x88] sm:$0xff] }
 0x12d   : > { %1475 = vmatprep.mubr.bf16.mxu0 %v10052_v59 }
 0x12e   : > { %v1021_v14 = vpop.permute.xlu1 %1020  ;;  %v1230_v17 = vcombine.low %v1143_v9, %v1205_v10 }
 0x12f   : > { %v897_v15 = vpop.permute.xlu0 %896  ;;  %v1142_v16 = vsel %vm1134_vm5, %v1109_v13, %v1021_v14 }
 0x130   : > { %v1229_v18 = vcombine.low %v1204_v12, %v1142_v16  ;;  %v1111_v26 = vsel %vm472_vm0, %v759_v25, %v897_v15 }
 0x132   : > { %v1282_v19 = vpack.c.bf16 %v1230_v17, %v1229_v18  ;;  %v899_v20 = vpop.permute.xlu1 %898 }
 0x133   : > { %v1027_v22 = vpop.permute.xlu0 %1026  ;;  %v1112_v23 = vsel %vm472_vm0, %v760_v21, %v899_v20 }
 0x134   : > { %v1145_v24 = vsel %vm1134_vm5, %v1112_v23, %v1027_v22  ;;  %7177 = vmatmul.mubr.msk.bf16.gmra.mxu0 %vm1363_vm6, %v1282_v19  ;;  %v768_v22 = vld [vmem:[#allocation2 + $0x90] sm:$0xff] }
 0x135   : > { %1485 = vmatprep.mubr.bf16.mxu0 %v10052_v59  ;;  %v1207_v27 = vcombine.high %v1145_v24, %v1145_v24 }
 0x136   : > { %v1025_v28 = vpop.permute.xlu1 %1024 }
 0x137   : > { %v903_v29 = vpop.permute.xlu0 %902  ;;  %v1144_v30 = vsel %vm1134_vm5, %v1111_v26, %v1025_v28  ;;  %v1232_v32 = vcombine.low %v1145_v24, %v1207_v27 }
 0x138   : > { %v1206_v31 = vcombine.high %v1144_v30, %v1144_v30  ;;  %v1114_v38 = vsel %vm472_vm0, %v762_v37, %v903_v29  ;;  %v769_v29 = vld [vmem:[#allocation2 + $0x98] sm:$0xf] }
 0x13a   : > { %v1231_v33 = vcombine.low %v1144_v30, %v1206_v31  ;;  %v1031_v34 = vpop.permute.xlu1 %1030  ;;  %v770_v30 = vld [vmem:[#allocation2 + $0xa0] sm:$0xff] }
 0x13b   : > { %v901_v35 = vpop.permute.xlu0 %900  ;;  %v1147_v41 = vsel %vm1134_vm5, %v1114_v38, %v1031_v34 }
 0x13c   : > { %v1283_v36 = vpack.c.bf16 %v1232_v32, %v1231_v33  ;;  %v1113_v43 = vsel %vm472_vm0, %v761_v42, %v901_v35  ;;  %v1208_v46 = vcombine.high %v1147_v41, %v1147_v41 }
 0x13e   : > { %v905_v39 = vpop.permute.xlu1 %904  ;;  %7178 = vmatmul.mubr.msk.bf16.gmra.mxu0 %vm1363_vm6, %v1283_v36 }
 0x13f   : > { %v1029_v40 = vpop.permute.xlu0 %1028  ;;  %1495 = vmatprep.mubr.bf16.mxu0 %v10052_v59  ;;  %v1115_v47 = vsel %vm472_vm0, %v763_v44, %v905_v39  ;;  %v771_v39 = vld [vmem:[#allocation2 + $0xa8] sm:$0xff] }
 0x140   : > { %v1146_v45 = vsel %vm1134_vm5, %v1113_v43, %v1029_v40 }
 0x141   : > { %v1233_v51 = vcombine.low %v1146_v45, %v1147_v41  ;;  %v772_v45 = vld [vmem:[#allocation2 + $0xb0] sm:$0xff] }
 0x142   : > { %v1033_v48 = vpop.permute.xlu1 %1032 }
 0x143   : > { %v907_v49 = vpop.permute.xlu0 %906  ;;  %v1148_v50 = vsel %vm1134_vm5, %v1115_v47, %v1033_v48 }
 0x144   : > { %v1234_v52 = vcombine.low %v1208_v46, %v1148_v50  ;;  %v1116_v55 = vsel %vm472_vm0, %v764_v53, %v907_v49  ;;  %v1209_v61 = vcombine.high %v1148_v50, %v1148_v50 }
 0x146   : > { %v1284_v54 = vpack.c.bf16 %v1234_v52, %v1233_v51  ;;  %v1035_v56 = vpop.permute.xlu1 %1034 }
 0x147   : > { %v909_v57 = vpop.permute.xlu0 %908  ;;  %v1149_v58 = vsel %vm1134_vm5, %v1116_v55, %v1035_v56 }
 0x148   : > { %7179 = vmatmul.mubr.msk.bf16.gmra.mxu0 %vm1363_vm6, %v1284_v54  ;;  %v1210_v62 = vcombine.high %v1149_v58, %v1149_v58  ;;  %v1117_v63 = vsel %vm472_vm0, %v765_v60, %v909_v57  ;;  %v1235_v3 = vcombine.low %v1209_v61, %v1149_v58  ;;  %v774_v54 = vld [vmem:[#allocation2 + $0xc0] sm:$0xff] }
 0x149   : > { %1505 = vmatprep.mubr.bf16.mxu0 %v10052_v59 }
 0x14a   : > { %v1037_v0 = vpop.permute.xlu1 %1036 }
 0x14b   : > { %v911_v1 = vpop.permute.xlu0 %910  ;;  %v1150_v2 = vsel %vm1134_vm5, %v1117_v63, %v1037_v0 }
 0x14c   : > { %v1236_v4 = vcombine.low %v1210_v62, %v1150_v2  ;;  %v1118_v7 = vsel %vm472_vm0, %v766_v5, %v911_v1  ;;  %v773_v62 = vld [vmem:[#allocation2 + $0xb8] sm:$0xf] }
 0x14e   : > { %v1285_v6 = vpack.c.bf16 %v1236_v4, %v1235_v3  ;;  %v913_v8 = vpop.permute.xlu1 %912 }
 0x14f   : > { %v1039_v9 = vpop.permute.xlu0 %1038  ;;  %v1119_v12 = vsel %vm472_vm0, %v767_v11, %v913_v8 }
 0x150   : > { %v1151_v10 = vsel %vm1134_vm5, %v1118_v7, %v1039_v9  ;;  %7180 = vmatmul.mubr.msk.bf16.gmra.mxu0 %vm1363_vm6, %v1285_v6  ;;  %v775_v6 = vld [vmem:[#allocation2 + $0xc8] sm:$0xff] }
 0x151   : > { %1515 = vmatprep.mubr.bf16.mxu0 %v10052_v59  ;;  %v1211_v13 = vcombine.high %v1151_v10, %v1151_v10 }
 0x152   : > { %v1041_v14 = vpop.permute.xlu1 %1040 }
 0x153   : > { %v915_v15 = vpop.permute.xlu0 %914  ;;  %v1152_v16 = vsel %vm1134_vm5, %v1119_v12, %v1041_v14  ;;  %v1237_v18 = vcombine.low %v1151_v10, %v1211_v13  ;;  %v776_v12 = vld [vmem:[#allocation2 + $0xd0] sm:$0xff] }
 0x154   : > { %v1212_v17 = vcombine.high %v1152_v16, %v1152_v16  ;;  %v1120_v24 = vsel %vm472_vm0, %v768_v22, %v915_v15 }
 0x156   : > { %v1238_v19 = vcombine.low %v1152_v16, %v1212_v17  ;;  %v1043_v20 = vpop.permute.xlu1 %1042 }
 0x157   : > { %v917_v21 = vpop.permute.xlu0 %916  ;;  %v1153_v25 = vsel %vm1134_vm5, %v1120_v24, %v1043_v20  ;;  %v778_v24 = vld [vmem:[#allocation2 + $0xe0] sm:$0xff] }
 0x158   : > { %v1286_v23 = vpack.c.bf16 %v1238_v19, %v1237_v18  ;;  %v1213_v28 = vcombine.high %v1153_v25, %v1153_v25  ;;  %v1121_v31 = vsel %vm472_vm0, %v769_v29, %v917_v21  ;;  %v777_v29 = vld [vmem:[#allocation2 + $0xd8] sm:$0xf] }
 0x15a   : > { %v919_v26 = vpop.permute.xlu1 %918  ;;  %7181 = vmatmul.mubr.msk.bf16.gmra.mxu0 %vm1363_vm6, %v1286_v23  ;;  %v1239_v37 = vcombine.low %v1153_v25, %v1213_v28 }
 0x15b   : > { %v1045_v27 = vpop.permute.xlu0 %1044  ;;  %1525 = vmatprep.mubr.bf16.mxu0 %v10052_v59  ;;  %v1122_v32 = vsel %vm472_vm0, %v770_v30, %v919_v26 }
 0x15c   : > { %v1154_v35 = vsel %vm1134_vm5, %v1121_v31, %v1045_v27  ;;  %v779_v31 = vld [vmem:[#allocation2 + $0xe8] sm:$0xff] }
 0x15e   : > { %v1047_v33 = vpop.permute.xlu1 %1046 }
 0x15f   : > { %v921_v34 = vpop.permute.xlu0 %920  ;;  %v1155_v36 = vsel %vm1134_vm5, %v1122_v32, %v1047_v33 }
 0x160   : > { %v1240_v38 = vcombine.low %v1154_v35, %v1155_v36  ;;  %v1123_v41 = vsel %vm472_vm0, %v771_v39, %v921_v34  ;;  %v1214_v46 = vcombine.high %v1155_v36, %v1155_v36 }
 0x162   : > { %v1287_v40 = vpack.c.bf16 %v1240_v38, %v1239_v37  ;;  %v1049_v42 = vpop.permute.xlu1 %1048 }
 0x163   : > { %v923_v43 = vpop.permute.xlu0 %922  ;;  %v1156_v44 = vsel %vm1134_vm5, %v1123_v41, %v1049_v42 }
 0x164   : > { %7182 = vmatmul.mubr.msk.bf16.gmra.mxu0 %vm1363_vm6, %v1287_v40  ;;  %v1215_v47 = vcombine.high %v1156_v44, %v1156_v44  ;;  %v1124_v48 = vsel %vm472_vm0, %v772_v45, %v923_v43  ;;  %v1241_v52 = vcombine.low %v1214_v46, %v1156_v44  ;;  %v780_v40 = vld [vmem:[#allocation2 + $0xf0] sm:$0xff]  ;;  %v781_v46 = vld [vmem:[#allocation2 + $0xf8] sm:$0xf] }
 0x165   : > { %1535 = vmatprep.mubr.bf16.mxu0 %v10052_v59 }
 0x166   : > { %v1051_v49 = vpop.permute.xlu1 %1050 }
 0x167   : > { %v927_v50 = vpop.permute.xlu0 %926  ;;  %v1157_v51 = vsel %vm1134_vm5, %v1124_v48, %v1051_v49 }
 0x168   : > { %v1242_v53 = vcombine.low %v1215_v47, %v1157_v51  ;;  %v1126_v56 = vsel %vm472_vm0, %v774_v54, %v927_v50  ;;  %v1216_v63 = vcombine.high %v1157_v51, %v1157_v51 }
 0x16a   : > { %v1288_v55 = vpack.c.bf16 %v1242_v53, %v1241_v52  ;;  %v1055_v57 = vpop.permute.xlu1 %1054 }
 0x16b   : > { %v925_v58 = vpop.permute.xlu0 %924  ;;  %v1159_v60 = vsel %vm1134_vm5, %v1126_v56, %v1055_v57 }
 0x16c   : > { %v1217_v61 = vcombine.high %v1159_v60, %v1159_v60  ;;  %7183 = vmatmul.mubr.msk.bf16.gmra.mxu0 %vm1363_vm6, %v1288_v55  ;;  %v1125_v0 = vsel %vm472_vm0, %v773_v62, %v925_v58  ;;  %v1588_v55 = vlaneseq  ;;  %v1586_v58 = vld [vmem:[%s10079_s2] sm:$0x3] }
 0x16d   : > { %1545 = vmatprep.mubr.bf16.mxu0 %v10052_v59 }
 0x16e   : > { %v1053_v1 = vpop.permute.xlu1 %1052  ;;  %v1244_v4 = vcombine.low %v1159_v60, %v1217_v61  ;;  %v8173_v56 = vshrl.u32 %v1588_v55, 7  ;;  %v1654_v61 = vld [vmem:[%s10039_s3] sm:$0x3] }
 0x16f   : > { %v929_v2 = vpop.permute.xlu0 %928  ;;  %v1158_v3 = vsel %vm1134_vm5, %v1125_v0, %v1053_v1 }
 0x170   : > { %v1243_v5 = vcombine.low %v1216_v63, %v1158_v3  ;;  %v1127_v8 = vsel %vm472_vm0, %v775_v6, %v929_v2  ;;  %v8176_v57 = vsub.s32 0, %v8173_v56  ;;  %v8182_v60 = vsub.s32 1, %v8173_v56  ;;  %v8190_v63 = vld [vmem:[#allocation3] sm:$0xff] }
 0x171   : > { %524 = vst.msk [vmem:[#allocation4 + $0x8] sm:$0xff] %vm523_vm7, %v8190_v63  ;;  %529 = vst.msk [vmem:[#allocation4 + $0x28] sm:$0xff] %vm523_vm7, %v8190_v63 }
 0x172   : > { %v1289_v7 = vpack.c.bf16 %v1244_v4, %v1243_v5  ;;  %v931_v9 = vpop.permute.xlu1 %930  ;;  %v8188_v62 = vrot.slane %v1586_v58, %v8176_v57  ;;  %533 = vst.msk [vmem:[#allocation4 + $0x48] sm:$0xff] %vm523_vm7, %v8190_v63  ;;  %537 = vst.msk [vmem:[#allocation4 + $0x68] sm:$0xff] %vm523_vm7, %v8190_v63  ;;  %v8209_v0 = vrot.slane %v1654_v61, %v8176_v57 }
 0x173   : > { %v1057_v10 = vpop.permute.xlu0 %1056  ;;  %v1128_v13 = vsel %vm472_vm0, %v776_v12, %v931_v9  ;;  %541 = vst.msk [vmem:[#allocation4 + $0x88] sm:$0xff] %vm523_vm7, %v8190_v63  ;;  %545 = vst.msk [vmem:[#allocation4 + $0xa8] sm:$0xff] %vm523_vm7, %v8190_v63  ;;  %v8212_v1 = vrot.slane %v1586_v58, %v8182_v60  ;;  %v8216_v4 = vrot.slane %v1654_v61, %v8182_v60 }
 0x174   : > { %v1160_v11 = vsel %vm1134_vm5, %v1127_v8, %v1057_v10  ;;  %7184 = vmatmul.mubr.msk.bf16.gmra.mxu0 %vm1363_vm6, %v1289_v7  ;;  %549 = vst.msk [vmem:[#allocation4 + $0xc8] sm:$0xff] %vm523_vm7, %v8190_v63  ;;  %553 = vst.msk [vmem:[#allocation4 + $0xe8] sm:$0xff] %vm523_vm7, %v8190_v63 }
 0x175   : > { %1555 = vmatprep.mubr.bf16.mxu0 %v10052_v59  ;;  %v1218_v14 = vcombine.high %v1160_v11, %v1160_v11 }
 0x176   : > { %v1059_v15 = vpop.permute.xlu1 %1058 }
 0x177   : > { %v935_v16 = vpop.permute.xlu0 %934  ;;  %v1161_v17 = vsel %vm1134_vm5, %v1128_v13, %v1059_v15  ;;  %v1245_v19 = vcombine.low %v1160_v11, %v1218_v14 }
 0x178   : > { %v1219_v18 = vcombine.high %v1161_v17, %v1161_v17  ;;  %v1130_v25 = vsel %vm472_vm0, %v778_v24, %v935_v16 }
 0x17a   : > { %v1246_v20 = vcombine.low %v1161_v17, %v1219_v18  ;;  %v1063_v21 = vpop.permute.xlu1 %1062 }
 0x17b   : > { %v933_v22 = vpop.permute.xlu0 %932  ;;  %v1163_v28 = vsel %vm1134_vm5, %v1130_v25, %v1063_v21 }
 0x17c   : > { %v1290_v23 = vpack.c.bf16 %v1246_v20, %v1245_v19  ;;  %v1129_v30 = vsel %vm472_vm0, %v777_v29, %v933_v22  ;;  %v1220_v33 = vcombine.high %v1163_v28, %v1163_v28 }
 0x17e   : > { %v937_v26 = vpop.permute.xlu1 %936  ;;  %7185 = vmatmul.mubr.msk.bf16.gmra.mxu0 %vm1363_vm6, %v1290_v23 }
 0x17f   : > { %v1061_v27 = vpop.permute.xlu0 %1060  ;;  %1565 = vmatprep.mubr.bf16.mxu0 %v10052_v59  ;;  %v1131_v34 = vsel %vm472_vm0, %v779_v31, %v937_v26 }
 0x180   : > { %v1162_v32 = vsel %vm1134_vm5, %v1129_v30, %v1061_v27 }
 0x181   : > { %v1247_v38 = vcombine.low %v1162_v32, %v1163_v28 }
 0x182   : > { %v1065_v35 = vpop.permute.xlu1 %1064 }
 0x183   : > { %v939_v36 = vpop.permute.xlu0 %938  ;;  %v1164_v37 = vsel %vm1134_vm5, %v1131_v34, %v1065_v35 }
 0x184   : > { %v1248_v39 = vcombine.low %v1220_v33, %v1164_v37  ;;  %v1132_v42 = vsel %vm472_vm0, %v780_v40, %v939_v36  ;;  %v1221_v47 = vcombine.high %v1164_v37, %v1164_v37 }
 0x186   : > { %v1291_v41 = vpack.c.bf16 %v1248_v39, %v1247_v38  ;;  %v1067_v43 = vpop.permute.xlu1 %1066 }
 0x187   : > { %v1165_v44 = vsel %vm1134_vm5, %v1132_v42, %v1067_v43  ;;  %v941_v45 = vpop.permute.xlu0 %940 }
 0x188   : > { %7186 = vmatmul.mubr.msk.bf16.gmra.mxu0 %vm1363_vm6, %v1291_v41  ;;  %v1222_v48 = vcombine.high %v1165_v44, %v1165_v44  ;;  %v1133_v49 = vsel %vm472_vm0, %v781_v46, %v941_v45  ;;  %v1249_v52 = vcombine.low %v1221_v47, %v1165_v44  ;;  %vm6813_vm0 = vcmask 588800  }
 0x189   : > { %1575 = vmatprep.mubr.bf16.mxu0 %v10052_v59 }
 0x18a   : > { %v1069_v50 = vpop.permute.xlu1 %1068 }
 0x18b   : > { %v1166_v51 = vsel %vm1134_vm5, %v1133_v49, %v1069_v50 }
 0x18c   : > { %v1250_v53 = vcombine.low %v1222_v48, %v1166_v51 }
 0x18e   : > { %v1292_v54 = vpack.c.bf16 %v1250_v53, %v1249_v52 }
 0x190   : > { %7187 = vmatmul.mubr.msk.bf16.gmra.mxu0 %vm1363_vm6, %v1292_v54 }
 0x1db   : > { %v1447_v2 = vpop.f32.mrf.mxu0 }
 0x1dc   : > { %v1598_v3 = vmul.f32 %v8188_v62, %v1447_v2 }
 0x1dd   : > { %v1449_v5 = vpop.f32.mrf.mxu0 }
 0x1de   : > { %v8219_v6 = vadd.f32 %v8209_v0, %v1598_v3  ;;  %v1599_v7 = vmul.f32 %v8212_v1, %v1449_v5 }
 0x1df   : > { %v1451_v8 = vpop.f32.mrf.mxu0 }
 0x1e0   : > { %v1722_v9 = vmax.f32 %v8219_v6, 0.0  ;;  %v1667_v10 = vadd.f32 %v8216_v4, %v1599_v7  ;;  %v1600_v11 = vmul.f32 %v8188_v62, %v1451_v8 }
 0x1e1   : > { %v1453_v12 = vpop.f32.mrf.mxu0 }
 0x1e2   : > { %v1723_v13 = vmax.f32 %v1667_v10, 0.0  ;;  %v8226_v14 = vadd.f32 %v8209_v0, %v1600_v11  ;;  %v1601_v15 = vmul.f32 %v8212_v1, %v1453_v12  ;;  %1834 = vrot.lane.b32.xlu0 %v1722_v9, %s10067_s27 }
 0x1e4   : > { %v1724_v16 = vmax.f32 %v8226_v14, 0.0  ;;  %v1669_v17 = vadd.f32 %v8216_v4, %v1601_v15  ;;  %1836 = vrot.lane.b32.xlu1 %v1723_v13, %s10067_s27  ;;  %v1457_v18 = vpop.f32.mrf.mxu0  ;;  %v7471_v14 = vld [vmem:[%s10040_s4 + $0x20] ss:$8 sps:$4 sm:$0xff]  }
 0x1e5   : > { %v1602_v20 = vmul.f32 %v8188_v62, %v1457_v18 }
 0x1e6   : > { %v1725_v19 = vmax.f32 %v1669_v17, 0.0  ;;  %1838 = vrot.lane.b32.xlu0 %v1724_v16, %s10067_s27  ;;  %v1459_v21 = vpop.f32.mrf.mxu0 }
 0x1e7   : > { %v8240_v22 = vadd.f32 %v8209_v0, %v1602_v20  ;;  %v1603_v23 = vmul.f32 %v8212_v1, %v1459_v21 }
 0x1e8   : > { %1840 = vrot.lane.b32.xlu1 %v1725_v19, %s10067_s27  ;;  %v1461_v24 = vpop.f32.mrf.mxu0 }
 0x1e9   : > { %v1726_v25 = vmax.f32 %v8240_v22, 0.0  ;;  %v1671_v26 = vadd.f32 %v8216_v4, %v1603_v23  ;;  %v1604_v27 = vmul.f32 %v8188_v62, %v1461_v24 }
 0x1ea   : > { %v1463_v28 = vpop.f32.mrf.mxu0 }
 0x1eb   : > { %v1727_v29 = vmax.f32 %v1671_v26, 0.0  ;;  %v8248_v30 = vadd.f32 %v8209_v0, %v1604_v27  ;;  %v1605_v31 = vmul.f32 %v8212_v1, %v1463_v28  ;;  %1842 = vrot.lane.b32.xlu0 %v1726_v25, %s10067_s27 }
 0x1ec   : > { %v1467_v32 = vpop.f32.mrf.mxu0 }
 0x1ed   : > { %v1728_v33 = vmax.f32 %v8248_v30, 0.0  ;;  %v1673_v34 = vadd.f32 %v8216_v4, %v1605_v31  ;;  %v1606_v35 = vmul.f32 %v8188_v62, %v1467_v32  ;;  %1844 = vrot.lane.b32.xlu1 %v1727_v29, %s10067_s27  ;;  %v7478_v30 = vld [vmem:[%s10040_s4 + $0xf4] ss:$8 sps:$4 sm:$0xff]  }
 0x1ee   : > { %v1469_v36 = vpop.f32.mrf.mxu0 }
 0x1ef   : > { %v1729_v37 = vmax.f32 %v1673_v34, 0.0  ;;  %v8259_v38 = vadd.f32 %v8209_v0, %v1606_v35  ;;  %v1607_v39 = vmul.f32 %v8212_v1, %v1469_v36  ;;  %1846 = vrot.lane.b32.xlu0 %v1728_v33, %s10067_s27 }
 0x1f0   : > { %v1471_v40 = vpop.f32.mrf.mxu0 }
 0x1f1   : > { %v1730_v41 = vmax.f32 %v8259_v38, 0.0  ;;  %v1675_v42 = vadd.f32 %v8216_v4, %v1607_v39  ;;  %v1608_v43 = vmul.f32 %v8188_v62, %v1471_v40  ;;  %1848 = vrot.lane.b32.xlu1 %v1729_v37, %s10067_s27 }
 0x1f2   : > { %v1473_v44 = vpop.f32.mrf.mxu0 }
 0x1f3   : > { %v1731_v45 = vmax.f32 %v1675_v42, 0.0  ;;  %v8270_v46 = vadd.f32 %v8209_v0, %v1608_v43  ;;  %v1609_v47 = vmul.f32 %v8212_v1, %v1473_v44  ;;  %1850 = vrot.lane.b32.xlu0 %v1730_v41, %s10067_s27 }
 0x1f4   : > { %v1477_v48 = vpop.f32.mrf.mxu0 }
 0x1f5   : > { %v1732_v49 = vmax.f32 %v8270_v46, 0.0  ;;  %v1677_v50 = vadd.f32 %v8216_v4, %v1609_v47  ;;  %v1610_v51 = vmul.f32 %v8188_v62, %v1477_v48  ;;  %1852 = vrot.lane.b32.xlu1 %v1731_v45, %s10067_s27  ;;  %v7483_v46 = vld [vmem:[%s10040_s4 + $0xe0] ss:$8 sps:$4 sm:$0xff]  }
 0x1f6   : > { %v1479_v52 = vpop.f32.mrf.mxu0 }
 0x1f7   : > { %v1733_v53 = vmax.f32 %v1677_v50, 0.0  ;;  %v8281_v54 = vadd.f32 %v8209_v0, %v1610_v51  ;;  %v1611_v55 = vmul.f32 %v8212_v1, %v1479_v52  ;;  %1854 = vrot.lane.b32.xlu0 %v1732_v49, %s10067_s27 }
 0x1f8   : > { %v1481_v58 = vpop.f32.mrf.mxu0 }
 0x1f9   : > { %v1734_v61 = vmax.f32 %v8281_v54, 0.0  ;;  %v1679_v2 = vadd.f32 %v8216_v4, %v1611_v55  ;;  %v1612_v3 = vmul.f32 %v8188_v62, %v1481_v58  ;;  %1856 = vrot.lane.b32.xlu1 %v1733_v53, %s10067_s27 }
 0x1fa   : > { %v1483_v5 = vpop.f32.mrf.mxu0 }
 0x1fb   : > { %v1735_v7 = vmax.f32 %v1679_v2, 0.0  ;;  %v8292_v8 = vadd.f32 %v8209_v0, %v1612_v3  ;;  %v1613_v10 = vmul.f32 %v8212_v1, %v1483_v5  ;;  %1858 = vrot.lane.b32.xlu0 %v1734_v61, %s10067_s27 }
 0x1fd   : > { %v1736_v11 = vmax.f32 %v8292_v8, 0.0  ;;  %v1681_v12 = vadd.f32 %v8216_v4, %v1613_v10  ;;  %1860 = vrot.lane.b32.xlu1 %v1735_v7, %s10067_s27  ;;  %v7489_v8 = vld [vmem:[%s10040_s4 + $0xc0] ss:$8 sps:$4 sm:$0xff]  }
 0x1fe   : > { %v1487_v13 = vpop.f32.mrf.mxu0 }
 0x1ff   : > { %v1737_v15 = vmax.f32 %v1681_v12, 0.0  ;;  %v1614_v17 = vmul.f32 %v8188_v62, %v1487_v13  ;;  %1862 = vrot.lane.b32.xlu0 %v1736_v11, %s10067_s27 }
 0x200   : > { %v1489_v18 = vpop.f32.mrf.mxu0 }
 0x201   : > { %v8306_v19 = vadd.f32 %v8209_v0, %v1614_v17  ;;  %v1615_v20 = vmul.f32 %v8212_v1, %v1489_v18  ;;  %1864 = vrot.lane.b32.xlu1 %v1737_v15, %s10067_s27 }
 0x202   : > { %v1491_v21 = vpop.f32.mrf.mxu0 }
 0x203   : > { %v1738_v23 = vmax.f32 %v8306_v19, 0.0  ;;  %v1683_v24 = vadd.f32 %v8216_v4, %v1615_v20  ;;  %v1616_v26 = vmul.f32 %v8188_v62, %v1491_v21 }
 0x204   : > { %v1493_v27 = vpop.f32.mrf.mxu0 }
 0x205   : > { %v1739_v28 = vmax.f32 %v1683_v24, 0.0  ;;  %v8314_v29 = vadd.f32 %v8209_v0, %v1616_v26  ;;  %v1617_v31 = vmul.f32 %v8212_v1, %v1493_v27  ;;  %1866 = vrot.lane.b32.xlu0 %v1738_v23, %s10067_s27 }
 0x207   : > { %v1740_v32 = vmax.f32 %v8314_v29, 0.0  ;;  %v1685_v34 = vadd.f32 %v8216_v4, %v1617_v31  ;;  %1868 = vrot.lane.b32.xlu1 %v1739_v28, %s10067_s27  ;;  %v7497_v29 = vld [vmem:[%s10040_s4 + $0x90] ss:$8 sps:$4 sm:$0xff]  }
 0x208   : > { %v1497_v35 = vpop.f32.mrf.mxu0 }
 0x209   : > { %v1741_v36 = vmax.f32 %v1685_v34, 0.0  ;;  %v1618_v37 = vmul.f32 %v8188_v62, %v1497_v35  ;;  %1870 = vrot.lane.b32.xlu0 %v1740_v32, %s10067_s27 }
 0x20a   : > { %v1499_v39 = vpop.f32.mrf.mxu0 }
 0x20b   : > { %v8328_v40 = vadd.f32 %v8209_v0, %v1618_v37  ;;  %v1619_v42 = vmul.f32 %v8212_v1, %v1499_v39  ;;  %1872 = vrot.lane.b32.xlu1 %v1741_v36, %s10067_s27 }
 0x20c   : > { %v1501_v43 = vpop.f32.mrf.mxu0 }
 0x20d   : > { %v1742_v44 = vmax.f32 %v8328_v40, 0.0  ;;  %v1687_v45 = vadd.f32 %v8216_v4, %v1619_v42  ;;  %v1620_v47 = vmul.f32 %v8188_v62, %v1501_v43 }
 0x20e   : > { %v1503_v48 = vpop.f32.mrf.mxu0 }
 0x20f   : > { %v1743_v50 = vmax.f32 %v1687_v45, 0.0  ;;  %v8336_v51 = vadd.f32 %v8209_v0, %v1620_v47  ;;  %v1621_v52 = vmul.f32 %v8212_v1, %v1503_v48  ;;  %1874 = vrot.lane.b32.xlu0 %v1742_v44, %s10067_s27 }
 0x210   : > { %v1507_v53 = vpop.f32.mrf.mxu0 }
 0x211   : > { %v1744_v55 = vmax.f32 %v8336_v51, 0.0  ;;  %v1689_v58 = vadd.f32 %v8216_v4, %v1621_v52  ;;  %v1622_v2 = vmul.f32 %v8188_v62, %v1507_v53  ;;  %1876 = vrot.lane.b32.xlu1 %v1743_v50, %s10067_s27 }
 0x212   : > { %v1509_v3 = vpop.f32.mrf.mxu0 }
 0x213   : > { %v1745_v5 = vmax.f32 %v1689_v58, 0.0  ;;  %v8347_v7 = vadd.f32 %v8209_v0, %v1622_v2  ;;  %v1623_v10 = vmul.f32 %v8212_v1, %v1509_v3  ;;  %1878 = vrot.lane.b32.xlu0 %v1744_v55, %s10067_s27 }
 0x214   : > { %v1511_v12 = vpop.f32.mrf.mxu0 }
 0x215   : > { %v1746_v13 = vmax.f32 %v8347_v7, 0.0  ;;  %v1691_v15 = vadd.f32 %v8216_v4, %v1623_v10  ;;  %v1624_v17 = vmul.f32 %v8188_v62, %v1511_v12  ;;  %1880 = vrot.lane.b32.xlu1 %v1745_v5, %s10067_s27 }
 0x216   : > { %v1513_v18 = vpop.f32.mrf.mxu0 }
 0x217   : > { %v1747_v20 = vmax.f32 %v1691_v15, 0.0  ;;  %v8358_v21 = vadd.f32 %v8209_v0, %v1624_v17  ;;  %v1625_v24 = vmul.f32 %v8212_v1, %v1513_v18  ;;  %1882 = vrot.lane.b32.xlu0 %v1746_v13, %s10067_s27 }
 0x219   : > { %v1748_v26 = vmax.f32 %v8358_v21, 0.0  ;;  %v1693_v27 = vadd.f32 %v8216_v4, %v1625_v24  ;;  %1884 = vrot.lane.b32.xlu1 %v1747_v20, %s10067_s27 }
 0x21a   : > { %v1517_v28 = vpop.f32.mrf.mxu0 }
 0x21b   : > { %v1749_v31 = vmax.f32 %v1693_v27, 0.0  ;;  %v1626_v34 = vmul.f32 %v8188_v62, %v1517_v28  ;;  %1886 = vrot.lane.b32.xlu0 %v1748_v26, %s10067_s27 }
 0x21c   : > { %v1519_v35 = vpop.f32.mrf.mxu0 }
 0x21d   : > { %v8372_v36 = vadd.f32 %v8209_v0, %v1626_v34  ;;  %v1627_v37 = vmul.f32 %v8212_v1, %v1519_v35  ;;  %1888 = vrot.lane.b32.xlu1 %v1749_v31, %s10067_s27 }
 0x21e   : > { %v1521_v39 = vpop.f32.mrf.mxu0 }
 0x21f   : > { %v1750_v42 = vmax.f32 %v8372_v36, 0.0  ;;  %v1695_v43 = vadd.f32 %v8216_v4, %v1627_v37  ;;  %v1628_v45 = vmul.f32 %v8188_v62, %v1521_v39 }
 0x220   : > { %v1523_v47 = vpop.f32.mrf.mxu0 }
 0x221   : > { %v1751_v48 = vmax.f32 %v1695_v43, 0.0  ;;  %v8380_v50 = vadd.f32 %v8209_v0, %v1628_v45  ;;  %v1629_v52 = vmul.f32 %v8212_v1, %v1523_v47  ;;  %1890 = vrot.lane.b32.xlu0 %v1750_v42, %s10067_s27 }
 0x223   : > { %v10064_v53 = vmax.f32 %v8380_v50, 0.0  ;;  %v1697_v58 = vadd.f32 %v8216_v4, %v1629_v52  ;;  %1892 = vrot.lane.b32.xlu1 %v1751_v48, %s10067_s27 }
 0x224   : > { %v1527_v2 = vpop.f32.mrf.mxu0 }
 0x225   : > { %v1753_v3 = vmax.f32 %v1697_v58, 0.0  ;;  %v1630_v5 = vmul.f32 %v8188_v62, %v1527_v2  ;;  %1894 = vrot.lane.b32.xlu0 %v10064_v53, %s10067_s27  ;;  %v7465_v53 = vld [vmem:[%s10040_s4 + $0x40] ss:$8 sps:$4 sm:$0xff]  }
 0x226   : > { %v1529_v10 = vpop.f32.mrf.mxu0 }
 0x227   : > { %v8394_v12 = vadd.f32 %v8209_v0, %v1630_v5  ;;  %v1631_v15 = vmul.f32 %v8212_v1, %v1529_v10  ;;  %1896 = vrot.lane.b32.xlu1 %v1753_v3, %s10067_s27 }
 0x228   : > { %v1531_v17 = vpop.f32.mrf.mxu0 }
 0x229   : > { %v10062_v18 = vmax.f32 %v8394_v12, 0.0  ;;  %v1699_v20 = vadd.f32 %v8216_v4, %v1631_v15  ;;  %v1632_v24 = vmul.f32 %v8188_v62, %v1531_v17 }
 0x22a   : > { %v1533_v27 = vpop.f32.mrf.mxu0 }
 0x22b   : > { %v1755_v28 = vmax.f32 %v1699_v20, 0.0  ;;  %v8402_v31 = vadd.f32 %v8209_v0, %v1632_v24  ;;  %v1633_v34 = vmul.f32 %v8212_v1, %v1533_v27  ;;  %1898 = vrot.lane.b32.xlu0 %v10062_v18, %s10067_s27 }
 0x22c   : > { %v1537_v35 = vpop.f32.mrf.mxu0 }
 0x22d   : > { %v10061_v37 = vmax.f32 %v8402_v31, 0.0  ;;  %v1701_v39 = vadd.f32 %v8216_v4, %v1633_v34  ;;  %v1634_v43 = vmul.f32 %v8188_v62, %v1537_v35  ;;  %1900 = vrot.lane.b32.xlu1 %v1755_v28, %s10067_s27 }
 0x22e   : > { %v1539_v45 = vpop.f32.mrf.mxu0 }
 0x22f   : > { %v1757_v47 = vmax.f32 %v1701_v39, 0.0  ;;  %v8413_v48 = vadd.f32 %v8209_v0, %v1634_v43  ;;  %v1635_v52 = vmul.f32 %v8212_v1, %v1539_v45  ;;  %1902 = vrot.lane.b32.xlu0 %v10061_v37, %s10067_s27 }
 0x230   : > { %v1541_v58 = vpop.f32.mrf.mxu0 }
 0x231   : > { %v10059_v2 = vmax.f32 %v8413_v48, 0.0  ;;  %v1703_v3 = vadd.f32 %v8216_v4, %v1635_v52  ;;  %v1636_v5 = vmul.f32 %v8188_v62, %v1541_v58  ;;  %1904 = vrot.lane.b32.xlu1 %v1757_v47, %s10067_s27 }
 0x232   : > { %v1543_v10 = vpop.f32.mrf.mxu0 }
 0x233   : > { %v1759_v15 = vmax.f32 %v1703_v3, 0.0  ;;  %v8424_v17 = vadd.f32 %v8209_v0, %v1636_v5  ;;  %v1637_v20 = vmul.f32 %v8212_v1, %v1543_v10  ;;  %1906 = vrot.lane.b32.xlu0 %v10059_v2, %s10067_s27 }
 0x234   : > { %v1547_v24 = vpop.f32.mrf.mxu0 }
 0x235   : > { %v10058_v27 = vmax.f32 %v8424_v17, 0.0  ;;  %v1705_v28 = vadd.f32 %v8216_v4, %v1637_v20  ;;  %v1638_v34 = vmul.f32 %v8188_v62, %v1547_v24  ;;  %1908 = vrot.lane.b32.xlu1 %v1759_v15, %s10067_s27 }
 0x236   : > { %v1549_v35 = vpop.f32.mrf.mxu0 }
 0x237   : > { %v1761_v39 = vmax.f32 %v1705_v28, 0.0  ;;  %v8435_v43 = vadd.f32 %v8209_v0, %v1638_v34  ;;  %v1639_v45 = vmul.f32 %v8212_v1, %v1549_v35  ;;  %1910 = vrot.lane.b32.xlu0 %v10058_v27, %s10067_s27 }
 0x238   : > { %v1551_v47 = vpop.f32.mrf.mxu0 }
 0x239   : > { %v10057_v52 = vmax.f32 %v8435_v43, 0.0  ;;  %v1707_v58 = vadd.f32 %v8216_v4, %v1639_v45  ;;  %v1640_v3 = vmul.f32 %v8188_v62, %v1551_v47  ;;  %1912 = vrot.lane.b32.xlu1 %v1761_v39, %s10067_s27 }
 0x23a   : > { %v1553_v5 = vpop.f32.mrf.mxu0 }
 0x23b   : > { %v1763_v10 = vmax.f32 %v1707_v58, 0.0  ;;  %v8446_v15 = vadd.f32 %v8209_v0, %v1640_v3  ;;  %v1641_v20 = vmul.f32 %v8212_v1, %v1553_v5  ;;  %1914 = vrot.lane.b32.xlu0 %v10057_v52, %s10067_s27 }
 0x23d   : > { %v10054_v24 = vmax.f32 %v8446_v15, 0.0  ;;  %v1709_v28 = vadd.f32 %v8216_v4, %v1641_v20  ;;  %1916 = vrot.lane.b32.xlu1 %v1763_v10, %s10067_s27 }
 0x23e   : > { %v1557_v34 = vpop.f32.mrf.mxu0 }
 0x23f   : > { %v1765_v35 = vmax.f32 %v1709_v28, 0.0  ;;  %v1642_v39 = vmul.f32 %v8188_v62, %v1557_v34  ;;  %1918 = vrot.lane.b32.xlu0 %v10054_v24, %s10067_s27 }
 0x240   : > { %v1559_v45 = vpop.f32.mrf.mxu0 }
 0x241   : > { %v8460_v47 = vadd.f32 %v8209_v0, %v1642_v39  ;;  %v1643_v58 = vmul.f32 %v8212_v1, %v1559_v45  ;;  %1920 = vrot.lane.b32.xlu1 %v1765_v35, %s10067_s27 }
 0x242   : > { %v1561_v3 = vpop.f32.mrf.mxu0 }
 0x243   : > { %v10056_v5 = vmax.f32 %v8460_v47, 0.0  ;;  %v1711_v10 = vadd.f32 %v8216_v4, %v1643_v58  ;;  %v1644_v20 = vmul.f32 %v8188_v62, %v1561_v3 }
 0x244   : > { %v1563_v28 = vpop.f32.mrf.mxu0 }
 0x245   : > { %v1767_v34 = vmax.f32 %v1711_v10, 0.0  ;;  %v8468_v59 = vadd.f32 %v8209_v0, %v1644_v20  ;;  %v1645_v24 = vmul.f32 %v8212_v1, %v1563_v28  ;;  %1922 = vrot.lane.b32.xlu0 %v10056_v5, %s10067_s27 }
 0x247   : > { %v10055_v35 = vmax.f32 %v8468_v59, 0.0  ;;  %v1713_v39 = vadd.f32 %v8216_v4, %v1645_v24  ;;  %1924 = vrot.lane.b32.xlu1 %v1767_v34, %s10067_s27  ;;  %v3925_v24 = vld [vmem:[%s10040_s4 + $0x70] sm:$0xff]  ;;  %v3926_v34 = vld [vmem:[%s10040_s4 + $0x78] sm:$0xff] }
 0x248   : > { %v1567_v45 = vpop.f32.mrf.mxu0 }
 0x249   : > { %v1769_v58 = vmax.f32 %v1713_v39, 0.0  ;;  %v1646_v3 = vmul.f32 %v8188_v62, %v1567_v45  ;;  %1926 = vrot.lane.b32.xlu0 %v10055_v35, %s10067_s27  ;;  %v7456_v39 = vld [vmem:[%s10040_s4 + $0x74] ss:$8 sps:$4 sm:$0xff]   ;;  %v7234_v35 = vcombine.low %v3925_v24, %v3926_v34  ;;  %v3923_v24 = vld [vmem:[%s10040_s4 + $0x60] sm:$0xff] }
 0x24a   : > { %v1569_v10 = vpop.f32.mrf.mxu0  ;;  %4199 = vmatprep.subr.bf16.mxu1 %v7456_v39 }
 0x24b   : > { %v8482_v20 = vadd.f32 %v8209_v0, %v1646_v3  ;;  %v1647_v28 = vmul.f32 %v8212_v1, %v1569_v10  ;;  %1928 = vrot.lane.b32.xlu1 %v1769_v58, %s10067_s27  ;;  %4200 = vmatpush1.bf16.msra.mxu1 %v7234_v35  ;;  %v7458_v35 = vld [vmem:[%s10040_s4 + $0x64] ss:$8 sps:$4 sm:$0xff]  }
 0x24c   : > { %v1571_v45 = vpop.f32.mrf.mxu0  ;;  %4201 = vmatprep.subr.bf16.mxu1 %v7458_v35 }
 0x24d   : > { %v10060_v3 = vmax.f32 %v8482_v20, 0.0  ;;  %v1715_v10 = vadd.f32 %v8216_v4, %v1647_v28  ;;  %v1648_v58 = vmul.f32 %v8188_v62, %v1571_v45  ;;  %v3924_v28 = vld [vmem:[%s10040_s4 + $0x68] sm:$0xff] }
 0x24e   : > { %v1573_v5 = vpop.f32.mrf.mxu0  ;;  %v7232_v39 = vcombine.low %v3923_v24, %v3924_v28 }
 0x24f   : > { %v1771_v52 = vmax.f32 %v1715_v10, 0.0  ;;  %v8499_v27 = vadd.f32 %v8209_v0, %v1648_v58  ;;  %v1649_v2 = vmul.f32 %v8212_v1, %v1573_v5  ;;  %1930 = vrot.lane.b32.xlu0 %v10060_v3, %s10067_s27 }
 0x250   : > { %v1577_v34 = vpop.f32.mrf.mxu0  ;;  %4202 = vmatpush1.bf16.msra.mxu1 %v7232_v39 }
 0x251   : > { %v10063_v5 = vmax.f32 %v8499_v27, 0.0  ;;  %v1717_v45 = vadd.f32 %v8216_v4, %v1649_v2  ;;  %v1650_v10 = vmul.f32 %v8188_v62, %v1577_v34  ;;  %1932 = vrot.lane.b32.xlu1 %v1771_v52, %s10067_s27  ;;  %v7460_v2 = vld [vmem:[%s10040_s4 + $0x54] ss:$8 sps:$4 sm:$0xff]   ;;  %v7462_v52 = vld [vmem:[%s10040_s4 + $0x50] ss:$8 sps:$4 sm:$0xff]  }
 0x252   : > { %v1579_v58 = vpop.f32.mrf.mxu0  ;;  %4203 = vmatprep.subr.bf16.mxu1 %v7460_v2 }
 0x253   : > { %v1773_v3 = vmax.f32 %v1717_v45, 0.0  ;;  %v8519_v37 = vadd.f32 %v8209_v0, %v1650_v10  ;;  %v1651_v18 = vmul.f32 %v8212_v1, %v1579_v58  ;;  %1934 = vrot.lane.b32.xlu0 %v10063_v5, %s10067_s27  ;;  %v7463_v10 = vld [vmem:[%s10040_s4 + $0x44] ss:$8 sps:$4 sm:$0xff]  }
 0x254   : > { %v1835_v24 = vpop.permute.xlu0 %1834  ;;  %v1581_v28 = vpop.f32.mrf.mxu0  ;;  %4204 = vmatpush1.bf16.msra.mxu1 %v7462_v52 }
 0x255   : > { %v1774_v35 = vmax.f32 %v8519_v37, 0.0  ;;  %v1719_v34 = vadd.f32 %v8216_v4, %v1651_v18  ;;  %v1652_v39 = vmul.f32 %v8188_v62, %v1581_v28  ;;  %1936 = vrot.lane.b32.xlu1 %v1773_v3, %s10067_s27  ;;  %4205 = vmatprep.subr.bf16.mxu1 %v7463_v10 }
 0x256   : > { %v1837_v45 = vpop.permute.xlu1 %1836  ;;  %v1583_v5 = vpop.f32.mrf.mxu0 }
 0x257   : > { %v1946_v58 = vsel %vm523_vm7, %v1835_v24, %v1837_v45  ;;  %v1775_v18 = vmax.f32 %v1719_v34, 0.0  ;;  %v8543_v62 = vadd.f32 %v8209_v0, %v1652_v39  ;;  %v1653_v2 = vmul.f32 %v8212_v1, %v1583_v5  ;;  %1938 = vrot.lane.b32.xlu0 %v1774_v35, %s10067_s27  ;;  %v7466_v24 = vld [vmem:[%s10040_s4 + $0x34] ss:$8 sps:$4 sm:$0xff]   ;;  %v7469_v45 = vld [vmem:[%s10040_s4 + $0x24] ss:$8 sps:$4 sm:$0xff]  }
 0x258   : > { %v2002_v3 = vmax.f32 %v1722_v9, %v1946_v58  ;;  %v1839_v28 = vpop.permute.xlu0 %1838  ;;  %4206 = vmatpush1.bf16.msra.mxu1 %v7465_v53  ;;  %v7703_v9 = vmov 1983009808   ;;  %v7472_v58 = vld [vmem:[%s10040_s4 + $0x14] ss:$8 sps:$4 sm:$0xff]  }
 0x259   : > { %v1776_v52 = vmax.f32 %v8543_v62, 0.0  ;;  %v1721_v0 = vadd.f32 %v8216_v4, %v1653_v2  ;;  %1940 = vrot.lane.b32.xlu1 %v1775_v18, %s10067_s27  ;;  %v2144_v5 = vunpack.c.l.s4 %v7703_v9  ;;  %4207 = vmatprep.subr.bf16.mxu1 %v7466_v24  ;;  %v7468_v4 = vld [vmem:[%s10040_s4 + $0x30] ss:$8 sps:$4 sm:$0xff]  }
 0x25a   : > { %2031 = vst.msk [vmem:[#allocation5] sm:$0xff] %vm2030_vm8, %v2002_v3  ;;  %v1841_v6 = vpop.permute.xlu1 %1840  ;;  %v7474_v24 = vld [vmem:[%s10040_s4 + $0x10] ss:$8 sps:$4 sm:$0xff]  }
 0x25b   : > { %v1947_v1 = vsel %vm523_vm7, %v1839_v28, %v1841_v6  ;;  %v1777_v34 = vmax.f32 %v1721_v0, 0.0  ;;  %1942 = vrot.lane.b32.xlu0 %v1776_v52, %s10067_s27 }
 0x25c   : > { %v2003_v39 = vmax.f32 %v1724_v16, %v1947_v1  ;;  %4208 = vmatpush1.bf16.msra.mxu1 %v7468_v4  ;;  %v2145_v16 = vunpack.c.0.s8 %v2144_v5 }
 0x25d   : > { %1944 = vrot.lane.b32.xlu1 %v1777_v34, %s10067_s27  ;;  %v1843_v53 = vpop.permute.xlu0 %1842  ;;  %4209 = vmatprep.subr.bf16.mxu1 %v7469_v45  ;;  %v7475_v34 = vld [vmem:[%s10040_s4 + $0x4] ss:$8 sps:$4 sm:$0xff]  }
 0x25e   : > { %2032 = vst.msk [vmem:[#allocation5 + $0x8] sm:$0xff] %vm2030_vm8, %v2003_v39  ;;  %v8585_v0 = vsub.s32 %v2145_v16, %v8173_v56 }
 0x25f   : > { %v1845_v10 = vpop.permute.xlu1 %1844 }
 0x260   : > { %v1948_v18 = vsel %vm523_vm7, %v1843_v53, %v1845_v10  ;;  %4210 = vmatpush1.bf16.msra.mxu1 %v7471_v14  ;;  %v7477_v53 = vld [vmem:[%s10040_s4] ss:$8 sps:$4 sm:$0xff]  }
 0x261   : > { %v2004_v3 = vmax.f32 %v1726_v25, %v1948_v18  ;;  %v1847_v2 = vpop.permute.xlu0 %1846  ;;  %4211 = vmatprep.subr.bf16.mxu1 %v7472_v58  ;;  %v7480_v18 = vld [vmem:[%s10040_s4 + $0xf0] ss:$8 sps:$4 sm:$0xff]  }
 0x263   : > { %2033 = vst.msk [vmem:[#allocation5 + $0x10] sm:$0xff] %vm2030_vm8, %v2004_v3  ;;  %v1849_v28 = vpop.permute.xlu1 %1848 }
 0x264   : > { %v1949_v6 = vsel %vm523_vm7, %v1847_v2, %v1849_v28  ;;  %4212 = vmatpush1.bf16.msra.mxu1 %v7474_v24 }
 0x265   : > { %v2059_v1 = vld [vmem:[#allocation5] ss:$2 sm:$0xff]  ;;  %v2087_v9 = vld [vmem:[#allocation5 + $0x1] ss:$2 sm:$0xff]  ;;  %v2005_v22 = vmax.f32 %v1728_v33, %v1949_v6  ;;  %v1851_v25 = vpop.permute.xlu0 %1850  ;;  %4213 = vmatprep.subr.bf16.mxu1 %v7475_v34 }
 0x266   : > { %v2114_v5 = vmax.f32 %v2059_v1, %v2087_v9 }
 0x267   : > { %2034 = vst.msk [vmem:[#allocation5 + $0x18] sm:$0xff] %vm2030_vm8, %v2005_v22  ;;  %v1853_v39 = vpop.permute.xlu1 %1852  ;;  %v7481_v22 = vld [vmem:[%s10040_s4 + $0xe4] ss:$8 sps:$4 sm:$0xff]  }
 0x268   : > { %v2142_v4 = vcombine.high %v2114_v5, %v2114_v5  ;;  %v2149_v45 = vrot.slane %v2114_v5, %v8585_v0  ;;  %v1950_v33 = vsel %vm523_vm7, %v1851_v25, %v1853_v39  ;;  %4214 = vmatpush1.bf16.msra.mxu1 %v7477_v53 }
 0x269   : > { %v2006_v14 = vmax.f32 %v1730_v41, %v1950_v33  ;;  %v1855_v16 = vpop.permute.xlu0 %1854  ;;  %4215 = vmatprep.subr.bf16.mxu1 %v7478_v30 }
 0x26a   : > { %v2156_v10 = vrot.slane %v2142_v4, %v8585_v0  ;;  %v2157_v58 = vcombine.high %v2149_v45, %v2149_v45 }
 0x26b   : > { %2035 = vst.msk [vmem:[#allocation5 + $0x20] sm:$0xff] %vm2030_vm8, %v2006_v14  ;;  %v1857_v3 = vpop.permute.xlu1 %1856  ;;  %v7486_v14 = vld [vmem:[%s10040_s4 + $0xd0] ss:$8 sps:$4 sm:$0xff]  }
 0x26c   : > { %v2158_v2 = vcombine.high %v2156_v10, %v2156_v10  ;;  %v2380_v24 = vcombine.low %v2149_v45, %v2157_v58  ;;  %v1951_v28 = vsel %vm523_vm7, %v1855_v16, %v1857_v3  ;;  %4216 = vmatpush2.bf16.msra.mxu1 %v7480_v18 }
 0x26d   : > { %v2007_v38 = vmax.f32 %v1732_v49, %v1951_v28  ;;  %v1859_v41 = vpop.permute.xlu0 %1858  ;;  %v7484_v49 = vld [vmem:[%s10040_s4 + $0xd4] ss:$8 sps:$4 sm:$0xff]   ;;  %4217 = vmatprep.subr.bf16.mxu1 %v7481_v22  ;;  %v7487_v28 = vld [vmem:[%s10040_s4 + $0xc4] ss:$8 sps:$4 sm:$0xff]  }
 0x26e   : > { %v2381_v6 = vcombine.low %v2156_v10, %v2158_v2  ;;  %v2061_v1 = vld [vmem:[#allocation5 + $0x10] ss:$2 sm:$0xff]  ;;  %v2089_v9 = vld [vmem:[#allocation5 + $0x11] ss:$2 sm:$0xff]  ;;  %v2388_v5 = vrot.slane %v2380_v24, %v8585_v0 }
 0x26f   : > { %2036 = vst.msk [vmem:[#allocation5 + $0x28] sm:$0xff] %vm2030_vm8, %v2007_v38  ;;  %v1861_v25 = vpop.permute.xlu1 %1860  ;;  %v2115_v39 = vmax.f32 %v2061_v1, %v2089_v9 }
 0x270   : > { %v2395_v34 = vrot.slane %v2381_v6, %v8585_v0  ;;  %v1952_v4 = vsel %vm523_vm7, %v1859_v41, %v1861_v25  ;;  %4218 = vmatpush2.bf16.msra.mxu1 %v7483_v46  ;;  %v3934_v46 = vld [vmem:[%s10040_s4 + $0xb8] sm:$0xff] }
 0x271   : > { %v2008_v45 = vmax.f32 %v1734_v61, %v1952_v4  ;;  %v2159_v30 = vcombine.high %v2115_v39, %v2115_v39  ;;  %v2166_v33 = vrot.slane %v2115_v39, %v8585_v0  ;;  %v1863_v16 = vpop.permute.xlu0 %1862  ;;  %4219 = vmatprep.subr.bf16.mxu1 %v7484_v49  ;;  %v3933_v39 = vld [vmem:[%s10040_s4 + $0xb0] sm:$0xff] }
 0x272   : > { %v2396_v53 = vcombine.low %v2388_v5, %v2395_v34 }
 0x273   : > { %2037 = vst.msk [vmem:[#allocation5 + $0x30] sm:$0xff] %vm2030_vm8, %v2008_v45  ;;  %v1865_v10 = vpop.permute.xlu1 %1864  ;;  %v2173_v58 = vrot.slane %v2159_v30, %v8585_v0  ;;  %v2174_v54 = vcombine.high %v2166_v33, %v2166_v33 }
 0x274   : > { %2644 = vrot.lane.b32.xlu0 %v2396_v53, %s7704_s15  ;;  %v1953_v61 = vsel %vm523_vm7, %v1863_v16, %v1865_v10  ;;  %4220 = vmatpush2.bf16.msra.mxu1 %v7486_v14  ;;  %v7492_v14 = vld [vmem:[%s10040_s4 + $0xa4] ss:$8 sps:$4 sm:$0xff]  }
 0x275   : > { %v2009_v18 = vmax.f32 %v1736_v11, %v1953_v61  ;;  %v2397_v3 = vcombine.low %v2166_v33, %v2174_v54  ;;  %v2411_v6 = vrot.slane %v2173_v58, %v8585_v0  ;;  %4221 = vmatprep.subr.bf16.mxu1 %v7487_v28  ;;  %v7490_v11 = vld [vmem:[%s10040_s4 + $0xb4] ss:$8 sps:$4 sm:$0xff]   ;;  %v2175_v25 = vcombine.high %v2173_v58, %v2173_v58  ;;  %v7494_v61 = vld [vmem:[%s10040_s4 + $0xa0] ss:$8 sps:$4 sm:$0xff]  }
 0x276   : > { %v2063_v2 = vld [vmem:[#allocation5 + $0x20] ss:$2 sm:$0xff]  ;;  %v2091_v24 = vld [vmem:[#allocation5 + $0x21] ss:$2 sm:$0xff]  ;;  %v7242_v33 = vcombine.low %v3933_v39, %v3934_v46  ;;  %v7495_v28 = vld [vmem:[%s10040_s4 + $0x94] ss:$8 sps:$4 sm:$0xff]  }
 0x277   : > { %2038 = vst.msk [vmem:[#allocation5 + $0x38] sm:$0xff] %vm2030_vm8, %v2009_v18  ;;  %v1867_v38 = vpop.permute.xlu0 %1866  ;;  %v2404_v41 = vrot.slane %v2397_v3, %v8585_v0  ;;  %v2116_v1 = vmax.f32 %v2063_v2, %v2091_v24 }
 0x278   : > { %4222 = vmatpush2.bf16.msra.mxu1 %v7489_v8 }
 0x279   : > { %v1869_v9 = vpop.permute.xlu1 %1868  ;;  %v2412_v22 = vcombine.low %v2404_v41, %v2411_v6  ;;  %v2176_v5 = vcombine.high %v2116_v1, %v2116_v1  ;;  %v2183_v34 = vrot.slane %v2116_v1, %v8585_v0  ;;  %4223 = vmatprep.subr.bf16.mxu1 %v7490_v11 }
 0x27a   : > { %v1954_v49 = vsel %vm523_vm7, %v1867_v38, %v1869_v9 }
 0x27b   : > { %v2010_v4 = vmax.f32 %v1738_v23, %v1954_v49  ;;  %2646 = vrot.lane.b32.xlu1 %v2412_v22, %s7704_s15  ;;  %v2190_v45 = vrot.slane %v2176_v5, %v8585_v0  ;;  %v2191_v53 = vcombine.high %v2183_v34, %v2183_v34  ;;  %v2413_v30 = vcombine.low %v2175_v25, %v2183_v34  ;;  %v1871_v16 = vpop.permute.xlu0 %1870  ;;  %v7498_v22 = vld [vmem:[%s10040_s4 + $0x84] ss:$8 sps:$4 sm:$0xff]  }
 0x27c   : > { %4224 = vmatpush2.bf16.msra.mxu1 %v7242_v33 }
 0x27d   : > { %2039 = vst.msk [vmem:[#allocation5 + $0x40] sm:$0xff] %vm2030_vm8, %v2010_v4  ;;  %v1873_v10 = vpop.permute.xlu1 %1872  ;;  %v2414_v58 = vcombine.low %v2191_v53, %v2190_v45  ;;  %v2421_v3 = vrot.slane %v2413_v30, %v8585_v0  ;;  %4225 = vmatprep.subr.bf16.mxu1 %v7492_v14  ;;  %v2192_v6 = vcombine.high %v2190_v45, %v2190_v45  ;;  %v3927_v4 = vld [vmem:[%s10040_s4 + $0x80] sm:$0xff]  ;;  %v3928_v45 = vld [vmem:[%s10040_s4 + $0x88] sm:$0xff] }
 0x27e   : > { %v1955_v19 = vsel %vm523_vm7, %v1871_v16, %v1873_v10  ;;  %v2065_v23 = vld [vmem:[#allocation5 + $0x30] ss:$2 sm:$0xff]  ;;  %v2093_v54 = vld [vmem:[#allocation5 + $0x31] ss:$2 sm:$0xff]  ;;  %v7236_v14 = vcombine.low %v3927_v4, %v3928_v45 }
 0x27f   : > { %v2011_v18 = vmax.f32 %v1740_v32, %v1955_v19  ;;  %v2428_v2 = vrot.slane %v2414_v58, %v8585_v0  ;;  %v2117_v24 = vmax.f32 %v2065_v23, %v2093_v54 }
 0x280   : > { %4226 = vmatpush2.bf16.msra.mxu1 %v7494_v61 }
 0x281   : > { %2040 = vst.msk [vmem:[#allocation5 + $0x48] sm:$0xff] %vm2030_vm8, %v2011_v18  ;;  %v1875_v38 = vpop.permute.xlu0 %1874  ;;  %v2429_v41 = vcombine.low %v2421_v3, %v2428_v2  ;;  %v2200_v1 = vrot.slane %v2117_v24, %v8585_v0  ;;  %v2193_v8 = vcombine.high %v2117_v24, %v2117_v24  ;;  %4227 = vmatprep.subr.bf16.mxu1 %v7495_v28 }
 0x283   : > { %v1877_v32 = vpop.permute.xlu1 %1876  ;;  %2648 = vrot.lane.b32.xlu0 %v2429_v41, %s7704_s15  ;;  %v2208_v11 = vcombine.high %v2200_v1, %v2200_v1  ;;  %v2430_v9 = vcombine.low %v2192_v6, %v2200_v1  ;;  %v2207_v49 = vrot.slane %v2193_v8, %v8585_v0 }
 0x284   : > { %v1956_v25 = vsel %vm523_vm7, %v1875_v38, %v1877_v32  ;;  %4228 = vmatpush2.bf16.msra.mxu1 %v7497_v29 }
 0x285   : > { %v2012_v5 = vmax.f32 %v1742_v44, %v1956_v25  ;;  %v1879_v34 = vpop.permute.xlu0 %1878  ;;  %v2437_v39 = vrot.slane %v2430_v9, %v8585_v0  ;;  %v2444_v46 = vrot.slane %v2208_v11, %v8585_v0  ;;  %4229 = vmatprep.subr.bf16.mxu1 %v7498_v22  ;;  %v2209_v19 = vcombine.high %v2207_v49, %v2207_v49 }
 0x287   : > { %2041 = vst.msk [vmem:[#allocation5 + $0x50] sm:$0xff] %vm2030_vm8, %v2012_v5  ;;  %v1881_v40 = vpop.permute.xlu1 %1880  ;;  %v2445_v44 = vcombine.low %v2437_v39, %v2444_v46  ;;  %v2446_v51 = vcombine.low %v2207_v49, %v2209_v19 }
 0x288   : > { %v1957_v53 = vsel %vm523_vm7, %v1879_v34, %v1881_v40  ;;  %v2067_v30 = vld [vmem:[#allocation5 + $0x40] ss:$2 sm:$0xff]  ;;  %v2095_v33 = vld [vmem:[#allocation5 + $0x41] ss:$2 sm:$0xff]  ;;  %4230 = vmatpush2.bf16.msra.mxu1 %v7236_v14  ;;  %v10080_v14 = vmax.f32 %v8380_v50, 0.0 }
 0x289   : > { %v2013_v16 = vmax.f32 %v1744_v55, %v1957_v53  ;;  %2650 = vrot.lane.b32.xlu1 %v2445_v44, %s7704_s15  ;;  %v1883_v10 = vpop.permute.xlu0 %1882  ;;  %v2118_v58 = vmax.f32 %v2067_v30, %v2095_v33  ;;  %v2454_v8 = vrot.slane %v2446_v51, %v8585_v0  ;;  %v10081_v51 = vmax.f32 %v8394_v12, 0.0 }
 0x28a   : > { %v10082_v12 = vmax.f32 %v8402_v31, 0.0 }
 0x28b   : > { %2042 = vst.msk [vmem:[#allocation5 + $0x58] sm:$0xff] %vm2030_vm8, %v2013_v16  ;;  %v1885_v23 = vpop.permute.xlu1 %1884  ;;  %v2217_v54 = vrot.slane %v2118_v58, %v8585_v0  ;;  %v2210_v61 = vcombine.high %v2118_v58, %v2118_v58 }
 0x28c   : > { %v1958_v18 = vsel %vm523_vm7, %v1883_v10, %v1885_v23 }
 0x28d   : > { %v2014_v3 = vmax.f32 %v1746_v13, %v1958_v18  ;;  %v2225_v2 = vcombine.high %v2217_v54, %v2217_v54  ;;  %v2224_v55 = vrot.slane %v2210_v61, %v8585_v0  ;;  %v1887_v24 = vpop.permute.xlu0 %1886 }
 0x28f   : > { %2043 = vst.msk [vmem:[#allocation5 + $0x60] sm:$0xff] %vm2030_vm8, %v2014_v3  ;;  %v1889_v28 = vpop.permute.xlu1 %1888  ;;  %v2447_v38 = vcombine.low %v2217_v54, %v2225_v2  ;;  %v2226_v41 = vcombine.high %v2224_v55, %v2224_v55 }
 0x290   : > { %v1959_v6 = vsel %vm523_vm7, %v1887_v24, %v1889_v28 }
 0x291   : > { %v2015_v1 = vmax.f32 %v1748_v26, %v1959_v6  ;;  %v2461_v7 = vrot.slane %v2447_v38, %v8585_v0  ;;  %v2463_v22 = vcombine.low %v2224_v55, %v2226_v41 }
 0x292   : > { %v2069_v13 = vld [vmem:[#allocation5 + $0x50] ss:$2 sm:$0xff]  ;;  %v2097_v29 = vld [vmem:[#allocation5 + $0x51] ss:$2 sm:$0xff] }
 0x293   : > { %2044 = vst.msk [vmem:[#allocation5 + $0x68] sm:$0xff] %vm2030_vm8, %v2015_v1  ;;  %v1891_v32 = vpop.permute.xlu0 %1890  ;;  %v2462_v11 = vcombine.low %v2454_v8, %v2461_v7  ;;  %v2119_v9 = vmax.f32 %v2069_v13, %v2097_v29  ;;  %v2470_v39 = vrot.slane %v2463_v22, %v8585_v0 }
 0x295   : > { %v1893_v25 = vpop.permute.xlu1 %1892  ;;  %2652 = vrot.lane.b32.xlu0 %v2462_v11, %s7704_s15  ;;  %v2234_v5 = vrot.slane %v2119_v9, %v8585_v0  ;;  %v2227_v34 = vcombine.high %v2119_v9, %v2119_v9 }
 0x296   : > { %v1960_v21 = vsel %vm523_vm7, %v1891_v32, %v1893_v25 }
 0x297   : > { %v2016_v26 = vmax.f32 %v1750_v42, %v1960_v21  ;;  %v2477_v46 = vrot.slane %v2234_v5, %v8585_v0  ;;  %v2241_v49 = vrot.slane %v2227_v34, %v8585_v0  ;;  %v2242_v4 = vcombine.high %v2234_v5, %v2234_v5  ;;  %v1895_v45 = vpop.permute.xlu0 %1894 }
 0x299   : > { %2045 = vst.msk [vmem:[#allocation5 + $0x70] sm:$0xff] %vm2030_vm8, %v2016_v26  ;;  %v1897_v40 = vpop.permute.xlu1 %1896  ;;  %v2478_v44 = vcombine.low %v2470_v39, %v2477_v46  ;;  %v2479_v16 = vcombine.low %v2242_v4, %v2241_v49  ;;  %v2243_v58 = vcombine.high %v2241_v49, %v2241_v49  ;;  %v10083_v39 = vmax.f32 %v8413_v48, 0.0 }
 0x29a   : > { %v1961_v53 = vsel %vm523_vm7, %v1895_v45, %v1897_v40  ;;  %v2071_v30 = vld [vmem:[#allocation5 + $0x60] ss:$2 sm:$0xff]  ;;  %v2099_v33 = vld [vmem:[#allocation5 + $0x61] ss:$2 sm:$0xff] }
 0x29b   : > { %v2017_v36 = vmax.f32 %v10080_v14, %v1961_v53  ;;  %2654 = vrot.lane.b32.xlu0 %v2478_v44, %s7704_s15  ;;  %v2120_v42 = vmax.f32 %v2071_v30, %v2099_v33  ;;  %v2487_v50 = vrot.slane %v2479_v16, %v8585_v0  ;;  %v10084_v30 = vmax.f32 %v8424_v17, 0.0 }
 0x29d   : > { %2046 = vst.msk [vmem:[#allocation5 + $0x78] sm:$0xff] %vm2030_vm8, %v2017_v36  ;;  %v1899_v10 = vpop.permute.xlu0 %1898  ;;  %v2251_v19 = vrot.slane %v2120_v42, %v8585_v0  ;;  %v2244_v23 = vcombine.high %v2120_v42, %v2120_v42 }
 0x29f   : > { %v1901_v54 = vpop.permute.xlu1 %1900  ;;  %v2480_v61 = vcombine.low %v2243_v58, %v2251_v19  ;;  %v2258_v18 = vrot.slane %v2244_v23, %v8585_v0  ;;  %v2259_v3 = vcombine.high %v2251_v19, %v2251_v19 }
 0x2a0   : > { %v1962_v2 = vsel %vm523_vm7, %v1899_v10, %v1901_v54  ;;  %v10085_v54 = vmax.f32 %v8435_v43, 0.0 }
 0x2a1   : > { %v2018_v55 = vmax.f32 %v10081_v51, %v1962_v2  ;;  %v1903_v24 = vpop.permute.xlu0 %1902  ;;  %v2494_v28 = vrot.slane %v2480_v61, %v8585_v0  ;;  %v2260_v38 = vcombine.high %v2258_v18, %v2258_v18  ;;  %v2496_v41 = vcombine.low %v2259_v3, %v2258_v18 }
 0x2a3   : > { %2047 = vst.msk [vmem:[#allocation5 + $0x80] sm:$0xff] %vm2030_vm8, %v2018_v55  ;;  %v1905_v6 = vpop.permute.xlu1 %1904  ;;  %v2495_v1 = vcombine.low %v2487_v50, %v2494_v28  ;;  %v2503_v8 = vrot.slane %v2496_v41, %v8585_v0  ;;  %v2510_v7 = vrot.slane %v2260_v38, %v8585_v0  ;;  %v10086_v55 = vmax.f32 %v8446_v15, 0.0 }
 0x2a4   : > { %v1963_v13 = vsel %vm523_vm7, %v1903_v24, %v1905_v6  ;;  %v2073_v29 = vld [vmem:[#allocation5 + $0x70] ss:$2 sm:$0xff]  ;;  %v2101_v32 = vld [vmem:[#allocation5 + $0x71] ss:$2 sm:$0xff] }
 0x2a5   : > { %v2019_v11 = vmax.f32 %v10082_v12, %v1963_v13  ;;  %2656 = vrot.lane.b32.xlu1 %v2495_v1, %s7704_s15  ;;  %v1907_v9 = vpop.permute.xlu0 %1906  ;;  %v2121_v22 = vmax.f32 %v2073_v29, %v2101_v32  ;;  %v2511_v5 = vcombine.low %v2503_v8, %v2510_v7  ;;  %v10087_v12 = vmax.f32 %v8460_v47, 0.0 }
 0x2a6   : > { %v10088_v47 = vmax.f32 %v8468_v59, 0.0 }
 0x2a7   : > { %2048 = vst.msk [vmem:[#allocation5 + $0x88] sm:$0xff] %vm2030_vm8, %v2019_v11  ;;  %v1909_v25 = vpop.permute.xlu1 %1908  ;;  %v2261_v34 = vcombine.high %v2121_v22, %v2121_v22  ;;  %v2268_v21 = vrot.slane %v2121_v22, %v8585_v0 }
 0x2a8   : > { %v1964_v26 = vsel %vm523_vm7, %v1907_v9, %v1909_v25 }
 0x2a9   : > { %v2020_v46 = vmax.f32 %v10083_v39, %v1964_v26  ;;  %2658 = vrot.lane.b32.xlu1 %v2511_v5, %s7704_s15  ;;  %v1911_v31 = vpop.permute.xlu0 %1910  ;;  %v2275_v49 = vrot.slane %v2261_v34, %v8585_v0  ;;  %v2276_v4 = vcombine.high %v2268_v21, %v2268_v21  ;;  %v7503_v5 = vld [vmem:[%s10040_s4 + $0x174] ss:$8 sps:$4 sm:$0xff]  }
 0x2aa   : > { %4302 = vmatprep.subr.bf16.mxu1 %v7503_v5 }
 0x2ab   : > { %2049 = vst.msk [vmem:[#allocation5 + $0x90] sm:$0xff] %vm2030_vm8, %v2020_v46  ;;  %v1913_v45 = vpop.permute.xlu1 %1912  ;;  %v2277_v40 = vcombine.high %v2275_v49, %v2275_v49  ;;  %v2512_v44 = vcombine.low %v2268_v21, %v2276_v4 }
 0x2ac   : > { %v1965_v53 = vsel %vm523_vm7, %v1911_v31, %v1913_v45 }
 0x2ad   : > { %v2021_v33 = vmax.f32 %v10084_v30, %v1965_v53  ;;  %v1915_v14 = vpop.permute.xlu0 %1914  ;;  %v2513_v36 = vcombine.low %v2275_v49, %v2277_v40  ;;  %v2520_v10 = vrot.slane %v2512_v44, %v8585_v0 }
 0x2ae   : > { %v2075_v48 = vld [vmem:[#allocation5 + $0x80] ss:$2 sm:$0xff]  ;;  %v2103_v42 = vld [vmem:[#allocation5 + $0x81] ss:$2 sm:$0xff] }
 0x2af   : > { %2050 = vst.msk [vmem:[#allocation5 + $0x98] sm:$0xff] %vm2030_vm8, %v2021_v33  ;;  %v1917_v16 = vpop.permute.xlu1 %1916  ;;  %v2527_v58 = vrot.slane %v2513_v36, %v8585_v0  ;;  %v2122_v19 = vmax.f32 %v2075_v48, %v2103_v42 }
 0x2b0   : > { %v1966_v23 = vsel %vm523_vm7, %v1915_v14, %v1917_v16 }
 0x2b1   : > { %v2022_v61 = vmax.f32 %v10085_v54, %v1966_v23  ;;  %v2528_v18 = vcombine.low %v2520_v10, %v2527_v58  ;;  %v2278_v17 = vcombine.high %v2122_v19, %v2122_v19  ;;  %v1919_v3 = vpop.permute.xlu0 %1918  ;;  %v2285_v51 = vrot.slane %v2122_v19, %v8585_v0 }
 0x2b2   : > { %v10089_v19 = vmax.f32 %v8482_v20, 0.0  ;;  %v10090_v20 = vmax.f32 %v8499_v27, 0.0 }
 0x2b3   : > { %2051 = vst.msk [vmem:[#allocation5 + $0xa0] sm:$0xff] %vm2030_vm8, %v2022_v61  ;;  %v1921_v2 = vpop.permute.xlu1 %1920  ;;  %2660 = vrot.lane.b32.xlu0 %v2528_v18, %s7704_s15  ;;  %v2292_v28 = vrot.slane %v2278_v17, %v8585_v0  ;;  %v2293_v1 = vcombine.high %v2285_v51, %v2285_v51 }
 0x2b4   : > { %v1967_v50 = vsel %vm523_vm7, %v1919_v3, %v1921_v2 }
 0x2b5   : > { %v2023_v24 = vmax.f32 %v10086_v55, %v1967_v50  ;;  %v2294_v7 = vcombine.high %v2292_v28, %v2292_v28  ;;  %v2529_v25 = vcombine.low %v2285_v51, %v2293_v1  ;;  %v2543_v48 = vrot.slane %v2292_v28, %v8585_v0 }
 0x2b6   : > { %v2077_v38 = vld [vmem:[#allocation5 + $0x90] ss:$2 sm:$0xff]  ;;  %v2105_v43 = vld [vmem:[#allocation5 + $0x91] ss:$2 sm:$0xff] }
 0x2b7   : > { %2052 = vst.msk [vmem:[#allocation5 + $0xa8] sm:$0xff] %vm2030_vm8, %v2023_v24  ;;  %v1923_v41 = vpop.permute.xlu0 %1922  ;;  %v2123_v6 = vmax.f32 %v2077_v38, %v2105_v43  ;;  %v2536_v44 = vrot.slane %v2529_v25, %v8585_v0 }
 0x2b9   : > { %v1925_v8 = vpop.permute.xlu1 %1924  ;;  %v2295_v13 = vcombine.high %v2123_v6, %v2123_v6  ;;  %v2302_v29 = vrot.slane %v2123_v6, %v8585_v0  ;;  %v2544_v58 = vcombine.low %v2536_v44, %v2543_v48 }
 0x2ba   : > { %v1968_v32 = vsel %vm523_vm7, %v1923_v41, %v1925_v8 }
 0x2bb   : > { %v2024_v15 = vmax.f32 %v10087_v12, %v1968_v32  ;;  %v2309_v11 = vrot.slane %v2295_v13, %v8585_v0  ;;  %v2310_v9 = vcombine.high %v2302_v29, %v2302_v29  ;;  %v2545_v22 = vcombine.low %v2294_v7, %v2302_v29  ;;  %v1927_v34 = vpop.permute.xlu0 %1926 }
 0x2bd   : > { %2053 = vst.msk [vmem:[#allocation5 + $0xb0] sm:$0xff] %vm2030_vm8, %v2024_v15  ;;  %v1929_v21 = vpop.permute.xlu1 %1928  ;;  %v2546_v26 = vcombine.low %v2310_v9, %v2309_v11  ;;  %v2553_v4 = vrot.slane %v2545_v22, %v8585_v0  ;;  %v2311_v33 = vcombine.high %v2309_v11, %v2309_v11 }
 0x2be   : > { %v1969_v39 = vsel %vm523_vm7, %v1927_v34, %v1929_v21  ;;  %v2079_v46 = vld [vmem:[#allocation5 + $0xa0] ss:$2 sm:$0xff]  ;;  %v2107_v31 = vld [vmem:[#allocation5 + $0xa1] ss:$2 sm:$0xff] }
 0x2bf   : > { %v2025_v49 = vmax.f32 %v10088_v47, %v1969_v39  ;;  %v2560_v45 = vrot.slane %v2546_v26, %v8585_v0  ;;  %v2124_v40 = vmax.f32 %v2079_v46, %v2107_v31 }
 0x2c1   : > { %2054 = vst.msk [vmem:[#allocation5 + $0xb8] sm:$0xff] %vm2030_vm8, %v2025_v49  ;;  %v1931_v53 = vpop.permute.xlu0 %1930  ;;  %v2561_v30 = vcombine.low %v2553_v4, %v2560_v45  ;;  %v2319_v14 = vrot.slane %v2124_v40, %v8585_v0  ;;  %v2312_v36 = vcombine.high %v2124_v40, %v2124_v40 }
 0x2c3   : > { %v1933_v42 = vpop.permute.xlu1 %1932  ;;  %2664 = vrot.lane.b32.xlu1 %v2561_v30, %s7704_s15  ;;  %v2327_v59 = vcombine.high %v2319_v14, %v2319_v14  ;;  %v2562_v16 = vcombine.low %v2311_v33, %v2319_v14  ;;  %v2326_v17 = vrot.slane %v2312_v36, %v8585_v0 }
 0x2c4   : > { %v1970_v10 = vsel %vm523_vm7, %v1931_v53, %v1933_v42 }
 0x2c5   : > { %v2026_v23 = vmax.f32 %v10089_v19, %v1970_v10  ;;  %v1935_v54 = vpop.permute.xlu0 %1934  ;;  %v2569_v61 = vrot.slane %v2562_v16, %v8585_v0  ;;  %v2576_v18 = vrot.slane %v2327_v59, %v8585_v0  ;;  %v2328_v43 = vcombine.high %v2326_v17, %v2326_v17 }
 0x2c7   : > { %2055 = vst.msk [vmem:[#allocation5 + $0xc0] sm:$0xff] %vm2030_vm8, %v2026_v23  ;;  %v1937_v3 = vpop.permute.xlu1 %1936  ;;  %2662 = vrot.lane.b32.xlu1 %v2544_v58, %s7704_s15  ;;  %v2577_v2 = vcombine.low %v2569_v61, %v2576_v18  ;;  %v2578_v29 = vcombine.low %v2326_v17, %v2328_v43 }
 0x2c8   : > { %v1971_v50 = vsel %vm523_vm7, %v1935_v54, %v1937_v3  ;;  %v2081_v51 = vld [vmem:[#allocation5 + $0xb0] ss:$2 sm:$0xff]  ;;  %v2109_v55 = vld [vmem:[#allocation5 + $0xb1] ss:$2 sm:$0xff] }
 0x2c9   : > { %v2027_v24 = vmax.f32 %v10090_v20, %v1971_v50  ;;  %2666 = vrot.lane.b32.xlu0 %v2577_v2, %s7704_s15  ;;  %v1939_v28 = vpop.permute.xlu0 %1938  ;;  %v2125_v38 = vmax.f32 %v2081_v51, %v2109_v55  ;;  %v2586_v25 = vrot.slane %v2578_v29, %v8585_v0 }
 0x2cb   : > { %2056 = vst.msk [vmem:[#allocation5 + $0xc8] sm:$0xff] %vm2030_vm8, %v2027_v24  ;;  %v1941_v41 = vpop.permute.xlu1 %1940  ;;  %v2336_v6 = vrot.slane %v2125_v38, %v8585_v0  ;;  %v2329_v1 = vcombine.high %v2125_v38, %v2125_v38 }
 0x2cc   : > { %v1972_v8 = vsel %vm523_vm7, %v1939_v28, %v1941_v41 }
 0x2cd   : > { %v2028_v7 = vmax.f32 %v1774_v35, %v1972_v8  ;;  %v2344_v13 = vcombine.high %v2336_v6, %v2336_v6  ;;  %v2343_v27 = vrot.slane %v2329_v1, %v8585_v0  ;;  %v1943_v32 = vpop.permute.xlu0 %1942 }
 0x2cf   : > { %2057 = vst.msk [vmem:[#allocation5 + $0xd0] sm:$0xff] %vm2030_vm8, %v2028_v7  ;;  %v1945_v12 = vpop.permute.xlu1 %1944  ;;  %v2579_v15 = vcombine.low %v2336_v6, %v2344_v13  ;;  %v2345_v11 = vcombine.high %v2343_v27, %v2343_v27 }
 0x2d0   : > { %v1973_v9 = vsel %vm523_vm7, %v1943_v32, %v1945_v12 }
 0x2d1   : > { %v2029_v22 = vmax.f32 %v1776_v52, %v1973_v9  ;;  %v2593_v37 = vrot.slane %v2579_v15, %v8585_v0  ;;  %v2595_v26 = vcombine.low %v2343_v27, %v2345_v11 }
 0x2d2   : > { %v2083_v35 = vld [vmem:[#allocation5 + $0xc0] ss:$2 sm:$0xff]  ;;  %v2111_v5 = vld [vmem:[#allocation5 + $0xc1] ss:$2 sm:$0xff] }
 0x2d3   : > { %2058 = vst.msk [vmem:[#allocation5 + $0xd8] sm:$0xff] %vm2030_vm8, %v2029_v22  ;;  %v2594_v34 = vcombine.low %v2586_v25, %v2593_v37  ;;  %v2126_v21 = vmax.f32 %v2083_v35, %v2111_v5  ;;  %v2602_v31 = vrot.slane %v2595_v26, %v8585_v0 }
 0x2d5   : > { %2668 = vrot.lane.b32.xlu0 %v2594_v34, %s7704_s15  ;;  %v2353_v39 = vrot.slane %v2126_v21, %v8585_v0  ;;  %v2346_v46 = vcombine.high %v2126_v21, %v2126_v21 }
 0x2d7   : > { %v2609_v62 = vrot.slane %v2353_v39, %v8585_v0  ;;  %v2360_v47 = vrot.slane %v2346_v46, %v8585_v0  ;;  %v2361_v49 = vcombine.high %v2353_v39, %v2353_v39 }
 0x2d9   : > { %v2610_v52 = vcombine.low %v2602_v31, %v2609_v62  ;;  %v2362_v44 = vcombine.high %v2360_v47, %v2360_v47  ;;  %v2611_v30 = vcombine.low %v2361_v49, %v2360_v47 }
 0x2da   : > { %v2085_v4 = vld [vmem:[#allocation5 + $0xd0] ss:$2 sm:$0xff]  ;;  %v2113_v45 = vld [vmem:[#allocation5 + $0xd1] ss:$2 sm:$0xff] }
 0x2db   : > { %2670 = vrot.lane.b32.xlu1 %v2610_v52, %s7704_s15  ;;  %v2127_v40 = vmax.f32 %v2085_v4, %v2113_v45  ;;  %v2619_v42 = vrot.slane %v2611_v30, %v8585_v0 }
 0x2dd   : > { %v2370_v53 = vrot.slane %v2127_v40, %v8585_v0  ;;  %v2363_v33 = vcombine.high %v2127_v40, %v2127_v40 }
 0x2df   : > { %v2612_v14 = vcombine.low %v2362_v44, %v2370_v53  ;;  %v2377_v36 = vrot.slane %v2363_v33, %v8585_v0  ;;  %v2378_v48 = vcombine.high %v2370_v53, %v2370_v53 }
 0x2e1   : > { %v2626_v59 = vrot.slane %v2612_v14, %v8585_v0  ;;  %v2379_v16 = vcombine.high %v2377_v36, %v2377_v36  ;;  %v2628_v10 = vcombine.low %v2378_v48, %v2377_v36  ;;  %v7501_v14 = vld [vmem:[%s10040_s4 + $0x170] ss:$8 sps:$4 sm:$0xff]   ;;  %v7506_v36 = vld [vmem:[%s10040_s4 + $0x164] ss:$8 sps:$4 sm:$0xff]  }
 0x2e3   : > { %v2627_v58 = vcombine.low %v2619_v42, %v2626_v59  ;;  %v2635_v19 = vrot.slane %v2628_v10, %v8585_v0  ;;  %v2642_v23 = vrot.slane %v2379_v16, %v8585_v0 }
 0x2e5   : > { %2672 = vrot.lane.b32.xlu0 %v2627_v58, %s7704_s15  ;;  %v2643_v61 = vcombine.low %v2635_v19, %v2642_v23 }
 0x2e6   : > { %v2645_v54 = vpop.permute.xlu0 %2644 }
 0x2e7   : > { %2693 = vst.msk [vmem:[#allocation3 + $0x1] sm:$0xff] %vm2692_vm9, %v2645_v54  ;;  %2674 = vrot.lane.b32.xlu1 %v2643_v61, %s7704_s15  ;;  %v7504_v54 = vld [vmem:[%s10040_s4 + $0x160] ss:$8 sps:$4 sm:$0xff]  }
 0x2ed   : > { %v2647_v18 = vpop.permute.xlu1 %2646 }
 0x2ee   : > { %2695 = vst.msk [vmem:[#allocation3 + $0x9] sm:$0x3f] %vm2694_vm10, %v2647_v18  ;;  %v2710_v3 = vld [vmem:[#allocation3] sm:$0xff] }
 0x2ef   : > { %v2726_v2 = vld [vmem:[#allocation3 + $0x1] sm:$0xff] }
 0x2f0   : > { %v2806_v55 = vcombine.low %v2710_v3, %v2726_v2  ;;  %v2807_v20 = vcombine.high %v2710_v3, %v2726_v2 }
 0x2f2   : > { %v2815_v6 = vrot.slane %v2806_v55, %v8585_v0  ;;  %v2822_v1 = vrot.slane %v2807_v20, %v8585_v0 }
 0x2f4   : > { %v3368_v27 = vrot.slane %v2815_v6, %v8585_v0  ;;  %v3382_v32 = vrot.slane %v2822_v1, %v8585_v0 }
 0x2f5   : > { %v2649_v17 = vpop.permute.xlu0 %2648  ;;  %v2711_v50 = vld [vmem:[#allocation3 + $0x8] sm:$0x3f] }
 0x2f6   : > { %2696 = vst.msk [vmem:[#allocation3 + $0x11] sm:$0xff] %vm2692_vm9, %v2649_v17  ;;  %v2727_v51 = vld [vmem:[#allocation3 + $0x9] sm:$0x3f]  ;;  %v3391_v21 = vcombine.high %v3368_v27, %v3382_v32  ;;  %v3390_v26 = vcombine.low %v3368_v27, %v3382_v32  ;;  %v7509_v17 = vld [vmem:[%s10040_s4 + $0x154] ss:$8 sps:$4 sm:$0xff]  }
 0x2f7   : > { %v2841_v28 = vcombine.low %v2711_v50, %v2727_v51  ;;  %v2842_v38 = vcombine.high %v2711_v50, %v2727_v51  ;;  %v7516_v27 = vld [vmem:[%s10040_s4 + $0x134] ss:$8 sps:$4 sm:$0xff]  }
 0x2f9   : > { %v2850_v7 = vrot.slane %v2841_v28, %v8585_v0  ;;  %v2857_v13 = vrot.slane %v2842_v38, %v8585_v0 }
 0x2fb   : > { %v2651_v24 = vpop.permute.xlu1 %2650  ;;  %v3403_v37 = vrot.slane %v2850_v7, %v8585_v0 }
 0x2fc   : > { %2697 = vst.msk [vmem:[#allocation3 + $0x19] sm:$0x3f] %vm2694_vm10, %v2651_v24 }
 0x2fd   : > { %v2712_v43 = vld [vmem:[#allocation3 + $0x10] sm:$0xff] }
 0x2fe   : > { %v2728_v41 = vld [vmem:[#allocation3 + $0x11] sm:$0xff] }
 0x2ff   : > { %v2875_v8 = vcombine.low %v2712_v43, %v2728_v41  ;;  %v2876_v12 = vcombine.high %v2712_v43, %v2728_v41  ;;  %v7507_v43 = vld [vmem:[%s10040_s4 + $0x150] ss:$8 sps:$4 sm:$0xff]   ;;  %v7513_v41 = vld [vmem:[%s10040_s4 + $0x144] ss:$8 sps:$4 sm:$0xff]  }
 0x301   : > { %v2884_v29 = vrot.slane %v2875_v8, %v8585_v0  ;;  %v2891_v31 = vrot.slane %v2876_v12, %v8585_v0 }
 0x303   : > { %v7188_v15 = vcombine.low %v2857_v13, %v2884_v29  ;;  %v2744_v11 = vld [vmem:[#allocation3 + $0x12] sm:$0xff]  ;;  %v2745_v5 = vld [vmem:[#allocation3 + $0x1a] sm:$0x3f] }
 0x304   : > { %v2713_v9 = vld [vmem:[#allocation3 + $0x18] sm:$0x3f]  ;;  %v2877_v25 = vcombine.high %v2744_v11, %v2744_v11  ;;  %v2912_v46 = vcombine.high %v2745_v5, %v2745_v5  ;;  %v2933_v40 = vrot.slane %v2745_v5, %v8585_v0  ;;  %v8848_v53 = vrot.slane %v2744_v11, %v8585_v0 }
 0x305   : > { %v2729_v22 = vld [vmem:[#allocation3 + $0x19] sm:$0x3f]  ;;  %v3417_v35 = vrot.slane %v7188_v15, %v8585_v0 }
 0x306   : > { %v2910_v34 = vcombine.low %v2713_v9, %v2729_v22  ;;  %v2911_v39 = vcombine.high %v2713_v9, %v2729_v22  ;;  %v2905_v47 = vrot.slane %v2877_v25, %v8585_v0  ;;  %v2940_v44 = vrot.slane %v2912_v46, %v8585_v0  ;;  %v7514_v5 = vld [vmem:[%s10040_s4 + $0x130] ss:$8 sps:$4 sm:$0xff]  }
 0x307   : > { %v3426_v62 = vcombine.high %v3403_v37, %v3417_v35  ;;  %v3425_v52 = vcombine.low %v3403_v37, %v3417_v35  ;;  %v2653_v49 = vpop.permute.xlu0 %2652  ;;  %v2907_v19 = vcombine.high %v2884_v29, %v8848_v53  ;;  %v7511_v29 = vld [vmem:[%s10040_s4 + $0x140] ss:$8 sps:$4 sm:$0xff]  }
 0x308   : > { %v2919_v4 = vrot.slane %v2910_v34, %v8585_v0  ;;  %v2926_v45 = vrot.slane %v2911_v39, %v8585_v0  ;;  %2698 = vst.msk [vmem:[#allocation3 + $0x21] sm:$0xff] %vm2692_vm9, %v2653_v49  ;;  %v2908_v48 = vcombine.low %v2891_v31, %v2905_v47  ;;  %v2909_v59 = vcombine.high %v2891_v31, %v2905_v47  ;;  %v7519_v34 = vld [vmem:[%s10040_s4 + $0x124] ss:$8 sps:$4 sm:$0xff]  }
 0x309   : > { %v3891_v30 = vpack.c.bf16 %v3426_v62, %v3391_v21  ;;  %v3890_v33 = vpack.c.bf16 %v3425_v52, %v3390_v26  ;;  %v7190_v28 = vcombine.low %v2907_v19, %v2891_v31  ;;  %v7517_v52 = vld [vmem:[%s10040_s4 + $0x120] ss:$8 sps:$4 sm:$0xff]  }
 0x30a   : > { %v2941_v42 = vcombine.low %v2919_v4, %v2933_v40  ;;  %v2943_v16 = vcombine.low %v2926_v45, %v2940_v44  ;;  %v7191_v10 = vcombine.high %v8848_v53, %v2908_v48  ;;  %v2942_v23 = vcombine.high %v2919_v4, %v2933_v40 }
 0x30b   : > { %4231 = vmatprep.mubr.bf16.mxu1 %v3891_v30  ;;  %v7192_v50 = vcombine.low %v2909_v59, %v2919_v4  ;;  %v3438_v8 = vrot.slane %v7190_v28, %v8585_v0 }
 0x30c   : > { %4232 = vmatmul.mubr.bf16.vlgmr.msra.gmra.mxu1 %v3890_v33  ;;  %v7193_v58 = vcombine.high %v2905_v47, %v2941_v42  ;;  %v7195_v61 = vcombine.high %v2933_v40, %v2943_v16  ;;  %v3445_v3 = vrot.slane %v7191_v10, %v8585_v0  ;;  %v7194_v38 = vcombine.low %v2942_v23, %v2926_v45  ;;  %v7522_v47 = vld [vmem:[%s10040_s4 + $0x114] ss:$8 sps:$4 sm:$0xff]   ;;  %v7526_v42 = vld [vmem:[%s10040_s4 + $0x104] ss:$8 sps:$4 sm:$0xff]  }
 0x30d   : > { %4303 = vmatpush1.bf16.msra.mxu1 %v7501_v14  ;;  %v2655_v18 = vpop.permute.xlu0 %2654  ;;  %v3452_v1 = vrot.slane %v7192_v50, %v8585_v0  ;;  %v7520_v14 = vld [vmem:[%s10040_s4 + $0x110] ss:$8 sps:$4 sm:$0xff]   ;;  %v7524_v50 = vld [vmem:[%s10040_s4 + $0x100] ss:$8 sps:$4 sm:$0xff]  }
 0x30e   : > { %4304 = vmatprep.subr.bf16.mxu1 %v7506_v36  ;;  %v3459_v2 = vrot.slane %v7193_v58, %v8585_v0  ;;  %2699 = vst.msk [vmem:[#allocation3 + $0x29] sm:$0x3f] %vm2694_vm10, %v2655_v18  ;;  %v3473_v7 = vrot.slane %v7194_v38, %v8585_v0  ;;  %v3480_v21 = vrot.slane %v7195_v61, %v8585_v0 }
 0x30f   : > { %v8867_v51 = vld [vmem:[#allocation3 + $0x20] sm:$0xff]  ;;  %v3461_v12 = vcombine.high %v3438_v8, %v3452_v1  ;;  %v3460_v11 = vcombine.low %v3438_v8, %v3452_v1 }
 0x310   : > { %v8869_v55 = vld [vmem:[#allocation3 + $0x21] sm:$0xff]  ;;  %v8871_v20 = vcombine.low %v3445_v3, %v3459_v2 }
 0x311   : > { %v2944_v24 = vcombine.low %v8867_v51, %v8869_v55  ;;  %4305 = vmatpush1.bf16.msra.mxu1 %v7504_v54  ;;  %v2945_v30 = vcombine.high %v8867_v51, %v8869_v55 }
 0x312   : > { %4306 = vmatprep.subr.bf16.mxu1 %v7509_v17 }
 0x313   : > { %v2953_v6 = vrot.slane %v2944_v24, %v8585_v0  ;;  %v2960_v61 = vrot.slane %v2945_v30, %v8585_v0 }
 0x315   : > { %v3487_v13 = vrot.slane %v2953_v6, %v8585_v0  ;;  %4307 = vmatpush1.bf16.msra.mxu1 %v7507_v43  ;;  %v8892_v32 = vld [vmem:[#allocation3 + $0x22] sm:$0xff]  ;;  %v8921_v36 = vld [vmem:[#allocation3 + $0x2a] sm:$0x3f] }
 0x316   : > { %4308 = vmatprep.subr.bf16.mxu1 %v7513_v41  ;;  %v2967_v25 = vrot.slane %v8892_v32, %v8585_v0  ;;  %v2715_v31 = vld [vmem:[#allocation3 + $0x28] sm:$0x3f]  ;;  %v2981_v54 = vcombine.high %v8921_v36, %v8921_v36 }
 0x317   : > { %v3496_v15 = vcombine.high %v3473_v7, %v3487_v13  ;;  %v3495_v9 = vcombine.low %v3473_v7, %v3487_v13  ;;  %v2657_v22 = vpop.permute.xlu1 %2656  ;;  %v2731_v62 = vld [vmem:[#allocation3 + $0x29] sm:$0x3f] }
 0x318   : > { %2700 = vst.msk [vmem:[#allocation3 + $0x31] sm:$0xff] %vm2692_vm9, %v2657_v22  ;;  %v3494_v26 = vrot.slane %v2967_v25, %v8585_v0  ;;  %v2979_v40 = vcombine.low %v2715_v31, %v2731_v62  ;;  %v2980_v44 = vcombine.high %v2715_v31, %v2731_v62  ;;  %v3009_v13 = vrot.slane %v2981_v54, %v8585_v0 }
 0x319   : > { %v3894_v37 = vpack.c.bf16 %v3496_v15, %v3461_v12  ;;  %v3893_v35 = vpack.c.bf16 %v3495_v9, %v3460_v11  ;;  %4309 = vmatpush1.bf16.msra.mxu1 %v7511_v29  ;;  %v3508_v9 = vrot.slane %v2960_v61, %v8585_v0 }
 0x31a   : > { %4310 = vmatprep.subr.bf16.mxu1 %v7516_v27  ;;  %v8905_v46 = vcombine.low %v3480_v21, %v3494_v26  ;;  %v2988_v10 = vrot.slane %v2979_v40, %v8585_v0  ;;  %v2995_v58 = vrot.slane %v2980_v44, %v8585_v0 }
 0x31b   : > { %4241 = vmatprep.mubr.bf16.mxu1 %v3894_v37  ;;  %v2659_v39 = vpop.permute.xlu1 %2658 }
 0x31c   : > { %4242 = vmatmul.mubr.bf16.gmra.mxu1 %v3893_v35  ;;  %2701 = vst.msk [vmem:[#allocation3 + $0x39] sm:$0x3f] %vm2694_vm10, %v2659_v39  ;;  %v3895_v49 = vpack.c.bf16 %v8905_v46, %v8871_v20  ;;  %v3522_v8 = vrot.slane %v2988_v10, %v8585_v0 }
 0x31d   : > { %4311 = vmatpush1.bf16.msra.mxu1 %v7514_v5 }
 0x31e   : > { %4312 = vmatprep.subr.bf16.mxu1 %v7519_v34  ;;  %v3531_v21 = vcombine.high %v3508_v9, %v3522_v8  ;;  %v3530_v26 = vcombine.low %v3508_v9, %v3522_v8 }
 0x31f   : > { %v2716_v4 = vld [vmem:[#allocation3 + $0x30] sm:$0xff] }
 0x320   : > { %v2732_v45 = vld [vmem:[#allocation3 + $0x31] sm:$0xff] }
 0x321   : > { %v3013_v33 = vcombine.low %v2716_v4, %v2732_v45  ;;  %4313 = vmatpush1.bf16.msra.mxu1 %v7517_v52  ;;  %v3014_v48 = vcombine.high %v2716_v4, %v2732_v45 }
 0x322   : > { %4314 = vmatprep.subr.bf16.mxu1 %v7522_v47 }
 0x323   : > { %v3022_v59 = vrot.slane %v3013_v33, %v8585_v0  ;;  %v2748_v16 = vld [vmem:[#allocation3 + $0x32] sm:$0xff]  ;;  %v2749_v17 = vld [vmem:[#allocation3 + $0x3a] sm:$0x3f]  ;;  %v3029_v55 = vrot.slane %v3014_v48, %v8585_v0 }
 0x324   : > { %v2717_v19 = vld [vmem:[#allocation3 + $0x38] sm:$0x3f]  ;;  %v3036_v18 = vrot.slane %v2748_v16, %v8585_v0  ;;  %v3015_v3 = vcombine.high %v2748_v16, %v2748_v16  ;;  %v3050_v38 = vcombine.high %v2749_v17, %v2749_v17  ;;  %v3071_v1 = vrot.slane %v2749_v17, %v8585_v0 }
 0x325   : > { %v2733_v23 = vld [vmem:[#allocation3 + $0x39] sm:$0x3f]  ;;  %4315 = vmatpush1.bf16.msra.mxu1 %v7520_v14  ;;  %v2661_v51 = vpop.permute.xlu0 %2660  ;;  %v7196_v24 = vcombine.low %v2995_v58, %v3022_v59 }
 0x326   : > { %v3048_v2 = vcombine.low %v2717_v19, %v2733_v23  ;;  %v3049_v28 = vcombine.high %v2717_v19, %v2733_v23  ;;  %4316 = vmatprep.subr.bf16.mxu1 %v7526_v42  ;;  %2702 = vst.msk [vmem:[#allocation3 + $0x41] sm:$0xff] %vm2692_vm9, %v2661_v51  ;;  %v3045_v43 = vcombine.high %v3022_v59, %v3036_v18 }
 0x327   : > { %v3043_v41 = vrot.slane %v3015_v3, %v8585_v0  ;;  %v3078_v29 = vrot.slane %v3050_v38, %v8585_v0  ;;  %v7197_v22 = vcombine.low %v3009_v13, %v3036_v18  ;;  %v3543_v35 = vrot.slane %v7196_v24, %v8585_v0 }
 0x328   : > { %v3057_v6 = vrot.slane %v3048_v2, %v8585_v0  ;;  %v3064_v7 = vrot.slane %v3049_v28, %v8585_v0  ;;  %v7198_v27 = vcombine.low %v3045_v43, %v3029_v55 }
 0x329   : > { %v3047_v12 = vcombine.high %v3029_v55, %v3043_v41  ;;  %4317 = vmatpush1.bf16.msra.mxu1 %v7524_v50  ;;  %v3046_v11 = vcombine.low %v3029_v55, %v3043_v41  ;;  %v3550_v44 = vrot.slane %v7197_v22, %v8585_v0 }
 0x32a   : > { %v3080_v15 = vcombine.high %v3057_v6, %v3071_v1  ;;  %v3079_v25 = vcombine.low %v3057_v6, %v3071_v1  ;;  %v3081_v37 = vcombine.low %v3064_v7, %v3078_v29  ;;  %v3557_v5 = vrot.slane %v7198_v27, %v8585_v0 }
 0x32b   : > { %v7199_v34 = vcombine.high %v3036_v18, %v3046_v11  ;;  %v7200_v47 = vcombine.low %v3047_v12, %v3057_v6 }
 0x32c   : > { %v7201_v39 = vcombine.high %v3043_v41, %v3079_v25  ;;  %v7203_v31 = vcombine.high %v3071_v1, %v3081_v37  ;;  %v3566_v62 = vcombine.high %v3543_v35, %v3557_v5  ;;  %v3565_v52 = vcombine.low %v3543_v35, %v3557_v5 }
 0x32d   : > { %v7202_v4 = vcombine.low %v3080_v15, %v3064_v7  ;;  %v2718_v45 = vld [vmem:[#allocation3 + $0x40] sm:$0xff]  ;;  %v3564_v30 = vrot.slane %v7199_v34, %v8585_v0  ;;  %v3578_v54 = vrot.slane %v7200_v47, %v8585_v0 }
 0x32e   : > { %v2734_v40 = vld [vmem:[#allocation3 + $0x41] sm:$0xff]  ;;  %v3585_v33 = vrot.slane %v7201_v39, %v8585_v0  ;;  %v3599_v14 = vrot.slane %v7203_v31, %v8585_v0  ;;  %v3897_v48 = vpack.c.bf16 %v3566_v62, %v3531_v21  ;;  %v3896_v42 = vpack.c.bf16 %v3565_v52, %v3530_v26 }
 0x32f   : > { %v3082_v59 = vcombine.low %v2718_v45, %v2734_v40  ;;  %v3083_v16 = vcombine.high %v2718_v45, %v2734_v40  ;;  %v8952_v10 = vcombine.low %v3550_v44, %v3564_v30  ;;  %v3592_v61 = vrot.slane %v7202_v4, %v8585_v0 }
 0x330   : > { %v8954_v58 = vcombine.low %v3585_v33, %v3599_v14  ;;  %4251 = vmatprep.mubr.bf16.mxu1 %v3897_v48 }
 0x331   : > { %v3091_v19 = vrot.slane %v3082_v59, %v8585_v0  ;;  %v3098_v23 = vrot.slane %v3083_v16, %v8585_v0  ;;  %4252 = vmatmul.mubr.bf16.gmra.mxu1 %v3896_v42  ;;  %v3601_v3 = vcombine.high %v3578_v54, %v3592_v61  ;;  %v3600_v50 = vcombine.low %v3578_v54, %v3592_v61 }
 0x333   : > { %v3613_v18 = vrot.slane %v3091_v19, %v8585_v0  ;;  %v3627_v17 = vrot.slane %v3098_v23, %v8585_v0 }
 0x335   : > { %v3636_v2 = vcombine.high %v3613_v18, %v3627_v17  ;;  %v3635_v51 = vcombine.low %v3613_v18, %v3627_v17  ;;  %v2665_v55 = vpop.permute.xlu1 %2664 }
 0x336   : > { %2704 = vst.msk [vmem:[#allocation3 + $0x51] sm:$0xff] %vm2692_vm9, %v2665_v55 }
 0x337   : > { %v3900_v24 = vpack.c.bf16 %v3636_v2, %v3601_v3  ;;  %v3899_v28 = vpack.c.bf16 %v3635_v51, %v3600_v50 }
 0x339   : > { %4261 = vmatprep.mubr.bf16.mxu1 %v3900_v24  ;;  %v2663_v38 = vpop.permute.xlu1 %2662 }
 0x33a   : > { %4262 = vmatmul.mubr.bf16.gmra.mxu1 %v3899_v28  ;;  %2703 = vst.msk [vmem:[#allocation3 + $0x49] sm:$0x3f] %vm2694_vm10, %v2663_v38 }
 0x33b   : > { %v2667_v43 = vpop.permute.xlu0 %2666 }
 0x33c   : > { %2705 = vst.msk [vmem:[#allocation3 + $0x59] sm:$0x3f] %vm2694_vm10, %v2667_v43 }
 0x33d   : > { %v2720_v41 = vld [vmem:[#allocation3 + $0x50] sm:$0xff] }
 0x33e   : > { %v2736_v6 = vld [vmem:[#allocation3 + $0x51] sm:$0xff] }
 0x33f   : > { %v3151_v1 = vcombine.low %v2720_v41, %v2736_v6  ;;  %v3152_v29 = vcombine.high %v2720_v41, %v2736_v6 }
 0x341   : > { %v2719_v8 = vld [vmem:[#allocation3 + $0x48] sm:$0x3f]  ;;  %v3160_v22 = vrot.slane %v3151_v1, %v8585_v0  ;;  %v3167_v26 = vrot.slane %v3152_v29, %v8585_v0 }
 0x342   : > { %v2735_v7 = vld [vmem:[#allocation3 + $0x49] sm:$0x3f] }
 0x343   : > { %v3118_v13 = vcombine.high %v2719_v8, %v2735_v7  ;;  %v2751_v27 = vld [vmem:[#allocation3 + $0x4a] sm:$0x3f]  ;;  %v2721_v12 = vld [vmem:[#allocation3 + $0x58] sm:$0x3f]  ;;  %v3117_v9 = vcombine.low %v2719_v8, %v2735_v7 }
 0x344   : > { %v2737_v15 = vld [vmem:[#allocation3 + $0x59] sm:$0x3f]  ;;  %v3119_v34 = vcombine.high %v2751_v27, %v2751_v27  ;;  %v3140_v23 = vrot.slane %v2751_v27, %v8585_v0 }
 0x345   : > { %v2752_v11 = vld [vmem:[#allocation3 + $0x52] sm:$0xff]  ;;  %v3133_v25 = vrot.slane %v3118_v13, %v8585_v0  ;;  %v2753_v5 = vld [vmem:[#allocation3 + $0x5a] sm:$0x3f]  ;;  %v3186_v21 = vcombine.low %v2721_v12, %v2737_v15  ;;  %v3126_v47 = vrot.slane %v3117_v9, %v8585_v0  ;;  %v3187_v14 = vcombine.high %v2721_v12, %v2737_v15 }
 0x346   : > { %v3153_v37 = vcombine.high %v2752_v11, %v2752_v11  ;;  %v3174_v35 = vrot.slane %v2752_v11, %v8585_v0  ;;  %v3209_v45 = vrot.slane %v2753_v5, %v8585_v0  ;;  %v3147_v30 = vrot.slane %v3119_v34, %v8585_v0 }
 0x347   : > { %v7204_v62 = vcombine.low %v3133_v25, %v3160_v22  ;;  %v2669_v52 = vpop.permute.xlu0 %2668  ;;  %v3195_v4 = vrot.slane %v3186_v21, %v8585_v0  ;;  %v3648_v16 = vrot.slane %v3126_v47, %v8585_v0  ;;  %v3188_v3 = vcombine.high %v2753_v5, %v2753_v5 }
 0x348   : > { %v3181_v39 = vrot.slane %v3153_v37, %v8585_v0  ;;  %v3183_v31 = vcombine.high %v3160_v22, %v3174_v35  ;;  %2706 = vst.msk [vmem:[#allocation3 + $0x61] sm:$0xff] %vm2692_vm9, %v2669_v52  ;;  %v7205_v54 = vcombine.low %v3147_v30, %v3174_v35  ;;  %v3202_v55 = vrot.slane %v3187_v14, %v8585_v0 }
 0x349   : > { %v3662_v33 = vrot.slane %v7204_v62, %v8585_v0  ;;  %v3217_v42 = vcombine.low %v3195_v4, %v3209_v45  ;;  %v3655_v8 = vrot.slane %v3140_v23, %v8585_v0  ;;  %v3216_v7 = vrot.slane %v3188_v3, %v8585_v0 }
 0x34a   : > { %v3185_v40 = vcombine.high %v3167_v26, %v3181_v39  ;;  %v7206_v44 = vcombine.low %v3183_v31, %v3167_v26  ;;  %v3184_v48 = vcombine.low %v3167_v26, %v3181_v39  ;;  %v3669_v24 = vrot.slane %v7205_v54, %v8585_v0 }
 0x34b   : > { %v7209_v17 = vcombine.high %v3181_v39, %v3217_v42  ;;  %v3671_v50 = vcombine.high %v3648_v16, %v3662_v33  ;;  %v3670_v51 = vcombine.low %v3648_v16, %v3662_v33  ;;  %v3219_v11 = vcombine.low %v3202_v55, %v3216_v7 }
 0x34c   : > { %v7208_v59 = vcombine.low %v3185_v40, %v3195_v4  ;;  %v3683_v19 = vrot.slane %v7206_v44, %v8585_v0  ;;  %v7207_v18 = vcombine.high %v3174_v35, %v3184_v48  ;;  %v3672_v12 = vcombine.low %v3655_v8, %v3669_v24 }
 0x34d   : > { %v2671_v2 = vpop.permute.xlu1 %2670  ;;  %v3704_v41 = vrot.slane %v7209_v17, %v8585_v0  ;;  %v3218_v9 = vcombine.high %v3195_v4, %v3209_v45  ;;  %v8989_v37 = vcombine.high %v3209_v45, %v3219_v11  ;;  %v2742_v11 = vld [vmem:[#allocation3 + $0x2] sm:$0xff] }
 0x34e   : > { %v3697_v61 = vrot.slane %v7208_v59, %v8585_v0  ;;  %2707 = vst.msk [vmem:[#allocation3 + $0x69] sm:$0x3f] %vm2694_vm10, %v2671_v2  ;;  %v3690_v43 = vrot.slane %v7207_v18, %v8585_v0 }
 0x34f   : > { %v2722_v6 = vld [vmem:[#allocation3 + $0x60] sm:$0xff]  ;;  %v7210_v39 = vcombine.low %v3218_v9, %v3202_v55 }
 0x350   : > { %v3706_v28 = vcombine.high %v3683_v19, %v3697_v61  ;;  %v3705_v38 = vcombine.low %v3683_v19, %v3697_v61  ;;  %v2738_v1 = vld [vmem:[#allocation3 + $0x61] sm:$0xff]  ;;  %v3707_v15 = vcombine.low %v3690_v43, %v3704_v41 }
 0x351   : > { %v3220_v27 = vcombine.low %v2722_v6, %v2738_v1  ;;  %v3221_v22 = vcombine.high %v2722_v6, %v2738_v1  ;;  %v3718_v4 = vrot.slane %v7210_v39, %v8585_v0 }
 0x352   : > { %v3903_v13 = vpack.c.bf16 %v3706_v28, %v3671_v50  ;;  %v3902_v29 = vpack.c.bf16 %v3705_v38, %v3670_v51  ;;  %v8987_v25 = vpack.c.bf16 %v3707_v15, %v3672_v12  ;;  %v2743_v28 = vld [vmem:[#allocation3 + $0xa] sm:$0x3f] }
 0x353   : > { %v3229_v35 = vrot.slane %v3220_v27, %v8585_v0  ;;  %v3236_v21 = vrot.slane %v3221_v22, %v8585_v0 }
 0x354   : > { %4271 = vmatprep.mubr.bf16.mxu1 %v3903_v13 }
 0x355   : > { %4272 = vmatmul.mubr.bf16.gmra.mxu1 %v3902_v29  ;;  %v2723_v5 = vld [vmem:[#allocation3 + $0x68] sm:$0x3f]  ;;  %v3732_v52 = vrot.slane %v3229_v35, %v8585_v0  ;;  %v3753_v45 = vrot.slane %v3236_v21, %v8585_v0  ;;  %v2843_v29 = vcombine.high %v2743_v28, %v2743_v28 }
 0x356   : > { %v2739_v34 = vld [vmem:[#allocation3 + $0x69] sm:$0x3f] }
 0x357   : > { %v3255_v26 = vcombine.low %v2723_v5, %v2739_v34  ;;  %v2673_v31 = vpop.permute.xlu0 %2672  ;;  %v3741_v44 = vcombine.high %v3718_v4, %v3732_v52  ;;  %v3740_v33 = vcombine.low %v3718_v4, %v3732_v52  ;;  %v3256_v17 = vcombine.high %v2723_v5, %v2739_v34  ;;  %v2754_v46 = vld [vmem:[#allocation3 + $0x62] sm:$0xff] }
 0x358   : > { %2708 = vst.msk [vmem:[#allocation3 + $0x71] sm:$0xff] %vm2692_vm9, %v2673_v31  ;;  %v2808_v34 = vcombine.high %v2742_v11, %v2742_v11  ;;  %v2871_v21 = vrot.slane %v2843_v29, %v8585_v0  ;;  %v2755_v29 = vld [vmem:[#allocation3 + $0x6a] sm:$0x3f] }
 0x359   : > { %v3264_v62 = vrot.slane %v3255_v26, %v8585_v0  ;;  %v2675_v47 = vpop.permute.xlu1 %2674  ;;  %v3271_v6 = vrot.slane %v3256_v17, %v8585_v0  ;;  %v3002_v17 = vrot.slane %v8921_v36, %v8585_v0 }
 0x35a   : > { %2709 = vst.msk [vmem:[#allocation3 + $0x79] sm:$0x3f] %vm2694_vm10, %v2675_v47  ;;  %v7189_v31 = vcombine.low %v2871_v21, %v8848_v53  ;;  %v3725_v21 = vrot.slane %v8989_v37, %v8585_v0 }
 0x35b   : > { %v3767_v40 = vrot.slane %v3264_v62, %v8585_v0 }
 0x35d   : > { %v3776_v30 = vcombine.high %v3753_v45, %v3767_v40  ;;  %v3775_v14 = vcombine.low %v3753_v45, %v3767_v40  ;;  %v2836_v45 = vrot.slane %v2808_v34, %v8585_v0  ;;  %v2864_v40 = vrot.slane %v2743_v28, %v8585_v0 }
 0x35f   : > { %v3906_v48 = vpack.c.bf16 %v3776_v30, %v3741_v44  ;;  %v3905_v42 = vpack.c.bf16 %v3775_v14, %v3740_v33  ;;  %v2724_v59 = vld [vmem:[#allocation3 + $0x70] sm:$0xff]  ;;  %v2829_v33 = vrot.slane %v2742_v11, %v8585_v0  ;;  %v3424_v14 = vrot.slane %v7189_v31, %v8585_v0 }
 0x360   : > { %v2740_v16 = vld [vmem:[#allocation3 + $0x71] sm:$0xff]  ;;  %v3410_v53 = vrot.slane %v2864_v40, %v8585_v0  ;;  %v3278_v11 = vrot.slane %v2755_v29, %v8585_v0 }
 0x361   : > { %4281 = vmatprep.mubr.bf16.mxu1 %v3906_v48  ;;  %v3289_v19 = vcombine.low %v2724_v59, %v2740_v16  ;;  %v3290_v23 = vcombine.high %v2724_v59, %v2740_v16  ;;  %v2725_v54 = vld [vmem:[#allocation3 + $0x78] sm:$0x3f]  ;;  %v3389_v48 = vrot.slane %v2836_v45, %v8585_v0  ;;  %v3375_v59 = vrot.slane %v2829_v33, %v8585_v0 }
 0x362   : > { %4282 = vmatmul.mubr.bf16.gmra.mxu1 %v3905_v42  ;;  %v2741_v61 = vld [vmem:[#allocation3 + $0x79] sm:$0x3f]  ;;  %v10091_v42 = vmov 0   ;;  %v3427_v16 = vcombine.low %v3410_v53, %v3424_v14  ;;  %v3774_v34 = vrot.slane %v3278_v11, %v8585_v0 }
 0x363   : > { %v2756_v18 = vld [vmem:[#allocation3 + $0x72] sm:$0xff]  ;;  %v9000_v3 = vld [vmem:[#allocation3 + $0x7a] sm:$0x3f]  ;;  %v3298_v50 = vrot.slane %v3289_v19, %v8585_v0  ;;  %v3324_v55 = vcombine.low %v2725_v54, %v2741_v61  ;;  %v3325_v24 = vcombine.high %v2725_v54, %v2741_v61  ;;  %v9007_v38 = vrot.slane %v3290_v23, %v8585_v0  ;;  %v2750_v61 = vld [vmem:[#allocation3 + $0x42] sm:$0xff] }
 0x364   : > { %v3291_v2 = vcombine.high %v2756_v18, %v2756_v18  ;;  %v9004_v51 = vrot.slane %v2756_v18, %v8585_v0  ;;  %v9019_v8 = vrot.slane %v9000_v3, %v8585_v0  ;;  %v3392_v19 = vcombine.low %v3375_v59, %v3389_v48 }
 0x365   : > { %v9015_v1 = vrot.slane %v3324_v55, %v8585_v0  ;;  %v9025_v27 = vrot.slane %v3325_v24, %v8585_v0  ;;  %v7212_v15 = vcombine.low %v3271_v6, %v3298_v50  ;;  %v2946_v54 = vcombine.high %v8892_v32, %v8892_v32 }
 0x366   : > { %v9010_v43 = vrot.slane %v3291_v2, %v8585_v0  ;;  %v3321_v41 = vcombine.high %v3298_v50, %v9004_v51  ;;  %v3892_v23 = vpack.c.bf16 %v3427_v16, %v3392_v19  ;;  %v3084_v2 = vcombine.high %v2750_v61, %v2750_v61 }
 0x367   : > { %v3356_v12 = vcombine.high %v9015_v1, %v9019_v8  ;;  %v3788_v26 = vrot.slane %v7212_v15, %v8585_v0  ;;  %v2974_v18 = vrot.slane %v2946_v54, %v8585_v0  ;;  %v3529_v55 = vrot.slane %v3002_v17, %v8585_v0 }
 0x368   : > { %v3323_v7 = vcombine.high %v9007_v38, %v9010_v43  ;;  %v7214_v13 = vcombine.low %v3321_v41, %v9007_v38  ;;  %v3112_v32 = vrot.slane %v3084_v2, %v8585_v0  ;;  %v3105_v28 = vrot.slane %v2750_v61, %v8585_v0 }
 0x369   : > { %v7218_v35 = vcombine.low %v3356_v12, %v9025_v27  ;;  %v3515_v50 = vrot.slane %v2974_v18, %v8585_v0  ;;  %v3243_v15 = vrot.slane %v2754_v46, %v8585_v0 }
 0x36a   : > { %v7216_v9 = vcombine.low %v3323_v7, %v9015_v1  ;;  %v3802_v22 = vrot.slane %v7214_v13, %v8585_v0  ;;  %v3634_v36 = vrot.slane %v3112_v32, %v8585_v0  ;;  %v3620_v6 = vrot.slane %v3105_v28, %v8585_v0 }
 0x36b   : > { %v3837_v39 = vrot.slane %v7218_v35, %v8585_v0  ;;  %v3532_v24 = vcombine.low %v3515_v50, %v3529_v55  ;;  %v3222_v7 = vcombine.high %v2754_v46, %v2754_v46  ;;  %v3326_v13 = vcombine.high %v9000_v3, %v9000_v3 }
 0x36c   : > { %v3823_v5 = vrot.slane %v7216_v9, %v8585_v0  ;;  %v3811_v62 = vcombine.high %v3788_v26, %v3802_v22  ;;  %v3810_v47 = vcombine.low %v3788_v26, %v3802_v22  ;;  %v3637_v20 = vcombine.low %v3620_v6, %v3634_v36 }
 0x36d   : > { %v3898_v41 = vpack.c.bf16 %v8952_v10, %v3532_v24  ;;  %v3250_v10 = vrot.slane %v3222_v7, %v8585_v0  ;;  %v3354_v12 = vrot.slane %v3326_v13, %v8585_v0  ;;  %v3257_v9 = vcombine.high %v2755_v29, %v2755_v29  ;;  %v4445_v13 = vld [vmem:[%s10042_s6] sm:$0x3] }
 0x36e   : > { %v3846_v52 = vcombine.high %v3823_v5, %v3837_v39  ;;  %v3845_v4 = vcombine.low %v3823_v5, %v3837_v39  ;;  %v3355_v3 = vcombine.low %v9015_v1, %v9019_v8  ;;  %v3739_v5 = vrot.slane %v3243_v15, %v8585_v0 }
 0x36f   : > { %v3760_v22 = vrot.slane %v3250_v10, %v8585_v0  ;;  %v3357_v35 = vcombine.low %v9025_v27, %v3354_v12  ;;  %v3285_v26 = vrot.slane %v3257_v9, %v8585_v0  ;;  %v9145_v15 = vrot.slane %v4445_v13, %v8176_v57 }
 0x370   : > { %v3909_v44 = vpack.c.bf16 %v3846_v52, %v3811_v62  ;;  %v3908_v30 = vpack.c.bf16 %v3845_v4, %v3810_v47  ;;  %v7217_v1 = vcombine.high %v9010_v43, %v3355_v3  ;;  %v3742_v31 = vcombine.low %v3725_v21, %v3739_v5 }
 0x371   : > { %v3777_v39 = vcombine.low %v3760_v22, %v3774_v34  ;;  %v7219_v27 = vcombine.high %v9019_v8, %v3357_v35  ;;  %v9152_v3 = vrot.slane %v4445_v13, %v8182_v60 }
 0x372   : > { %4291 = vmatprep.mubr.bf16.mxu1 %v3909_v44  ;;  %v3830_v47 = vrot.slane %v7217_v1, %v8585_v0 }
 0x373   : > { %4292 = vmatmul.mubr.bf16.gmra.mxu1 %v3908_v30  ;;  %v3907_v62 = vpack.c.bf16 %v3777_v39, %v3742_v31  ;;  %v3844_v4 = vrot.slane %v7219_v27, %v8585_v0 }
 0x374   : > { %4334 = vmatprep.mubr.bf16.mxu1 %v10091_v42 }
 0x375   : > { %v3847_v40 = vcombine.low %v3830_v47, %v3844_v4 }
 0x37b   : > { %4335 = vmatmul.mubr.bf16.vlgmr.msra.gmra.mxu1 %v3892_v23 }
 0x37c   : > { %4344 = vmatprep.mubr.bf16.mxu1 %v10091_v42 }
 0x383   : > { %4345 = vmatmul.mubr.bf16.gmra.mxu1 %v3895_v49  ;;  %v3901_v49 = vpack.c.bf16 %v3637_v20, %v8954_v58  ;;  %v3322_v58 = vcombine.low %v9007_v38, %v9010_v43 }
 0x384   : > { %4354 = vmatprep.mubr.bf16.mxu1 %v10091_v42 }
 0x385   : > { %v7215_v38 = vcombine.high %v9004_v51, %v3322_v58 }
 0x387   : > { %v3809_v52 = vrot.slane %v7215_v38, %v8585_v0 }
 0x38b   : > { %4355 = vmatmul.mubr.bf16.gmra.mxu1 %v3898_v41 }
 0x38c   : > { %4364 = vmatprep.mubr.bf16.mxu1 %v10091_v42 }
 0x393   : > { %4365 = vmatmul.mubr.bf16.gmra.mxu1 %v3901_v49  ;;  %v4405_v49 = vld [vmem:[%s10041_s5] sm:$0x3] }
 0x394   : > { %4374 = vmatprep.mubr.bf16.mxu1 %v10091_v42  ;;  %v9142_v29 = vrot.slane %v4405_v49, %v8176_v57  ;;  %v9148_v11 = vrot.slane %v4405_v49, %v8182_v60 }
 0x39b   : > { %4375 = vmatmul.mubr.bf16.gmra.mxu1 %v8987_v25  ;;  %v7213_v25 = vcombine.low %v3285_v26, %v9004_v51 }
 0x39c   : > { %4384 = vmatprep.mubr.bf16.mxu1 %v10091_v42 }
 0x39d   : > { %v3795_v37 = vrot.slane %v7213_v25, %v8585_v0 }
 0x39f   : > { %v3812_v45 = vcombine.low %v3795_v37, %v3809_v52 }
 0x3a1   : > { %v3910_v43 = vpack.c.bf16 %v3847_v40, %v3812_v45 }
 0x3a3   : > { %4385 = vmatmul.mubr.bf16.gmra.mxu1 %v3907_v62 }
 0x3a4   : > { %4394 = vmatprep.mubr.bf16.mxu1 %v10091_v42 }
 0x3ab   : > { %4395 = vmatmul.mubr.bf16.gmra.mxu1 %v3910_v43 }
 0x3cc   : > { %v4233_v8 = vpop.f32.mrf.mxu1 }
 0x3ce   : > { %v4235_v44 = vpop.f32.mrf.mxu1 }
 0x3d0   : > { %v4237_v30 = vpop.f32.mrf.mxu1 }
 0x3d2   : > { %v4239_v51 = vpop.f32.mrf.mxu1 }
 0x3dc   : > { %v4243_v33 = vpop.f32.mrf.mxu1 }
 0x3de   : > { %v4245_v14 = vpop.f32.mrf.mxu1 }
 0x3e0   : > { %v4247_v48 = vpop.f32.mrf.mxu1 }
 0x3e2   : > { %v9093_v53 = vpop.f32.mrf.mxu1 }
 0x3f1   : > { %v9095_v59 = vpop.f32.mrf.mxu1 }
 0x3f3   : > { %v9097_v16 = vpop.f32.mrf.mxu1 }
 0x3f5   : > { %v9099_v19 = vpop.f32.mrf.mxu1 }
 0x3f7   : > { %v9101_v23 = vpop.f32.mrf.mxu1 }
 0x3fa   : > { %v9103_v54 = vpop.f32.mrf.mxu1 }
 0x3fc   : > { %v9105_v61 = vpop.f32.mrf.mxu1 }
 0x3fe   : > { %v9107_v18 = vpop.f32.mrf.mxu1 }
 0x400   : > { %v9109_v17 = vpop.f32.mrf.mxu1 }
 0x415   : > { %v9111_v2 = vpop.f32.mrf.mxu1 }
 0x417   : > { %v9113_v50 = vpop.f32.mrf.mxu1 }
 0x419   : > { %v9115_v55 = vpop.f32.mrf.mxu1 }
 0x41b   : > { %v9117_v32 = vpop.f32.mrf.mxu1 }
 0x422   : > { %v9119_v24 = vpop.f32.mrf.mxu1 }
 0x424   : > { %v9121_v28 = vpop.f32.mrf.mxu1 }
 0x426   : > { %v9123_v41 = vpop.f32.mrf.mxu1 }
 0x428   : > { %v9125_v36 = vpop.f32.mrf.mxu1 }
 0x433   : > { %v9127_v6 = vpop.f32.mrf.mxu1 }
 0x435   : > { %v9129_v20 = vpop.f32.mrf.mxu1 }
 0x437   : > { %v9131_v46 = vpop.f32.mrf.mxu1 }
 0x439   : > { %v9136_v7 = vpop.f32.mrf.mxu1 }
 0x43b   : > { %v4336_v10 = vpop.f32.mrf.mxu1 }
 0x43c   : > { %v4337_v12 = vadd.f32 %v4336_v10, %v4233_v8 }
 0x43d   : > { %v4338_v9 = vpop.f32.mrf.mxu1 }
 0x43e   : > { %v4417_v22 = vmul.f32 %v9142_v29, %v4337_v12  ;;  %v4339_v58 = vadd.f32 %v4338_v9, %v4235_v44 }
 0x43f   : > { %v4340_v35 = vpop.f32.mrf.mxu1 }
 0x440   : > { %v9155_v5 = vadd.f32 %v9145_v15, %v4417_v22  ;;  %v4418_v34 = vmul.f32 %v9148_v11, %v4339_v58  ;;  %v4341_v21 = vadd.f32 %v4340_v35, %v4237_v30 }
 0x441   : > { %v4342_v26 = vpop.f32.mrf.mxu1 }
 0x442   : > { %v4485_v39 = vmax.f32 %v9155_v5, 0.0  ;;  %v4458_v38 = vadd.f32 %v9152_v3, %v4418_v34  ;;  %v4419_v1 = vmul.f32 %v9142_v29, %v4341_v21  ;;  %v4343_v27 = vadd.f32 %v4342_v26, %v4239_v51 }
 0x443   : > { %v4346_v31 = vpop.f32.mrf.mxu1 }
 0x444   : > { %v4486_v25 = vmax.f32 %v4458_v38, 0.0  ;;  %v9162_v62 = vadd.f32 %v9145_v15, %v4419_v1  ;;  %v4420_v52 = vmul.f32 %v9148_v11, %v4343_v27  ;;  %v4347_v47 = vadd.f32 %v4346_v31, %v4243_v33  ;;  %4541 = vrot.lane.b32.xlu0 %v4485_v39, %s10067_s27 }
 0x445   : > { %v4348_v4 = vpop.f32.mrf.mxu1 }
 0x446   : > { %v4487_v37 = vmax.f32 %v9162_v62, 0.0  ;;  %v4460_v45 = vadd.f32 %v9152_v3, %v4420_v52  ;;  %v4421_v40 = vmul.f32 %v9142_v29, %v4347_v47  ;;  %v4349_v43 = vadd.f32 %v4348_v4, %v4245_v14  ;;  %4543 = vrot.lane.b32.xlu1 %v4486_v25, %s10067_s27 }
 0x447   : > { %v4350_v8 = vpop.f32.mrf.mxu1 }
 0x448   : > { %v4488_v44 = vmax.f32 %v4460_v45, 0.0  ;;  %v9173_v30 = vadd.f32 %v9145_v15, %v4421_v40  ;;  %v4422_v51 = vmul.f32 %v9148_v11, %v4349_v43  ;;  %v4351_v33 = vadd.f32 %v4350_v8, %v4247_v48  ;;  %4545 = vrot.lane.b32.xlu0 %v4487_v37, %s10067_s27 }
 0x449   : > { %v4352_v49 = vpop.f32.mrf.mxu1 }
 0x44a   : > { %v4489_v13 = vmax.f32 %v9173_v30, 0.0  ;;  %v4462_v10 = vadd.f32 %v9152_v3, %v4422_v51  ;;  %v4423_v14 = vmul.f32 %v9142_v29, %v4351_v33  ;;  %v4353_v12 = vadd.f32 %v4352_v49, %v9093_v53  ;;  %4547 = vrot.lane.b32.xlu1 %v4488_v44, %s10067_s27 }
 0x44b   : > { %v4356_v9 = vpop.f32.mrf.mxu1 }
 0x44c   : > { %v4490_v22 = vmax.f32 %v4462_v10, 0.0  ;;  %v9185_v58 = vadd.f32 %v9145_v15, %v4423_v14  ;;  %v4424_v48 = vmul.f32 %v9148_v11, %v4353_v12  ;;  %v4357_v35 = vadd.f32 %v4356_v9, %v9095_v59  ;;  %4549 = vrot.lane.b32.xlu0 %v4489_v13, %s10067_s27 }
 0x44d   : > { %v4358_v34 = vpop.f32.mrf.mxu1 }
 0x44e   : > { %v4491_v21 = vmax.f32 %v9185_v58, 0.0  ;;  %v4464_v53 = vadd.f32 %v9152_v3, %v4424_v48  ;;  %v4425_v26 = vmul.f32 %v9142_v29, %v4357_v35  ;;  %v4359_v38 = vadd.f32 %v4358_v34, %v9097_v16  ;;  %4551 = vrot.lane.b32.xlu1 %v4490_v22, %s10067_s27 }
 0x44f   : > { %v4360_v1 = vpop.f32.mrf.mxu1 }
 0x450   : > { %v4492_v27 = vmax.f32 %v4464_v53, 0.0  ;;  %v9198_v31 = vadd.f32 %v9145_v15, %v4425_v26  ;;  %v4426_v59 = vmul.f32 %v9148_v11, %v4359_v38  ;;  %v4361_v25 = vadd.f32 %v4360_v1, %v9099_v19  ;;  %4553 = vrot.lane.b32.xlu0 %v4491_v21, %s10067_s27 }
 0x451   : > { %v4362_v52 = vpop.f32.mrf.mxu1 }
 0x452   : > { %v4493_v47 = vmax.f32 %v9198_v31, 0.0  ;;  %v4466_v16 = vadd.f32 %v9152_v3, %v4426_v59  ;;  %v4427_v4 = vmul.f32 %v9142_v29, %v4361_v25  ;;  %v4363_v45 = vadd.f32 %v4362_v52, %v9101_v23  ;;  %4555 = vrot.lane.b32.xlu1 %v4492_v27, %s10067_s27 }
 0x453   : > { %v4366_v40 = vpop.f32.mrf.mxu1 }
 0x454   : > { %v4494_v43 = vmax.f32 %v4466_v16, 0.0  ;;  %v9211_v8 = vadd.f32 %v9145_v15, %v4427_v4  ;;  %v4428_v19 = vmul.f32 %v9148_v11, %v4363_v45  ;;  %v4367_v44 = vadd.f32 %v4366_v40, %v9103_v54  ;;  %4557 = vrot.lane.b32.xlu0 %v4493_v47, %s10067_s27 }
 0x455   : > { %v4368_v51 = vpop.f32.mrf.mxu1 }
 0x456   : > { %v4495_v33 = vmax.f32 %v9211_v8, 0.0  ;;  %v4468_v23 = vadd.f32 %v9152_v3, %v4428_v19  ;;  %v4429_v49 = vmul.f32 %v9142_v29, %v4367_v44  ;;  %v4369_v10 = vadd.f32 %v4368_v51, %v9105_v61  ;;  %4559 = vrot.lane.b32.xlu1 %v4494_v43, %s10067_s27 }
 0x457   : > { %v4370_v14 = vpop.f32.mrf.mxu1 }
 0x458   : > { %v4496_v12 = vmax.f32 %v4468_v23, 0.0  ;;  %v9224_v9 = vadd.f32 %v9145_v15, %v4429_v49  ;;  %v4430_v54 = vmul.f32 %v9148_v11, %v4369_v10  ;;  %v4371_v22 = vadd.f32 %v4370_v14, %v9107_v18  ;;  %4561 = vrot.lane.b32.xlu0 %v4495_v33, %s10067_s27 }
 0x459   : > { %v4372_v48 = vpop.f32.mrf.mxu1 }
 0x45a   : > { %v4497_v35 = vmax.f32 %v9224_v9, 0.0  ;;  %v4470_v61 = vadd.f32 %v9152_v3, %v4430_v54  ;;  %v4431_v34 = vmul.f32 %v9142_v29, %v4371_v22  ;;  %v4373_v53 = vadd.f32 %v4372_v48, %v9109_v17  ;;  %4563 = vrot.lane.b32.xlu1 %v4496_v12, %s10067_s27 }
 0x45b   : > { %v4376_v26 = vpop.f32.mrf.mxu1 }
 0x45c   : > { %v4498_v38 = vmax.f32 %v4470_v61, 0.0  ;;  %v9237_v1 = vadd.f32 %v9145_v15, %v4431_v34  ;;  %v4432_v18 = vmul.f32 %v9148_v11, %v4373_v53  ;;  %v4377_v27 = vadd.f32 %v4376_v26, %v9111_v2  ;;  %4565 = vrot.lane.b32.xlu0 %v4497_v35, %s10067_s27 }
 0x45d   : > { %v4378_v59 = vpop.f32.mrf.mxu1 }
 0x45e   : > { %v4499_v25 = vmax.f32 %v9237_v1, 0.0  ;;  %v4472_v17 = vadd.f32 %v9152_v3, %v4432_v18  ;;  %v4433_v52 = vmul.f32 %v9142_v29, %v4377_v27  ;;  %v4379_v16 = vadd.f32 %v4378_v59, %v9113_v50  ;;  %4567 = vrot.lane.b32.xlu1 %v4498_v38, %s10067_s27 }
 0x45f   : > { %v4380_v4 = vpop.f32.mrf.mxu1 }
 0x460   : > { %v4500_v45 = vmax.f32 %v4472_v17, 0.0  ;;  %v9250_v40 = vadd.f32 %v9145_v15, %v4433_v52  ;;  %v4434_v2 = vmul.f32 %v9148_v11, %v4379_v16  ;;  %v4381_v43 = vadd.f32 %v4380_v4, %v9115_v55  ;;  %4569 = vrot.lane.b32.xlu0 %v4499_v25, %s10067_s27 }
 0x461   : > { %v4382_v19 = vpop.f32.mrf.mxu1 }
 0x462   : > { %v4501_v44 = vmax.f32 %v9250_v40, 0.0  ;;  %v4474_v50 = vadd.f32 %v9152_v3, %v4434_v2  ;;  %v4435_v51 = vmul.f32 %v9142_v29, %v4381_v43  ;;  %v4383_v23 = vadd.f32 %v4382_v19, %v9117_v32  ;;  %4571 = vrot.lane.b32.xlu1 %v4500_v45, %s10067_s27 }
 0x463   : > { %v4386_v49 = vpop.f32.mrf.mxu1 }
 0x464   : > { %v4502_v10 = vmax.f32 %v4474_v50, 0.0  ;;  %v9263_v14 = vadd.f32 %v9145_v15, %v4435_v51  ;;  %v4436_v55 = vmul.f32 %v9148_v11, %v4383_v23  ;;  %v4387_v12 = vadd.f32 %v4386_v49, %v9119_v24  ;;  %4573 = vrot.lane.b32.xlu0 %v4501_v44, %s10067_s27 }
 0x465   : > { %v4388_v54 = vpop.f32.mrf.mxu1 }
 0x466   : > { %v4503_v22 = vmax.f32 %v9263_v14, 0.0  ;;  %v4476_v32 = vadd.f32 %v9152_v3, %v4436_v55  ;;  %v4437_v48 = vmul.f32 %v9142_v29, %v4387_v12  ;;  %v4389_v61 = vadd.f32 %v4388_v54, %v9121_v28  ;;  %4575 = vrot.lane.b32.xlu1 %v4502_v10, %s10067_s27 }
 0x467   : > { %v4390_v34 = vpop.f32.mrf.mxu1 }
 0x468   : > { %v4504_v53 = vmax.f32 %v4476_v32, 0.0  ;;  %v9276_v26 = vadd.f32 %v9145_v15, %v4437_v48  ;;  %v4438_v24 = vmul.f32 %v9148_v11, %v4389_v61  ;;  %v4391_v38 = vadd.f32 %v4390_v34, %v9123_v41  ;;  %4577 = vrot.lane.b32.xlu0 %v4503_v22, %s10067_s27 }
 0x469   : > { %v4392_v18 = vpop.f32.mrf.mxu1 }
 0x46a   : > { %v4505_v27 = vmax.f32 %v9276_v26, 0.0  ;;  %v4478_v28 = vadd.f32 %v9152_v3, %v4438_v24  ;;  %v4439_v59 = vmul.f32 %v9142_v29, %v4391_v38  ;;  %v4393_v17 = vadd.f32 %v4392_v18, %v9125_v36  ;;  %4579 = vrot.lane.b32.xlu1 %v4504_v53, %s10067_s27 }
 0x46b   : > { %v4396_v52 = vpop.f32.mrf.mxu1 }
 0x46c   : > { %v4506_v16 = vmax.f32 %v4478_v28, 0.0  ;;  %v9289_v4 = vadd.f32 %v9145_v15, %v4439_v59  ;;  %v4440_v41 = vmul.f32 %v9148_v11, %v4393_v17  ;;  %v4397_v45 = vadd.f32 %v4396_v52, %v9127_v6  ;;  %4581 = vrot.lane.b32.xlu0 %v4505_v27, %s10067_s27 }
 0x46d   : > { %v4398_v2 = vpop.f32.mrf.mxu1  ;;  %v7705_v28 = vmov 1966171168  }
 0x46e   : > { %v4507_v43 = vmax.f32 %v9289_v4, 0.0  ;;  %v4480_v36 = vadd.f32 %v9152_v3, %v4440_v41  ;;  %v4441_v19 = vmul.f32 %v9142_v29, %v4397_v45  ;;  %v4399_v50 = vadd.f32 %v4398_v2, %v9129_v20  ;;  %4583 = vrot.lane.b32.xlu1 %v4506_v16, %s10067_s27 }
 0x46f   : > { %v4400_v51 = vpop.f32.mrf.mxu1  ;;  %v4683_v59 = vunpack.c.l.s4 %v7705_v28 }
 0x470   : > { %v4508_v23 = vmax.f32 %v4480_v36, 0.0  ;;  %v9302_v49 = vadd.f32 %v9145_v15, %v4441_v19  ;;  %v4442_v6 = vmul.f32 %v9148_v11, %v4399_v50  ;;  %v4401_v10 = vadd.f32 %v4400_v51, %v9131_v46  ;;  %4585 = vrot.lane.b32.xlu0 %v4507_v43, %s10067_s27 }
 0x471   : > { %v4402_v55 = vpop.f32.mrf.mxu1  ;;  %v4684_v45 = vunpack.c.0.s8 %v4683_v59 }
 0x472   : > { %v4509_v12 = vmax.f32 %v9302_v49, 0.0  ;;  %v4482_v20 = vadd.f32 %v9152_v3, %v4442_v6  ;;  %v4443_v54 = vmul.f32 %v9142_v29, %v4401_v10  ;;  %v4403_v32 = vadd.f32 %v4402_v55, %v9136_v7  ;;  %4587 = vrot.lane.b32.xlu1 %v4508_v23, %s10067_s27 }
 0x473   : > { %v9342_v19 = vsub.s32 %v4684_v45, %v8173_v56 }
 0x474   : > { %v4510_v48 = vmax.f32 %v4482_v20, 0.0  ;;  %v9315_v61 = vadd.f32 %v9145_v15, %v4443_v54  ;;  %v4444_v46 = vmul.f32 %v9148_v11, %v4403_v32  ;;  %4589 = vrot.lane.b32.xlu0 %v4509_v12, %s10067_s27 }
 0x476   : > { %v4511_v34 = vmax.f32 %v9315_v61, 0.0  ;;  %v4484_v53 = vadd.f32 %v9152_v3, %v4444_v46  ;;  %4591 = vrot.lane.b32.xlu1 %v4510_v48, %s10067_s27 }
 0x478   : > { %v4512_v29 = vmax.f32 %v4484_v53, 0.0  ;;  %4593 = vrot.lane.b32.xlu0 %v4511_v34, %s10067_s27 }
 0x47a   : > { %4595 = vrot.lane.b32.xlu1 %v4512_v29, %s10067_s27 }
 0x4b6   : > { %v4542_v7 = vpop.permute.xlu0 %4541 }
 0x4b8   : > { %v4544_v15 = vpop.permute.xlu1 %4543 }
 0x4b9   : > { %v4597_v11 = vsel %vm523_vm7, %v4542_v7, %v4544_v15 }
 0x4ba   : > { %v4625_v24 = vmax.f32 %v4485_v39, %v4597_v11  ;;  %v4546_v38 = vpop.permute.xlu0 %4545 }
 0x4bc   : > { %4639 = vst.msk [vmem:[#allocation5] sm:$0xff] %vm2030_vm8, %v4625_v24  ;;  %v4548_v3 = vpop.permute.xlu1 %4547 }
 0x4bd   : > { %v4598_v18 = vsel %vm523_vm7, %v4546_v38, %v4548_v3 }
 0x4be   : > { %v4626_v17 = vmax.f32 %v4487_v37, %v4598_v18  ;;  %v4550_v52 = vpop.permute.xlu0 %4549 }
 0x4c0   : > { %4640 = vst.msk [vmem:[#allocation5 + $0x8] sm:$0xff] %vm2030_vm8, %v4626_v17  ;;  %v4552_v16 = vpop.permute.xlu1 %4551 }
 0x4c1   : > { %v4599_v41 = vsel %vm523_vm7, %v4550_v52, %v4552_v16 }
 0x4c2   : > { %v4627_v5 = vmax.f32 %v4489_v13, %v4599_v41  ;;  %v4554_v39 = vpop.permute.xlu0 %4553 }
 0x4c4   : > { %4641 = vst.msk [vmem:[#allocation5 + $0x10] sm:$0xff] %vm2030_vm8, %v4627_v5  ;;  %v4556_v2 = vpop.permute.xlu1 %4555 }
 0x4c5   : > { %v4600_v36 = vsel %vm523_vm7, %v4554_v39, %v4556_v2 }
 0x4c6   : > { %v4628_v62 = vmax.f32 %v4491_v21, %v4600_v36  ;;  %v4558_v37 = vpop.permute.xlu0 %4557 }
 0x4c7   : > { %v4653_v50 = vld [vmem:[#allocation5] ss:$2 sm:$0xff]  ;;  %v4660_v51 = vld [vmem:[#allocation5 + $0x1] ss:$2 sm:$0xff] }
 0x4c8   : > { %4642 = vst.msk [vmem:[#allocation5 + $0x18] sm:$0xff] %vm2030_vm8, %v4628_v62  ;;  %v4560_v23 = vpop.permute.xlu1 %4559  ;;  %v4667_v30 = vmax.f32 %v4653_v50, %v4660_v51 }
 0x4c9   : > { %v4601_v13 = vsel %vm523_vm7, %v4558_v37, %v4560_v23 }
 0x4ca   : > { %v4629_v6 = vmax.f32 %v4493_v47, %v4601_v13  ;;  %v4562_v10 = vpop.permute.xlu0 %4561  ;;  %v4681_v55 = vcombine.high %v4667_v30, %v4667_v30  ;;  %v4688_v56 = vrot.slane %v4667_v30, %v9342_v19 }
 0x4cc   : > { %4643 = vst.msk [vmem:[#allocation5 + $0x20] sm:$0xff] %vm2030_vm8, %v4629_v6  ;;  %v4564_v58 = vpop.permute.xlu1 %4563  ;;  %v4695_v21 = vrot.slane %v4681_v55, %v9342_v19  ;;  %v4696_v20 = vcombine.high %v4688_v56, %v4688_v56  ;;  %v4704_v54 = vrot.slane %v4688_v56, %v9342_v19 }
 0x4cd   : > { %v4602_v32 = vsel %vm523_vm7, %v4562_v10, %v4564_v58 }
 0x4ce   : > { %v4630_v48 = vmax.f32 %v4495_v33, %v4602_v32  ;;  %v4566_v46 = vpop.permute.xlu0 %4565  ;;  %v4697_v31 = vcombine.high %v4695_v21, %v4695_v21  ;;  %v4711_v47 = vrot.slane %v4695_v21, %v9342_v19  ;;  %v4718_v53 = vrot.slane %v4696_v20, %v9342_v19 }
 0x4cf   : > { %v4726_v29 = vcombine.high %v4704_v54, %v4704_v54  ;;  %v5024_v7 = vcombine.low %v4704_v54, %v4704_v54  ;;  %v4654_v15 = vld [vmem:[#allocation5 + $0x10] ss:$2 sm:$0xff]  ;;  %v4661_v11 = vld [vmem:[#allocation5 + $0x11] ss:$2 sm:$0xff] }
 0x4d0   : > { %4644 = vst.msk [vmem:[#allocation5 + $0x28] sm:$0xff] %vm2030_vm8, %v4630_v48  ;;  %v4568_v24 = vpop.permute.xlu1 %4567  ;;  %v4725_v38 = vrot.slane %v4697_v31, %v9342_v19  ;;  %v4727_v3 = vcombine.high %v4711_v47, %v4711_v47  ;;  %v4728_v18 = vcombine.high %v4718_v53, %v4718_v53  ;;  %v4668_v28 = vmax.f32 %v4654_v15, %v4661_v11 }
 0x4d1   : > { %v4603_v8 = vsel %vm523_vm7, %v4566_v46, %v4568_v24  ;;  %v5025_v33 = vcombine.low %v4718_v53, %v4726_v29  ;;  %v5034_v45 = vrot.slane %v5024_v7, %v9342_v19 }
 0x4d2   : > { %v4631_v59 = vmax.f32 %v4497_v35, %v4603_v8  ;;  %v4570_v17 = vpop.permute.xlu0 %4569  ;;  %v5026_v52 = vcombine.low %v4728_v18, %v4711_v47  ;;  %v5027_v16 = vcombine.low %v4725_v38, %v4727_v3  ;;  %v4730_v41 = vcombine.high %v4668_v28, %v4668_v28 }
 0x4d3   : > { %v5041_v5 = vrot.slane %v5025_v33, %v9342_v19  ;;  %v4737_v39 = vrot.slane %v4668_v28, %v9342_v19  ;;  %v7268_v6 = vcombine.high %v4725_v38, %v4725_v38 }
 0x4d4   : > { %4645 = vst.msk [vmem:[#allocation5 + $0x30] sm:$0xff] %vm2030_vm8, %v4631_v59  ;;  %v4572_v2 = vpop.permute.xlu1 %4571  ;;  %v5048_v36 = vrot.slane %v5026_v52, %v9342_v19  ;;  %v5055_v62 = vrot.slane %v5027_v16, %v9342_v19  ;;  %v4744_v9 = vrot.slane %v4730_v41, %v9342_v19 }
 0x4d5   : > { %v4604_v35 = vsel %vm523_vm7, %v4570_v17, %v4572_v2  ;;  %v5056_v37 = vcombine.low %v5034_v45, %v5041_v5  ;;  %v4745_v50 = vcombine.high %v4737_v39, %v4737_v39  ;;  %v4753_v10 = vrot.slane %v4737_v39, %v9342_v19 }
 0x4d6   : > { %v4632_v51 = vmax.f32 %v4499_v25, %v4604_v35  ;;  %v4574_v23 = vpop.permute.xlu0 %4573  ;;  %v5057_v30 = vcombine.low %v5048_v36, %v5055_v62  ;;  %v4746_v13 = vcombine.high %v4744_v9, %v4744_v9  ;;  %v4760_v55 = vrot.slane %v4744_v9, %v9342_v19 }
 0x4d7   : > { %v4767_v56 = vrot.slane %v4745_v50, %v9342_v19  ;;  %v4655_v58 = vld [vmem:[#allocation5 + $0x20] ss:$2 sm:$0xff]  ;;  %v4662_v21 = vld [vmem:[#allocation5 + $0x21] ss:$2 sm:$0xff]  ;;  %v5064_v54 = vrot.slane %v5056_v37, %v9342_v19  ;;  %v5083_v15 = vrot.slane %v7268_v6, %v9342_v19 }
 0x4d8   : > { %4646 = vst.msk [vmem:[#allocation5 + $0x38] sm:$0xff] %vm2030_vm8, %v4632_v51  ;;  %v4576_v20 = vpop.permute.xlu1 %4575  ;;  %v5071_v1 = vrot.slane %v5057_v30, %v9342_v19  ;;  %v4774_v25 = vrot.slane %v4746_v13, %v9342_v19  ;;  %v4669_v32 = vmax.f32 %v4655_v58, %v4662_v21  ;;  %v7270_v3 = vcombine.high %v4760_v55, %v4760_v55 }
 0x4d9   : > { %v4605_v48 = vsel %vm523_vm7, %v4574_v23, %v4576_v20  ;;  %v5074_v46 = vcombine.low %v4753_v10, %v4767_v56  ;;  %v7269_v31 = vcombine.high %v4753_v10, %v4767_v56 }
 0x4da   : > { %v4633_v47 = vmax.f32 %v4501_v44, %v4605_v48  ;;  %v4578_v53 = vpop.permute.xlu0 %4577  ;;  %v5072_v29 = vcombine.low %v5064_v54, %v5071_v1  ;;  %v5076_v7 = vcombine.low %v4760_v55, %v4774_v25  ;;  %v4779_v24 = vcombine.high %v4669_v32, %v4669_v32 }
 0x4db   : > { %v5090_v11 = vrot.slane %v5074_v46, %v9342_v19  ;;  %v4786_v38 = vrot.slane %v4669_v32, %v9342_v19  ;;  %v5097_v28 = vrot.slane %v7269_v31, %v9342_v19  ;;  %v4778_v41 = vcombine.high %v4774_v25, %v4774_v25 }
 0x4dc   : > { %4647 = vst.msk [vmem:[#allocation5 + $0x40] sm:$0xff] %vm2030_vm8, %v4633_v47  ;;  %v4580_v18 = vpop.permute.xlu1 %4579  ;;  %5416 = vrot.lane.b32.xlu1 %v5072_v29, %s10067_s27  ;;  %v5104_v40 = vrot.slane %v5076_v7, %v9342_v19  ;;  %v4793_v33 = vrot.slane %v4779_v24, %v9342_v19  ;;  %v5132_v2 = vrot.slane %v7270_v3, %v9342_v19 }
 0x4dd   : > { %v4606_v44 = vsel %vm523_vm7, %v4578_v53, %v4580_v18  ;;  %v5105_v8 = vcombine.low %v5083_v15, %v5090_v11  ;;  %v4794_v59 = vcombine.high %v4786_v38, %v4786_v38  ;;  %v4802_v45 = vrot.slane %v4786_v38, %v9342_v19 }
 0x4de   : > { %v4634_v17 = vmax.f32 %v4503_v22, %v4606_v44  ;;  %v4582_v52 = vpop.permute.xlu0 %4581  ;;  %v5106_v16 = vcombine.low %v5097_v28, %v5104_v40  ;;  %v4795_v9 = vcombine.high %v4793_v33, %v4793_v33  ;;  %v4809_v23 = vrot.slane %v4793_v33, %v9342_v19 }
 0x4df   : > { %v5113_v5 = vrot.slane %v5105_v8, %v9342_v19  ;;  %v4816_v39 = vrot.slane %v4794_v59, %v9342_v19  ;;  %v4656_v36 = vld [vmem:[#allocation5 + $0x30] ss:$2 sm:$0xff]  ;;  %v4663_v62 = vld [vmem:[#allocation5 + $0x31] ss:$2 sm:$0xff]  ;;  %v4824_v22 = vcombine.high %v4802_v45, %v4802_v45  ;;  %v5123_v37 = vcombine.low %v4778_v41, %v4802_v45 }
 0x4e0   : > { %4648 = vst.msk [vmem:[#allocation5 + $0x48] sm:$0xff] %vm2030_vm8, %v4634_v17  ;;  %v4584_v35 = vpop.permute.xlu1 %4583  ;;  %v5120_v14 = vrot.slane %v5106_v16, %v9342_v19  ;;  %v4670_v50 = vmax.f32 %v4656_v36, %v4663_v62  ;;  %v4823_v13 = vrot.slane %v4795_v9, %v9342_v19 }
 0x4e1   : > { %v4607_v51 = vsel %vm523_vm7, %v4582_v52, %v4584_v35  ;;  %v4826_v30 = vcombine.high %v4816_v39, %v4816_v39  ;;  %v5124_v56 = vcombine.low %v4816_v39, %v4824_v22  ;;  %v5139_v58 = vrot.slane %v5123_v37, %v9342_v19 }
 0x4e2   : > { %v4635_v6 = vmax.f32 %v4505_v27, %v4607_v51  ;;  %v4586_v10 = vpop.permute.xlu0 %4585  ;;  %v5121_v55 = vcombine.low %v5113_v5, %v5120_v14  ;;  %v4835_v20 = vrot.slane %v4670_v50, %v9342_v19  ;;  %v5171_v54 = vcombine.low %v4823_v13, %v4823_v13 }
 0x4e3   : > { %v5125_v21 = vcombine.low %v4826_v30, %v4809_v23  ;;  %v7271_v1 = vcombine.high %v4809_v23, %v4823_v13  ;;  %v5154_v32 = vcombine.low %v5132_v2, %v5139_v58  ;;  %v4828_v48 = vcombine.high %v4670_v50, %v4670_v50 }
 0x4e4   : > { %4649 = vst.msk [vmem:[#allocation5 + $0x50] sm:$0xff] %vm2030_vm8, %v4635_v6  ;;  %v4588_v25 = vpop.permute.xlu1 %4587  ;;  %5418 = vrot.lane.b32.xlu0 %v5121_v55, %s10067_s27  ;;  %v5146_v27 = vrot.slane %v5124_v56, %v9342_v19  ;;  %v4843_v31 = vcombine.high %v4835_v20, %v4835_v20  ;;  %v5181_v29 = vrot.slane %v5171_v54, %v9342_v19 }
 0x4e5   : > { %v4608_v26 = vsel %vm523_vm7, %v4586_v10, %v4588_v25  ;;  %v5153_v46 = vrot.slane %v5125_v21, %v9342_v19  ;;  %v5188_v7 = vrot.slane %v7271_v1, %v9342_v19  ;;  %v4851_v11 = vrot.slane %v4835_v20, %v9342_v19 }
 0x4e6   : > { %v4636_v47 = vmax.f32 %v4507_v43, %v4608_v26  ;;  %v4590_v53 = vpop.permute.xlu0 %4589  ;;  %v4865_v24 = vrot.slane %v4843_v31, %v9342_v19  ;;  %v4842_v18 = vrot.slane %v4828_v48, %v9342_v19  ;;  %v5162_v4 = vrot.slane %v5154_v32, %v9342_v19 }
 0x4e7   : > { %v5155_v15 = vcombine.low %v5146_v27, %v5153_v46  ;;  %v4657_v38 = vld [vmem:[#allocation5 + $0x40] ss:$2 sm:$0xff]  ;;  %v4664_v3 = vld [vmem:[#allocation5 + $0x41] ss:$2 sm:$0xff]  ;;  %v5203_v17 = vcombine.low %v5181_v29, %v5188_v7 }
 0x4e8   : > { %4650 = vst.msk [vmem:[#allocation5 + $0x58] sm:$0xff] %vm2030_vm8, %v4636_v47  ;;  %v4592_v28 = vpop.permute.xlu1 %4591  ;;  %v4671_v43 = vmax.f32 %v4657_v38, %v4664_v3  ;;  %v5173_v8 = vcombine.low %v4851_v11, %v4865_v24  ;;  %v7272_v33 = vcombine.high %v4851_v11, %v4865_v24  ;;  %v4844_v52 = vcombine.high %v4842_v18, %v4842_v18 }
 0x4e9   : > { %v4609_v40 = vsel %vm523_vm7, %v4590_v53, %v4592_v28  ;;  %v5169_v44 = vrot.slane %v5155_v15, %v9342_v19  ;;  %v4858_v16 = vrot.slane %v4842_v18, %v9342_v19  ;;  %v5211_v51 = vrot.slane %v5203_v17, %v9342_v19 }
 0x4ea   : > { %v4637_v59 = vmax.f32 %v4509_v12, %v4609_v40  ;;  %v5195_v45 = vrot.slane %v5173_v8, %v9342_v19  ;;  %v5202_v5 = vrot.slane %v7272_v33, %v9342_v19  ;;  %v4884_v39 = vrot.slane %v4671_v43, %v9342_v19  ;;  %v4594_v2 = vpop.permute.xlu0 %4593 }
 0x4eb   : > { %v5170_v41 = vcombine.low %v5162_v4, %v5169_v44  ;;  %v4872_v62 = vrot.slane %v4844_v52, %v9342_v19  ;;  %v4874_v9 = vcombine.high %v4858_v16, %v4858_v16  ;;  %v5220_v49 = vcombine.low %v4858_v16, %v4858_v16 }
 0x4ec   : > { %4651 = vst.msk [vmem:[#allocation5 + $0x60] sm:$0xff] %vm2030_vm8, %v4637_v59  ;;  %v4596_v36 = vpop.permute.xlu1 %4595  ;;  %v4877_v12 = vcombine.high %v4671_v43, %v4671_v43  ;;  %v5204_v14 = vcombine.low %v5195_v45, %v5202_v5  ;;  %v4892_v22 = vcombine.high %v4884_v39, %v4884_v39  ;;  %v4900_v37 = vrot.slane %v4884_v39, %v9342_v19 }
 0x4ed   : > { %v4610_v35 = vsel %vm523_vm7, %v4594_v2, %v4596_v36  ;;  %5420 = vrot.lane.b32.xlu0 %v5170_v41, %s10067_s27  ;;  %v4876_v23 = vcombine.high %v4872_v62, %v4872_v62  ;;  %v5221_v30 = vcombine.low %v4872_v62, %v4874_v9  ;;  %v5230_v20 = vrot.slane %v5220_v49, %v9342_v19 }
 0x4ee   : > { %v4638_v50 = vmax.f32 %v4511_v34, %v4610_v35  ;;  %v5218_v13 = vrot.slane %v5204_v14, %v9342_v19  ;;  %v4914_v6 = vrot.slane %v4892_v22, %v9342_v19  ;;  %v4922_v10 = vcombine.high %v4900_v37, %v4900_v37 }
 0x4ef   : > { %v4658_v55 = vld [vmem:[#allocation5 + $0x50] ss:$2 sm:$0xff]  ;;  %v4665_v56 = vld [vmem:[#allocation5 + $0x51] ss:$2 sm:$0xff]  ;;  %v4891_v58 = vrot.slane %v4877_v12, %v9342_v19  ;;  %v5222_v21 = vcombine.low %v4876_v23, %v4900_v37  ;;  %v5237_v61 = vrot.slane %v5221_v30, %v9342_v19 }
 0x4f0   : > { %4652 = vst.msk [vmem:[#allocation5 + $0x68] sm:$0xff] %vm2030_vm8, %v4638_v50  ;;  %v4672_v34 = vmax.f32 %v4658_v55, %v4665_v56  ;;  %v5219_v54 = vcombine.low %v5211_v51, %v5218_v13  ;;  %v5223_v1 = vcombine.low %v4914_v6, %v4922_v10  ;;  %v7273_v27 = vcombine.high %v4914_v6, %v4914_v6 }
 0x4f1   : > { %v4893_v25 = vcombine.high %v4891_v58, %v4891_v58  ;;  %v5252_v32 = vcombine.low %v5230_v20, %v5237_v61  ;;  %v4907_v48 = vrot.slane %v4891_v58, %v9342_v19  ;;  %v5244_v46 = vrot.slane %v5222_v21, %v9342_v19 }
 0x4f2   : > { %v4933_v26 = vrot.slane %v4672_v34, %v9342_v19  ;;  %5422 = vrot.lane.b32.xlu1 %v5219_v54, %s10067_s27  ;;  %v5251_v31 = vrot.slane %v5223_v1, %v9342_v19  ;;  %v4926_v53 = vcombine.high %v4672_v34, %v4672_v34  ;;  %v5279_v28 = vrot.slane %v7273_v27, %v9342_v19 }
 0x4f3   : > { %v4921_v47 = vrot.slane %v4893_v25, %v9342_v19  ;;  %v5260_v3 = vrot.slane %v5252_v32, %v9342_v19 }
 0x4f4   : > { %v4941_v29 = vcombine.high %v4933_v26, %v4933_v26  ;;  %v4949_v7 = vrot.slane %v4933_v26, %v9342_v19  ;;  %v5253_v15 = vcombine.low %v5244_v46, %v5251_v31  ;;  %v4940_v38 = vrot.slane %v4926_v53, %v9342_v19 }
 0x4f5   : > { %v5270_v11 = vcombine.low %v4907_v48, %v4921_v47  ;;  %v7274_v24 = vcombine.high %v4907_v48, %v4921_v47 }
 0x4f6   : > { %v4963_v18 = vrot.slane %v4941_v29, %v9342_v19  ;;  %v5267_v4 = vrot.slane %v5253_v15, %v9342_v19  ;;  %v4942_v8 = vcombine.high %v4940_v38, %v4940_v38  ;;  %v7275_v33 = vcombine.high %v4949_v7, %v4949_v7 }
 0x4f7   : > { %v5286_v43 = vrot.slane %v5270_v11, %v9342_v19  ;;  %v4659_v40 = vld [vmem:[#allocation5 + $0x60] ss:$2 sm:$0xff]  ;;  %v4666_v44 = vld [vmem:[#allocation5 + $0x61] ss:$2 sm:$0xff]  ;;  %v4956_v52 = vrot.slane %v4940_v38, %v9342_v19  ;;  %v5293_v45 = vrot.slane %v7274_v24, %v9342_v19 }
 0x4f8   : > { %v5272_v59 = vcombine.low %v4949_v7, %v4963_v18  ;;  %v4673_v17 = vmax.f32 %v4659_v40, %v4666_v44  ;;  %v4973_v16 = vcombine.high %v4963_v18, %v4963_v18  ;;  %v5268_v41 = vcombine.low %v5260_v3, %v5267_v4  ;;  %v5468_v7 = vld [vmem:[#allocation4 + $0x28] sm:$0x7e] }
 0x4f9   : > { %v5301_v5 = vcombine.low %v5279_v28, %v5286_v43  ;;  %v4970_v39 = vrot.slane %v4942_v8, %v9342_v19  ;;  %v4972_v36 = vcombine.high %v4956_v52, %v4956_v52  ;;  %v5328_v6 = vrot.slane %v7275_v33, %v9342_v19  ;;  %v5484_v18 = vld [vmem:[#allocation4 + $0x28] sm:$0xfc]  ;;  %v7537_v8 = vld [vmem:[%s10043_s7 + $0x70] ss:$8 sps:$4 sm:$0xff]  }
 0x4fa   : > { %v5300_v2 = vrot.slane %v5272_v59, %v9342_v19  ;;  %v4982_v62 = vrot.slane %v4673_v17, %v9342_v19  ;;  %v5319_v9 = vcombine.low %v4973_v16, %v4956_v52  ;;  %5424 = vrot.lane.b32.xlu0 %v5268_v41, %s10067_s27  ;;  %v4975_v12 = vcombine.high %v4673_v17, %v4673_v17  ;;  %v5466_v43 = vld [vmem:[#allocation4 + $0x8] sm:$0x7e]  ;;  %v7545_v16 = vld [vmem:[%s10043_s7 + $0x54] ss:$8 sps:$4 sm:$0xff]  }
 0x4fb   : > { %v4974_v49 = vcombine.high %v4970_v39, %v4970_v39  ;;  %v5320_v22 = vcombine.low %v4970_v39, %v4972_v36  ;;  %v5309_v23 = vrot.slane %v5301_v5, %v9342_v19  ;;  %v5516_v38 = vrot.slane %v5468_v7, 1  ;;  %v5482_v44 = vld [vmem:[#allocation4 + $0x8] sm:$0xfc]  ;;  %v7543_v5 = vld [vmem:[%s10043_s7 + $0x50] ss:$8 sps:$4 sm:$0xff]  }
 0x4fc   : > { %v5302_v35 = vcombine.low %v5293_v45, %v5300_v2  ;;  %v4998_v14 = vrot.slane %v4982_v62, %v9342_v19  ;;  %v5335_v37 = vrot.slane %v5319_v9, %v9342_v19  ;;  %v4989_v50 = vrot.slane %v4975_v12, %v9342_v19  ;;  %v5470_v59 = vld [vmem:[#allocation4 + $0x48] sm:$0x7e]  ;;  %v7558_v2 = vld [vmem:[%s10043_s7 + $0x170] ss:$8 sps:$4 sm:$0xff]   ;;  %v7560_v36 = vld [vmem:[%s10043_s7 + $0x174] ss:$8 sps:$4 sm:$0xff]  }
 0x4fd   : > { %v4990_v51 = vcombine.high %v4982_v62, %v4982_v62  ;;  %v5342_v58 = vrot.slane %v5320_v22, %v9342_v19  ;;  %v5604_v4 = vrot.slane %v5484_v18, 2  ;;  %v5514_v40 = vrot.slane %v5466_v43, 1  ;;  %v7540_v17 = vld [vmem:[%s10043_s7 + $0x60] ss:$8 sps:$4 sm:$0xff]   ;;  %v7542_v52 = vld [vmem:[%s10043_s7 + $0x64] ss:$8 sps:$4 sm:$0xff]   ;;  %6635 = vmatprep.subr.bf16.mxu1 %v7560_v36 }
 0x4fe   : > { %v5316_v30 = vrot.slane %v5302_v35, %v9342_v19  ;;  %v5321_v13 = vcombine.low %v4974_v49, %v4998_v14  ;;  %v4991_v10 = vcombine.high %v4989_v50, %v4989_v50  ;;  %v5350_v20 = vcombine.low %v5328_v6, %v5335_v37  ;;  %v5486_v45 = vld [vmem:[#allocation4 + $0x48] sm:$0xfc]  ;;  %6636 = vmatpush1.bf16.msra.mxu1 %v7558_v2  ;;  %v7572_v22 = vld [vmem:[%s10043_s7 + $0x154] ss:$8 sps:$4 sm:$0xff]   ;;  %v7591_v2 = vld [vmem:[%s10043_s7 + $0xb0] ss:$8 sps:$4 sm:$0xff]  }
 0x4ff   : > { %v5012_v55 = vrot.slane %v4990_v51, %v9342_v19  ;;  %v5005_v61 = vrot.slane %v4989_v50, %v9342_v19  ;;  %v5602_v33 = vrot.slane %v5482_v44, 2  ;;  %v5518_v41 = vrot.slane %v5470_v59, 1  ;;  %v7548_v39 = vld [vmem:[%s10043_s7 + $0x44] ss:$8 sps:$4 sm:$0xff]   ;;  %v7546_v12 = vld [vmem:[%s10043_s7 + $0x40] ss:$8 sps:$4 sm:$0xff]  }
 0x500   : > { %v5317_v56 = vcombine.low %v5309_v23, %v5316_v30  ;;  %v5349_v21 = vrot.slane %v5321_v13, %v9342_v19  ;;  %v5019_v34 = vrot.slane %v4991_v10, %v9342_v19  ;;  %v5358_v46 = vrot.slane %v5350_v20, %v9342_v19  ;;  %v7566_v62 = vld [vmem:[%s10043_s7 + $0x164] ss:$8 sps:$4 sm:$0xff]   ;;  %v7564_v35 = vld [vmem:[%s10043_s7 + $0x160] ss:$8 sps:$4 sm:$0xff]   ;;  %v7549_v51 = vld [vmem:[%s10043_s7 + $0x30] ss:$8 sps:$4 sm:$0xff]  }
 0x501   : > { %v5367_v54 = vcombine.low %v5012_v55, %v5012_v55  ;;  %v7276_v1 = vcombine.high %v4998_v14, %v5012_v55  ;;  %v5606_v9 = vrot.slane %v5486_v45, 2  ;;  %v5472_v49 = vld [vmem:[#allocation4 + $0x68] sm:$0x7e]  ;;  %v7551_v14 = vld [vmem:[%s10043_s7 + $0x34] ss:$8 sps:$4 sm:$0xff]   ;;  %6637 = vmatprep.subr.bf16.mxu1 %v7566_v62 }
 0x502   : > { %5426 = vrot.lane.b32.xlu1 %v5317_v56, %s10067_s27  ;;  %v5351_v25 = vcombine.low %v5342_v58, %v5349_v21  ;;  %v5369_v32 = vcombine.low %v5005_v61, %v5019_v34  ;;  %v7277_v48 = vcombine.high %v5005_v61, %v5019_v34  ;;  %v5520_v37 = vrot.slane %v5472_v49, 1  ;;  %v5488_v50 = vld [vmem:[#allocation4 + $0x68] sm:$0xfc]  ;;  %6638 = vmatpush1.bf16.msra.mxu1 %v7564_v35  ;;  %v7570_v23 = vld [vmem:[%s10043_s7 + $0x150] ss:$8 sps:$4 sm:$0xff]  }
 0x503   : > { %v5377_v26 = vrot.slane %v5367_v54, %v9342_v19  ;;  %v5384_v27 = vrot.slane %v7276_v1, %v9342_v19  ;;  %v7554_v30 = vld [vmem:[%s10043_s7 + $0x24] ss:$8 sps:$4 sm:$0xff]   ;;  %6639 = vmatprep.subr.bf16.mxu1 %v7572_v22  ;;  %v5608_v13 = vrot.slane %v5488_v50, 2  ;;  %v7552_v10 = vld [vmem:[%s10043_s7 + $0x20] ss:$8 sps:$4 sm:$0xff]  }
 0x504   : > { %v5365_v31 = vrot.slane %v5351_v25, %v9342_v19  ;;  %v5391_v47 = vrot.slane %v5369_v32, %v9342_v19  ;;  %v5398_v53 = vrot.slane %v7277_v48, %v9342_v19  ;;  %v5474_v6 = vld [vmem:[#allocation4 + $0x88] sm:$0x7e]  ;;  %v7557_v55 = vld [vmem:[%s10043_s7 + $0x14] ss:$8 sps:$4 sm:$0xff]   ;;  %v7555_v21 = vld [vmem:[%s10043_s7 + $0x10] ss:$8 sps:$4 sm:$0xff]  }
 0x505   : > { %v5399_v29 = vcombine.low %v5377_v26, %v5384_v27  ;;  %v5522_v56 = vrot.slane %v5474_v6, 1  ;;  %v5476_v58 = vld [vmem:[#allocation4 + $0xa8] sm:$0x7e]  ;;  %v7569_v1 = vld [vmem:[%s10043_s7 + $0xf4] ss:$8 sps:$4 sm:$0xff]  }
 0x506   : > { %v5366_v15 = vcombine.low %v5358_v46, %v5365_v31  ;;  %v5400_v11 = vcombine.low %v5391_v47, %v5398_v53  ;;  %6640 = vmatpush1.bf16.msra.mxu1 %v7570_v23  ;;  %v7563_v20 = vld [vmem:[%s10043_s7 + $0x4] ss:$8 sps:$4 sm:$0xff]   ;;  %v5524_v61 = vrot.slane %v5476_v58, 1  ;;  %v7561_v54 = vld [vmem:[%s10043_s7] ss:$8 sps:$4 sm:$0xff]  }
 0x507   : > { %v5407_v24 = vrot.slane %v5399_v29, %v9342_v19  ;;  %v5490_v34 = vld [vmem:[#allocation4 + $0x88] sm:$0xfc]  ;;  %v7567_v48 = vld [vmem:[%s10043_s7 + $0xf0] ss:$8 sps:$4 sm:$0xff]   ;;  %v7593_v36 = vld [vmem:[%s10043_s7 + $0xb4] ss:$8 sps:$4 sm:$0xff]  }
 0x508   : > { %5428 = vrot.lane.b32.xlu1 %v5366_v15, %s10067_s27  ;;  %v5414_v3 = vrot.slane %v5400_v11, %v9342_v19  ;;  %v7539_v19 = vld [vmem:[%s10043_s7 + $0x74] ss:$8 sps:$4 sm:$0xff]   ;;  %v5610_v25 = vrot.slane %v5490_v34, 2  ;;  %v5492_v32 = vld [vmem:[#allocation4 + $0xa8] sm:$0xfc] }
 0x509   : > { %6572 = vmatprep.subr.bf16.mxu0 %v7539_v19  ;;  %v5612_v26 = vrot.slane %v5492_v32, 2  ;;  %v5480_v27 = vld [vmem:[#allocation4 + $0xe8] sm:$0x7e]  ;;  %v7582_v44 = vld [vmem:[%s10043_s7 + $0x130] ss:$8 sps:$4 sm:$0xff]  }
 0x50a   : > { %v5415_v28 = vcombine.low %v5407_v24, %v5414_v3  ;;  %6573 = vmatpush1.bf16.msra.mxu0 %v7537_v8  ;;  %v5528_v46 = vrot.slane %v5480_v27, 1  ;;  %v5496_v31 = vld [vmem:[#allocation4 + $0xe8] sm:$0xfc]  ;;  %v7584_v19 = vld [vmem:[%s10043_s7 + $0x134] ss:$8 sps:$4 sm:$0xff]  }
 0x50b   : > { %6574 = vmatprep.subr.bf16.mxu0 %v7542_v52  ;;  %v5616_v47 = vrot.slane %v5496_v31, 2  ;;  %v5478_v53 = vld [vmem:[#allocation4 + $0xc8] sm:$0x7e]  ;;  %v7596_v49 = vld [vmem:[%s10043_s7 + $0x114] ss:$8 sps:$4 sm:$0xff]  }
 0x50c   : > { %5535 = vrot.lane.b32.xlu1 %v5516_v38, %s10067_s27  ;;  %5430 = vrot.lane.b32.xlu0 %v5415_v28, %s10067_s27  ;;  %v5526_v29 = vrot.slane %v5478_v53, 1  ;;  %v5494_v7 = vld [vmem:[#allocation4 + $0xc8] sm:$0xfc]  ;;  %v7579_v28 = vld [vmem:[%s10043_s7 + $0xd0] ss:$8 sps:$4 sm:$0xff]  }
 0x50d   : > { %v5614_v15 = vrot.slane %v5494_v7, 2  ;;  %v7573_v24 = vld [vmem:[%s10043_s7 + $0xe0] ss:$8 sps:$4 sm:$0xff]   ;;  %v7575_v38 = vld [vmem:[%s10043_s7 + $0xe4] ss:$8 sps:$4 sm:$0xff]  }
 0x50e   : > { %6575 = vmatpush1.bf16.msra.mxu0 %v7540_v17  ;;  %v7576_v3 = vld [vmem:[%s10043_s7 + $0x140] ss:$8 sps:$4 sm:$0xff]   ;;  %v7578_v18 = vld [vmem:[%s10043_s7 + $0x144] ss:$8 sps:$4 sm:$0xff]   ;;  %v7603_v6 = vld [vmem:[%s10043_s7 + $0x90] ss:$8 sps:$4 sm:$0xff]  }
 0x50f   : > { %6576 = vmatprep.subr.bf16.mxu0 %v7545_v16  ;;  %6641 = vmatprep.subr.bf16.mxu1 %v7578_v18  ;;  %v7585_v59 = vld [vmem:[%s10043_s7 + $0xc0] ss:$8 sps:$4 sm:$0xff]   ;;  %v7587_v17 = vld [vmem:[%s10043_s7 + $0xc4] ss:$8 sps:$4 sm:$0xff]   ;;  %v7614_v58 = vld [vmem:[%s10043_s7 + $0x194] ss:$8 sps:$4 sm:$0xff]  }
 0x510   : > { %5623 = vrot.lane.b32.xlu1 %v5604_v4, %s10065_s18  ;;  %6642 = vmatpush1.bf16.msra.mxu1 %v7576_v3  ;;  %v7581_v4 = vld [vmem:[%s10043_s7 + $0xd4] ss:$8 sps:$4 sm:$0xff]   ;;  %v7588_v52 = vld [vmem:[%s10043_s7 + $0x120] ss:$8 sps:$4 sm:$0xff]   ;;  %v7590_v16 = vld [vmem:[%s10043_s7 + $0x124] ss:$8 sps:$4 sm:$0xff]  }
 0x511   : > { %6643 = vmatprep.subr.bf16.mxu1 %v7584_v19  ;;  %v7602_v35 = vld [vmem:[%s10043_s7 + $0x104] ss:$8 sps:$4 sm:$0xff]   ;;  %v7597_v22 = vld [vmem:[%s10043_s7 + $0xa0] ss:$8 sps:$4 sm:$0xff]  }
 0x512   : > { %6577 = vmatpush1.bf16.msra.mxu0 %v7543_v5  ;;  %v7608_v23 = vld [vmem:[%s10043_s7 + $0x1a4] ss:$8 sps:$4 sm:$0xff]  }
 0x513   : > { %6578 = vmatprep.subr.bf16.mxu0 %v7548_v39 }
 0x514   : > { %5531 = vrot.lane.b32.xlu1 %v5514_v40, %s10067_s27  ;;  %6644 = vmatpush1.bf16.msra.mxu1 %v7582_v44  ;;  %s461_s27 = sand.u32 1, %s7687_s30  }
 0x515   : > { %6645 = vmatprep.subr.bf16.mxu1 %v7590_v16  ;;  %s7157_s2 = sshll.u32 %s461_s27, 3 }
 0x516   : > { %6579 = vmatpush1.bf16.msra.mxu0 %v7546_v12  ;;  %v7599_v12 = vld [vmem:[%s10043_s7 + $0xa4] ss:$8 sps:$4 sm:$0xff]  }
 0x517   : > { %6580 = vmatprep.subr.bf16.mxu0 %v7551_v14 }
 0x518   : > { %5619 = vrot.lane.b32.xlu1 %v5602_v33, %s10065_s18  ;;  %6646 = vmatpush1.bf16.msra.mxu1 %v7588_v52 }
 0x519   : > { %6647 = vmatprep.subr.bf16.mxu1 %v7596_v49 }
 0x51a   : > { %6581 = vmatpush1.bf16.msra.mxu0 %v7549_v51  ;;  %v7605_v51 = vld [vmem:[%s10043_s7 + $0x94] ss:$8 sps:$4 sm:$0xff]  }
 0x51b   : > { %6582 = vmatprep.subr.bf16.mxu0 %v7554_v30 }
 0x51c   : > { %5539 = vrot.lane.b32.xlu1 %v5518_v41, %s10092_s1 }
 0x51e   : > { %6583 = vmatpush1.bf16.msra.mxu0 %v7552_v10  ;;  %v7606_v10 = vld [vmem:[%s10043_s7 + $0x1a0] ss:$8 sps:$4 sm:$0xff]  }
 0x51f   : > { %6584 = vmatprep.subr.bf16.mxu0 %v7557_v55 }
 0x520   : > { %5627 = vrot.lane.b32.xlu1 %v5606_v9, %s10093_s20  ;;  %v7594_v9 = vld [vmem:[%s10043_s7 + $0x110] ss:$8 sps:$4 sm:$0xff]  }
 0x521   : > { %6648 = vmatpush1.bf16.msra.mxu1 %v7594_v9 }
 0x522   : > { %6585 = vmatpush1.bf16.msra.mxu0 %v7555_v21  ;;  %6649 = vmatprep.subr.bf16.mxu1 %v7602_v35  ;;  %v7609_v21 = vld [vmem:[%s10043_s7 + $0x80] ss:$8 sps:$4 sm:$0xff]  }
 0x523   : > { %6586 = vmatprep.subr.bf16.mxu0 %v7563_v20  ;;  %v7612_v20 = vld [vmem:[%s10043_s7 + $0x190] ss:$8 sps:$4 sm:$0xff]  }
 0x524   : > { %5543 = vrot.lane.b32.xlu1 %v5520_v37, %s10092_s1  ;;  %v7600_v37 = vld [vmem:[%s10043_s7 + $0x100] ss:$8 sps:$4 sm:$0xff]  }
 0x525   : > { %6650 = vmatpush1.bf16.msra.mxu1 %v7600_v37 }
 0x526   : > { %6587 = vmatpush1.bf16.msra.mxu0 %v7561_v54  ;;  %6661 = vmatprep.subr.bf16.mxu1 %v7608_v23 }
 0x527   : > { %6588 = vmatprep.subr.bf16.mxu0 %v7569_v1  ;;  %v7617_v1 = vld [vmem:[%s10043_s7 + $0x184] ss:$8 sps:$4 sm:$0xff]  }
 0x528   : > { %5631 = vrot.lane.b32.xlu1 %v5608_v13, %s10093_s20 }
 0x529   : > { %6662 = vmatpush2.bf16.msra.mxu1 %v7606_v10 }
 0x52a   : > { %6589 = vmatpush2.bf16.msra.mxu0 %v7567_v48  ;;  %6663 = vmatprep.subr.bf16.mxu1 %v7614_v58 }
 0x52b   : > { %6590 = vmatprep.subr.bf16.mxu0 %v7575_v38 }
 0x52c   : > { %5547 = vrot.lane.b32.xlu1 %v5522_v56, %s10092_s1  ;;  %v7611_v56 = vld [vmem:[%s10043_s7 + $0x84] ss:$8 sps:$4 sm:$0xff]  }
 0x52d   : > { %6664 = vmatpush2.bf16.msra.mxu1 %v7612_v20 }
 0x52e   : > { %6591 = vmatpush2.bf16.msra.mxu0 %v7573_v24  ;;  %6665 = vmatprep.subr.bf16.mxu1 %v7617_v1 }
 0x52f   : > { %6592 = vmatprep.subr.bf16.mxu0 %v7581_v4 }
 0x530   : > { %5551 = vrot.lane.b32.xlu1 %v5524_v61, %s10092_s1 }
 0x532   : > { %6593 = vmatpush2.bf16.msra.mxu0 %v7579_v28 }
 0x533   : > { %6594 = vmatprep.subr.bf16.mxu0 %v7587_v17 }
 0x534   : > { %5635 = vrot.lane.b32.xlu1 %v5610_v25, %s10093_s20  ;;  %v7615_v25 = vld [vmem:[%s10043_s7 + $0x180] ss:$8 sps:$4 sm:$0xff]  }
 0x535   : > { %6666 = vmatpush2.bf16.msra.mxu1 %v7615_v25 }
 0x536   : > { %6595 = vmatpush2.bf16.msra.mxu0 %v7585_v59 }
 0x537   : > { %6596 = vmatprep.subr.bf16.mxu0 %v7593_v36 }
 0x538   : > { %5639 = vrot.lane.b32.xlu1 %v5612_v26, %s10093_s20 }
 0x53a   : > { %6597 = vmatpush2.bf16.msra.mxu0 %v7591_v2 }
 0x53b   : > { %6598 = vmatprep.subr.bf16.mxu0 %v7599_v12 }
 0x53c   : > { %5559 = vrot.lane.b32.xlu1 %v5528_v46, %s10092_s1 }
 0x53e   : > { %6599 = vmatpush2.bf16.msra.mxu0 %v7597_v22 }
 0x53f   : > { %6600 = vmatprep.subr.bf16.mxu0 %v7605_v51 }
 0x540   : > { %5647 = vrot.lane.b32.xlu1 %v5616_v47, %s10093_s20 }
 0x542   : > { %6601 = vmatpush2.bf16.msra.mxu0 %v7603_v6 }
 0x543   : > { %6602 = vmatprep.subr.bf16.mxu0 %v7611_v56 }
 0x544   : > { %5555 = vrot.lane.b32.xlu1 %v5526_v29, %s10092_s1 }
 0x546   : > { %6603 = vmatpush2.bf16.msra.mxu0 %v7609_v21 }
 0x547   : > { %6971 = vmatprep.subr.bf16.mxu0 %v10091_v42 }
 0x548   : > { %5643 = vrot.lane.b32.xlu1 %v5614_v15, %s10093_s20 }
 0x54e   : > { %v5417_v11 = vpop.permute.xlu1 %5416 }
 0x54f   : > { %5441 = vst.msk [vmem:[#allocation4] sm:$0xfe] %vm5440_vm11, %v5417_v11 }
 0x556   : > { %v5419_v43 = vpop.permute.xlu0 %5418  ;;  %v5465_v40 = vld [vmem:[#allocation4] sm:$0x7e] }
 0x557   : > { %5442 = vst.msk [vmem:[#allocation4 + $0x20] sm:$0xfe] %vm5440_vm11, %v5419_v43  ;;  %v5513_v8 = vrot.slane %v5465_v40, 1  ;;  %v5481_v33 = vld [vmem:[#allocation4] sm:$0xfc] }
 0x558   : > { %v5601_v41 = vrot.slane %v5481_v33, 2  ;;  %v5449_v37 = vld [vmem:[#allocation4] sm:$0x3f] }
 0x559   : > { %5529 = vrot.lane.b32.xlu0 %v5513_v8, %s10092_s1 }
 0x55d   : > { %5617 = vrot.lane.b32.xlu0 %v5601_v41, %s10093_s20 }
 0x55e   : > { %v5467_v45 = vld [vmem:[#allocation4 + $0x20] sm:$0x7e] }
 0x55f   : > { %v5421_v5 = vpop.permute.xlu0 %5420  ;;  %v5515_v39 = vrot.slane %v5467_v45, 1  ;;  %v5483_v62 = vld [vmem:[#allocation4 + $0x20] sm:$0xfc] }
 0x560   : > { %5443 = vst.msk [vmem:[#allocation4 + $0x40] sm:$0xfe] %vm5440_vm11, %v5421_v5  ;;  %v5603_v14 = vrot.slane %v5483_v62, 2  ;;  %v5452_v5 = vld [vmem:[#allocation4 + $0x28] sm:$0x3f] }
 0x561   : > { %5533 = vrot.lane.b32.xlu0 %v5515_v39, %s10092_s1  ;;  %v5450_v39 = vld [vmem:[#allocation4 + $0x8] sm:$0x3f]  ;;  %v5451_v12 = vld [vmem:[#allocation4 + $0x20] sm:$0x3f] }
 0x564   : > { %v5423_v50 = vpop.permute.xlu1 %5422 }
 0x565   : > { %5621 = vrot.lane.b32.xlu0 %v5603_v14, %s10093_s20  ;;  %5444 = vst.msk [vmem:[#allocation4 + $0x60] sm:$0xfe] %vm5440_vm11, %v5423_v50 }
 0x567   : > { %v5469_v30 = vld [vmem:[#allocation4 + $0x40] sm:$0x7e] }
 0x568   : > { %v5517_v13 = vrot.slane %v5469_v30, 1  ;;  %v5485_v55 = vld [vmem:[#allocation4 + $0x40] sm:$0xfc] }
 0x569   : > { %v5605_v61 = vrot.slane %v5485_v55, 2 }
 0x56a   : > { %5537 = vrot.lane.b32.xlu0 %v5517_v13, %s10092_s1 }
 0x56c   : > { %v5425_v34 = vpop.permute.xlu0 %5424  ;;  %v5471_v54 = vld [vmem:[#allocation4 + $0x60] sm:$0x7e] }
 0x56d   : > { %5445 = vst.msk [vmem:[#allocation4 + $0x80] sm:$0xfe] %vm5440_vm11, %v5425_v34  ;;  %v5519_v32 = vrot.slane %v5471_v54, 1  ;;  %v5487_v48 = vld [vmem:[#allocation4 + $0x60] sm:$0xfc] }
 0x56e   : > { %5625 = vrot.lane.b32.xlu0 %v5605_v61, %s10093_s20  ;;  %v5607_v27 = vrot.slane %v5487_v48, 2  ;;  %v5454_v34 = vld [vmem:[#allocation4 + $0x48] sm:$0x3f] }
 0x572   : > { %5541 = vrot.lane.b32.xlu0 %v5519_v32, %s10092_s1 }
 0x574   : > { %v5427_v26 = vpop.permute.xlu1 %5426  ;;  %v5473_v46 = vld [vmem:[#allocation4 + $0x80] sm:$0x7e] }
 0x575   : > { %5446 = vst.msk [vmem:[#allocation4 + $0xa0] sm:$0xfe] %vm5440_vm11, %v5427_v26  ;;  %v5521_v31 = vrot.slane %v5473_v46, 1  ;;  %v5489_v47 = vld [vmem:[#allocation4 + $0x80] sm:$0xfc] }
 0x576   : > { %5629 = vrot.lane.b32.xlu0 %v5607_v27, %s10093_s20  ;;  %v5609_v29 = vrot.slane %v5489_v47, 2 }
 0x57a   : > { %5545 = vrot.lane.b32.xlu0 %v5521_v31, %s10092_s1  ;;  %v5429_v53 = vpop.permute.xlu1 %5428  ;;  %v9704_v31 = vld [vmem:[#allocation4 + $0x40] sm:$0x3f] }
 0x57b   : > { %5447 = vst.msk [vmem:[#allocation4 + $0xc0] sm:$0xfe] %vm5440_vm11, %v5429_v53 }
 0x57c   : > { %v5475_v7 = vld [vmem:[#allocation4 + $0xa0] sm:$0x7e] }
 0x57d   : > { %v5523_v11 = vrot.slane %v5475_v7, 1  ;;  %v5491_v24 = vld [vmem:[#allocation4 + $0xa0] sm:$0xfc] }
 0x57e   : > { %5633 = vrot.lane.b32.xlu0 %v5609_v29, %s10093_s20  ;;  %v5431_v15 = vpop.permute.xlu0 %5430  ;;  %v5611_v38 = vrot.slane %v5491_v24, 2  ;;  %v5536_v19 = vpop.permute.xlu1 %5535 }
 0x57f   : > { %5448 = vst.msk [vmem:[#allocation4 + $0xe0] sm:$0xfe] %vm5440_vm11, %v5431_v15 }
 0x582   : > { %5549 = vrot.lane.b32.xlu0 %v5523_v11, %s10092_s1  ;;  %v5477_v3 = vld [vmem:[#allocation4 + $0xc0] sm:$0x7e]  ;;  %v5624_v33 = vpop.permute.xlu1 %5623 }
 0x583   : > { %v5525_v18 = vrot.slane %v5477_v3, 1  ;;  %v5493_v44 = vld [vmem:[#allocation4 + $0xc0] sm:$0xfc] }
 0x584   : > { %v5613_v8 = vrot.slane %v5493_v44, 2 }
 0x586   : > { %5637 = vrot.lane.b32.xlu0 %v5611_v38, %s10093_s20  ;;  %v5479_v28 = vld [vmem:[#allocation4 + $0xe0] sm:$0x7e]  ;;  %v5532_v59 = vpop.permute.xlu1 %5531 }
 0x587   : > { %v5527_v4 = vrot.slane %v5479_v28, 1  ;;  %v5495_v43 = vld [vmem:[#allocation4 + $0xe0] sm:$0xfc] }
 0x588   : > { %v5615_v40 = vrot.slane %v5495_v43, 2 }
 0x58a   : > { %5553 = vrot.lane.b32.xlu0 %v5525_v18, %s10092_s1  ;;  %v5620_v17 = vpop.permute.xlu1 %5619 }
 0x58e   : > { %5557 = vrot.lane.b32.xlu0 %v5527_v4, %s10092_s1  ;;  %v5540_v52 = vpop.permute.xlu1 %5539 }
 0x592   : > { %5645 = vrot.lane.b32.xlu0 %v5615_v40, %s10093_s20  ;;  %v5628_v41 = vpop.permute.xlu1 %5627 }
 0x596   : > { %5641 = vrot.lane.b32.xlu0 %v5613_v8, %s10093_s20  ;;  %v9688_v2 = vpop.permute.xlu1 %5543  ;;  %s7708_s20 = smov 72  }
 0x59a   : > { %v5632_v6 = vpop.permute.xlu1 %5631 }
 0x59e   : > { %v9709_v53 = vpop.permute.xlu1 %5547 }
 0x5cb   : > { %v5530_v16 = vpop.permute.xlu0 %5529 }
 0x5cc   : > { %v5561_v9 = vsel %vm523_vm7, %v5530_v16, %v5532_v59  ;;  %v5666_v49 = vsel %vm523_vm7, %v5450_v39, %v5530_v16 }
 0x5cd   : > { %v5707_v23 = vcombine.high %v5449_v37, %v5666_v49  ;;  %v5706_v54 = vcombine.low %v5449_v37, %v5666_v49 }
 0x5cf   : > { %v5618_v45 = vpop.permute.xlu0 %5617  ;;  %v5723_v1 = vrot.slane %v5707_v23, %v8585_v0  ;;  %v5716_v11 = vrot.slane %v5706_v54, %v8585_v0 }
 0x5d0   : > { %v5650_v35 = vsel %vm5649_vm12, %v5618_v45, %v5620_v17  ;;  %v5674_v14 = vsel %vm5649_vm12, %v5561_v9, %v5618_v45 }
 0x5d1   : > { %v5709_v10 = vcombine.high %v5674_v14, %v5650_v35  ;;  %v5708_v32 = vcombine.low %v5674_v14, %v5650_v35  ;;  %v5996_v17 = vrot.slane %v5716_v11, %v8585_v0  ;;  %v5456_v35 = vld [vmem:[#allocation4 + $0x68] sm:$0x3f] }
 0x5d2   : > { %v5460_v11 = vld [vmem:[#allocation4 + $0xa8] sm:$0x3f] }
 0x5d3   : > { %v5534_v36 = vpop.permute.xlu0 %5533  ;;  %v5737_v48 = vrot.slane %v5709_v10, %v8585_v0  ;;  %v5730_v3 = vrot.slane %v5708_v32, %v8585_v0 }
 0x5d4   : > { %v5667_v62 = vsel %vm523_vm7, %v5452_v5, %v5534_v36  ;;  %v5562_v50 = vsel %vm523_vm7, %v5534_v36, %v5536_v19 }
 0x5d5   : > { %v5741_v22 = vcombine.low %v5451_v12, %v5667_v62  ;;  %v5742_v55 = vcombine.high %v5451_v12, %v5667_v62  ;;  %v6003_v45 = vrot.slane %v5730_v3, %v8585_v0  ;;  %v5457_v3 = vld [vmem:[#allocation4 + $0x80] sm:$0x3f] }
 0x5d7   : > { %v5622_v51 = vpop.permute.xlu0 %5621  ;;  %v5751_v21 = vrot.slane %v5741_v22, %v8585_v0  ;;  %v5758_v26 = vrot.slane %v5742_v55, %v8585_v0 }
 0x5d8   : > { %v5651_v30 = vsel %vm5649_vm12, %v5622_v51, %v5624_v33  ;;  %v5675_v13 = vsel %vm5649_vm12, %v5562_v50, %v5622_v51 }
 0x5d9   : > { %v5743_v56 = vcombine.low %v5675_v13, %v5651_v30  ;;  %v5744_v58 = vcombine.high %v5675_v13, %v5651_v30  ;;  %v7278_v46 = vcombine.low %v5723_v1, %v5751_v21 }
 0x5db   : > { %v5765_v20 = vrot.slane %v5743_v56, %v8585_v0  ;;  %v5772_v61 = vrot.slane %v5744_v58, %v8585_v0  ;;  %v6010_v40 = vrot.slane %v7278_v46, %v8585_v0 }
 0x5dc   : > { %v5538_v25 = vpop.permute.xlu0 %5537 }
 0x5dd   : > { %v5774_v27 = vcombine.high %v5751_v21, %v5765_v20  ;;  %v9707_v47 = vsel %vm523_vm7, %v5454_v34, %v5538_v25  ;;  %v5775_v29 = vcombine.low %v5758_v26, %v5772_v61  ;;  %v7279_v7 = vcombine.low %v5737_v48, %v5765_v20  ;;  %v5455_v61 = vld [vmem:[#allocation4 + $0x60] sm:$0x3f] }
 0x5de   : > { %v5776_v15 = vcombine.low %v9704_v31, %v9707_v47  ;;  %v5563_v18 = vsel %vm523_vm7, %v5538_v25, %v5540_v52  ;;  %v9724_v52 = vpop.permute.xlu1 %5551  ;;  %v6018_v5 = vcombine.low %v5996_v17, %v6010_v40  ;;  %v6019_v39 = vcombine.high %v5996_v17, %v6010_v40  ;;  %v5458_v25 = vld [vmem:[#allocation4 + $0x88] sm:$0x3f] }
 0x5df   : > { %v7280_v38 = vcombine.low %v5774_v27, %v5758_v26  ;;  %v6017_v8 = vrot.slane %v7279_v7, %v8585_v0  ;;  %v7281_v19 = vcombine.high %v5765_v20, %v5775_v29  ;;  %v5777_v48 = vcombine.high %v9704_v31, %v9707_v47 }
 0x5e0   : > { %v5626_v24 = vpop.permute.xlu0 %5625  ;;  %v5786_v28 = vrot.slane %v5776_v15, %v8585_v0 }
 0x5e1   : > { %v5652_v4 = vsel %vm5649_vm12, %v5626_v24, %v5628_v41  ;;  %v5676_v43 = vsel %vm5649_vm12, %v5563_v18, %v5626_v24  ;;  %v6032_v44 = vrot.slane %v7280_v38, %v8585_v0  ;;  %v6020_v9 = vcombine.low %v6003_v45, %v6017_v8 }
 0x5e2   : > { %v6046_v33 = vrot.slane %v5786_v28, %v8585_v0  ;;  %v5778_v59 = vcombine.low %v5676_v43, %v5652_v4  ;;  %v6039_v49 = vrot.slane %v7281_v19, %v8585_v0  ;;  %v6021_v51 = vcombine.high %v6003_v45, %v6017_v8  ;;  %v5636_v56 = vpop.permute.xlu1 %5635  ;;  %v5459_v8 = vld [vmem:[#allocation4 + $0xa0] sm:$0x3f] }
 0x5e3   : > { %v5779_v26 = vcombine.high %v5676_v43, %v5652_v4  ;;  %v5793_v18 = vrot.slane %v5777_v48, %v8585_v0 }
 0x5e4   : > { %v5542_v16 = vpop.permute.xlu0 %5541  ;;  %v5800_v41 = vrot.slane %v5778_v59, %v8585_v0  ;;  %v6054_v36 = vcombine.low %v6032_v44, %v6046_v33  ;;  %v6055_v62 = vcombine.high %v6032_v44, %v6046_v33 }
 0x5e5   : > { %v5564_v14 = vsel %vm523_vm7, %v5542_v16, %v9688_v2  ;;  %v5669_v55 = vsel %vm523_vm7, %v5456_v35, %v5542_v16  ;;  %v5807_v28 = vrot.slane %v5779_v26, %v8585_v0 }
 0x5e6   : > { %v6053_v12 = vrot.slane %v5800_v41, %v8585_v0  ;;  %v6227_v22 = vpack.c.bf16 %v6055_v62, %v6019_v39  ;;  %v6226_v50 = vpack.c.bf16 %v6054_v36, %v6018_v5  ;;  %v5811_v54 = vcombine.low %v5455_v61, %v5669_v55  ;;  %v5640_v27 = vpop.permute.xlu1 %5639 }
 0x5e7   : > { %v5812_v1 = vcombine.high %v5455_v61, %v5669_v55  ;;  %v5464_v61 = vld [vmem:[#allocation4 + $0xe8] sm:$0x3f] }
 0x5e8   : > { %v5630_v37 = vpop.permute.xlu0 %5629  ;;  %v6056_v23 = vcombine.low %v6039_v49, %v6053_v12  ;;  %v6057_v30 = vcombine.high %v6039_v49, %v6053_v12  ;;  %6604 = vmatprep.mubr.bf16.mxu0 %v6227_v22  ;;  %v5821_v29 = vrot.slane %v5811_v54, %v8585_v0 }
 0x5e9   : > { %v5653_v13 = vsel %vm5649_vm12, %v5630_v37, %v5632_v6  ;;  %v5677_v10 = vsel %vm5649_vm12, %v5564_v14, %v5630_v37  ;;  %6605 = vmatmul.mubr.bf16.vlgmr.msra.gmra.mxu0 %v6226_v50  ;;  %v5828_v7 = vrot.slane %v5812_v1, %v8585_v0 }
 0x5ea   : > { %v6228_v58 = vpack.c.bf16 %v6056_v23, %v6020_v9  ;;  %v5813_v21 = vcombine.low %v5677_v10, %v5653_v13  ;;  %v5814_v20 = vcombine.high %v5677_v10, %v5653_v13  ;;  %v6229_v2 = vpack.c.bf16 %v6057_v30, %v6021_v51  ;;  %v5560_v33 = vpop.permute.xlu1 %5559 }
 0x5eb   : > { %v7282_v17 = vcombine.low %v5793_v18, %v5821_v29  ;;  %v5461_v18 = vld [vmem:[#allocation4 + $0xc0] sm:$0x3f] }
 0x5ec   : > { %v5546_v34 = vpop.permute.xlu0 %5545  ;;  %7348 = vmatprep.mubr.msk.bf16.mxu1 %vm6562_vm13, %v6229_v2  ;;  %v5835_v6 = vrot.slane %v5813_v21, %v8585_v0  ;;  %v5842_v32 = vrot.slane %v5814_v20, %v8585_v0 }
 0x5ed   : > { %6668 = vmatmul.mubr.bf16.vlgmr.msra.gmra.mxu1 %v6228_v58  ;;  %v5670_v15 = vsel %vm523_vm7, %v5458_v25, %v5546_v34  ;;  %v5565_v31 = vsel %vm523_vm7, %v5546_v34, %v9709_v53  ;;  %v5462_v58 = vld [vmem:[#allocation4 + $0xc8] sm:$0x3f]  ;;  %v6068_v21 = vrot.slane %v7282_v17, %v8585_v0 }
 0x5ee   : > { %v5844_v24 = vcombine.high %v5821_v29, %v5835_v6  ;;  %v5845_v38 = vcombine.low %v5828_v7, %v5842_v32  ;;  %v5847_v47 = vcombine.high %v5457_v3, %v5670_v15  ;;  %v5846_v43 = vcombine.low %v5457_v3, %v5670_v15  ;;  %v5648_v51 = vpop.permute.xlu1 %5647  ;;  %v5463_v29 = vld [vmem:[#allocation4 + $0xe0] sm:$0x3f] }
 0x5ef   : > { %v7283_v16 = vcombine.low %v5807_v28, %v5835_v6 }
 0x5f0   : > { %v5634_v46 = vpop.permute.xlu0 %5633  ;;  %v7285_v45 = vcombine.high %v5835_v6, %v5845_v38  ;;  %v7284_v41 = vcombine.low %v5844_v24, %v5828_v7  ;;  %v5863_v5 = vrot.slane %v5847_v47, %v8585_v0  ;;  %v5856_v9 = vrot.slane %v5846_v43, %v8585_v0 }
 0x5f1   : > { %v5654_v40 = vsel %vm5649_vm12, %v5634_v46, %v5636_v56  ;;  %v5678_v44 = vsel %vm5649_vm12, %v5565_v31, %v5634_v46  ;;  %v6075_v10 = vrot.slane %v7283_v16, %v8585_v0 }
 0x5f2   : > { %v5849_v39 = vcombine.high %v5678_v44, %v5654_v40  ;;  %v5848_v49 = vcombine.low %v5678_v44, %v5654_v40  ;;  %v6089_v37 = vrot.slane %v7285_v45, %v8585_v0  ;;  %v6082_v50 = vrot.slane %v7284_v41, %v8585_v0  ;;  %v5556_v3 = vpop.permute.xlu1 %5555 }
 0x5f3   : > { %v6104_v55 = vrot.slane %v5856_v9, %v8585_v0 }
 0x5f4   : > { %v5550_v4 = vpop.permute.xlu0 %5549  ;;  %v5870_v56 = vrot.slane %v5848_v49, %v8585_v0  ;;  %v6091_v34 = vcombine.high %v6068_v21, %v6082_v50  ;;  %v6093_v25 = vcombine.high %v6075_v10, %v6089_v37 }
 0x5f5   : > { %v5671_v19 = vsel %vm523_vm7, %v5460_v11, %v5550_v4  ;;  %v5566_v53 = vsel %vm523_vm7, %v5550_v4, %v9724_v52  ;;  %v5877_v52 = vrot.slane %v5849_v39, %v8585_v0  ;;  %v6092_v11 = vcombine.low %v6075_v10, %v6089_v37 }
 0x5f6   : > { %v5881_v59 = vcombine.low %v5459_v8, %v5671_v19  ;;  %v5882_v6 = vcombine.high %v5459_v8, %v5671_v19  ;;  %v6111_v46 = vrot.slane %v5870_v56, %v8585_v0 }
 0x5f8   : > { %v9754_v36 = vrot.slane %v5881_v59, %v8585_v0  ;;  %v5638_v62 = vpop.permute.xlu0 %5637  ;;  %v5898_v44 = vrot.slane %v5882_v6, %v8585_v0 }
 0x5f9   : > { %v5655_v12 = vsel %vm5649_vm12, %v5638_v62, %v5640_v27  ;;  %v5679_v35 = vsel %vm5649_vm12, %v5566_v53, %v5638_v62  ;;  %v6090_v27 = vcombine.low %v6068_v21, %v6082_v50 }
 0x5fa   : > { %v7286_v14 = vcombine.low %v5863_v5, %v9754_v36  ;;  %v5883_v22 = vcombine.low %v5679_v35, %v5655_v12  ;;  %v5884_v20 = vcombine.high %v5679_v35, %v5655_v12 }
 0x5fc   : > { %v9764_v23 = vrot.slane %v5883_v22, %v8585_v0  ;;  %v5554_v30 = vpop.permute.xlu0 %5553  ;;  %v6118_v13 = vrot.slane %v7286_v14, %v8585_v0  ;;  %v5912_v24 = vrot.slane %v5884_v20, %v8585_v0 }
 0x5fd   : > { %v5672_v48 = vsel %vm523_vm7, %v5462_v58, %v5554_v30  ;;  %v5567_v12 = vsel %vm523_vm7, %v5554_v30, %v5556_v3 }
 0x5fe   : > { %v7287_v2 = vcombine.low %v5877_v52, %v9764_v23  ;;  %v6127_v54 = vcombine.high %v6104_v55, %v6118_v13  ;;  %v6126_v1 = vcombine.low %v6104_v55, %v6118_v13  ;;  %v5914_v38 = vcombine.high %v9754_v36, %v9764_v23  ;;  %v5644_v36 = vpop.permute.xlu1 %5643 }
 0x5ff   : > { %v5916_v47 = vcombine.low %v5461_v18, %v5672_v48  ;;  %v5917_v4 = vcombine.high %v5461_v18, %v5672_v48  ;;  %v5915_v62 = vcombine.low %v5898_v44, %v5912_v24 }
 0x600   : > { %v6125_v32 = vrot.slane %v7287_v2, %v8585_v0  ;;  %v5558_v26 = vpop.permute.xlu0 %5557  ;;  %v6231_v15 = vpack.c.bf16 %v6127_v54, %v6091_v34  ;;  %v6230_v31 = vpack.c.bf16 %v6126_v1, %v6090_v27 }
 0x601   : > { %v5673_v7 = vsel %vm523_vm7, %v5464_v61, %v5558_v26  ;;  %v5568_v8 = vsel %vm523_vm7, %v5558_v26, %v5560_v33  ;;  %v5926_v9 = vrot.slane %v5916_v47, %v8585_v0  ;;  %v5933_v49 = vrot.slane %v5917_v4, %v8585_v0  ;;  %v6722_v47 = vld [vmem:[%s10045_s9] sm:$0x3] }
 0x602   : > { %v5951_v28 = vcombine.low %v5463_v29, %v5673_v7  ;;  %6614 = vmatprep.mubr.bf16.mxu0 %v6231_v15  ;;  %v6129_v43 = vcombine.high %v6111_v46, %v6125_v32  ;;  %v6128_v40 = vcombine.low %v6111_v46, %v6125_v32  ;;  %v5952_v19 = vcombine.high %v5463_v29, %v5673_v7 }
 0x603   : > { %6615 = vmatmul.mubr.bf16.gmra.mxu0 %v6230_v31  ;;  %v7288_v33 = vcombine.low %v5914_v38, %v5898_v44  ;;  %v7289_v58 = vcombine.high %v9764_v23, %v5915_v62  ;;  %v6154_v30 = vrot.slane %v5926_v9, %v8585_v0  ;;  %v6698_v31 = vld [vmem:[%s10044_s8] sm:$0x3] }
 0x604   : > { %v5961_v59 = vrot.slane %v5951_v28, %v8585_v0  ;;  %v5646_v17 = vpop.permute.xlu0 %5645  ;;  %v6233_v41 = vpack.c.bf16 %v6129_v43, %v6093_v25  ;;  %v6232_v5 = vpack.c.bf16 %v6128_v40, %v6092_v11  ;;  %v5968_v35 = vrot.slane %v5952_v19, %v8585_v0 }
 0x605   : > { %v5657_v16 = vsel %vm5649_vm12, %v5646_v17, %v5648_v51  ;;  %v5681_v45 = vsel %vm5649_vm12, %v5568_v8, %v5646_v17  ;;  %v6140_v21 = vrot.slane %v7288_v33, %v8585_v0  ;;  %v6147_v32 = vrot.slane %v7289_v58, %v8585_v0 }
 0x606   : > { %v5953_v39 = vcombine.low %v5681_v45, %v5657_v16  ;;  %v5954_v53 = vcombine.high %v5681_v45, %v5657_v16  ;;  %7349 = vmatprep.mubr.msk.bf16.mxu1 %vm6562_vm13, %v6233_v41  ;;  %v7290_v50 = vcombine.low %v5933_v49, %v5961_v59  ;;  %v9812_v43 = vrot.slane %v6698_v31, %v8176_v57 }
 0x607   : > { %6678 = vmatmul.mubr.bf16.gmra.mxu1 %v6232_v5  ;;  %v6163_v23 = vcombine.high %v6140_v21, %v6154_v30  ;;  %v6162_v48 = vcombine.low %v6140_v21, %v6154_v30  ;;  %v9815_v8 = vrot.slane %v6722_v47, %v8176_v57  ;;  %v9818_v19 = vrot.slane %v6698_v31, %v8182_v60 }
 0x608   : > { %v5975_v14 = vrot.slane %v5953_v39, %v8585_v0  ;;  %v5982_v22 = vrot.slane %v5954_v53, %v8585_v0  ;;  %v5642_v37 = vpop.permute.xlu0 %5641  ;;  %v6176_v25 = vrot.slane %v7290_v50, %v8585_v0  ;;  %v9822_v41 = vrot.slane %v6722_v47, %v8182_v60 }
 0x609   : > { %v5656_v52 = vsel %vm5649_vm12, %v5642_v37, %v5644_v36  ;;  %v5680_v51 = vsel %vm5649_vm12, %v5567_v12, %v5642_v37 }
 0x60a   : > { %v5984_v13 = vcombine.high %v5961_v59, %v5975_v14  ;;  %v5985_v10 = vcombine.low %v5968_v35, %v5982_v22  ;;  %v5918_v55 = vcombine.low %v5680_v51, %v5656_v52  ;;  %v5919_v56 = vcombine.high %v5680_v51, %v5656_v52 }
 0x60c   : > { %v7293_v20 = vcombine.high %v5975_v14, %v5985_v10  ;;  %v5940_v2 = vrot.slane %v5918_v55, %v8585_v0  ;;  %v5947_v61 = vrot.slane %v5919_v56, %v8585_v0  ;;  %v7292_v34 = vcombine.low %v5984_v13, %v5968_v35 }
 0x60e   : > { %v6161_v54 = vrot.slane %v5940_v2, %v8585_v0  ;;  %v7291_v1 = vcombine.low %v5947_v61, %v5975_v14  ;;  %v6190_v6 = vrot.slane %v7292_v34, %v8585_v0  ;;  %v6197_v26 = vrot.slane %v7293_v20, %v8585_v0 }
 0x610   : > { %v6183_v27 = vrot.slane %v7291_v1, %v8585_v0  ;;  %v6199_v46 = vcombine.high %v6176_v25, %v6190_v6  ;;  %v6198_v29 = vcombine.low %v6176_v25, %v6190_v6  ;;  %v6165_v7 = vcombine.high %v6147_v32, %v6161_v54 }
 0x611   : > { %v6164_v15 = vcombine.low %v6147_v32, %v6161_v54 }
 0x612   : > { %v6235_v11 = vpack.c.bf16 %v6199_v46, %v6163_v23  ;;  %v6234_v24 = vpack.c.bf16 %v6198_v29, %v6162_v48  ;;  %v6201_v38 = vcombine.high %v6183_v27, %v6197_v26  ;;  %v6200_v3 = vcombine.low %v6183_v27, %v6197_v26 }
 0x614   : > { %6624 = vmatprep.mubr.bf16.mxu0 %v6235_v11  ;;  %v6237_v18 = vpack.c.bf16 %v6201_v38, %v6165_v7  ;;  %v6236_v28 = vpack.c.bf16 %v6200_v3, %v6164_v15 }
 0x615   : > { %6625 = vmatmul.mubr.bf16.gmra.mxu0 %v6234_v24 }
 0x616   : > { %7350 = vmatprep.mubr.msk.bf16.mxu1 %vm6562_vm13, %v6237_v18 }
 0x617   : > { %6688 = vmatmul.mubr.bf16.gmra.mxu1 %v6236_v28 }
 0x6a9   : > { %v6606_v0 = vpop.f32.mrf.mxu0 }
 0x6ab   : > { %v6608_v4 = vpop.f32.mrf.mxu0 }
 0x6ad   : > { %v6669_v40 = vpop.f32.mrf.mxu1  ;;  %v6610_v59 = vpop.f32.mrf.mxu0 }
 0x6ae   : > { %v6670_v44 = vadd.f32 %v6669_v40, %v6606_v0 }
 0x6af   : > { %v6671_v17 = vpop.f32.mrf.mxu1  ;;  %v6612_v57 = vpop.f32.mrf.mxu0 }
 0x6b0   : > { %v6710_v16 = vmul.f32 %v9812_v43, %v6670_v44  ;;  %v6672_v45 = vadd.f32 %v6671_v17, %v6608_v4 }
 0x6b1   : > { %v6673_v5 = vpop.f32.mrf.mxu1 }
 0x6b2   : > { %v9825_v39 = vadd.f32 %v9815_v8, %v6710_v16  ;;  %v6711_v53 = vmul.f32 %v9818_v19, %v6672_v45  ;;  %v6674_v36 = vadd.f32 %v6673_v5, %v6610_v59 }
 0x6b3   : > { %v6675_v62 = vpop.f32.mrf.mxu1 }
 0x6b4   : > { %v6746_v9 = vmax.f32 %v9825_v39, 0.0  ;;  %v6735_v49 = vadd.f32 %v9822_v41, %v6711_v53  ;;  %v6712_v33 = vmul.f32 %v9812_v43, %v6674_v36  ;;  %v6676_v12 = vadd.f32 %v6675_v62, %v6612_v57 }
 0x6b6   : > { %v6747_v35 = vmax.f32 %v6735_v49, 0.0  ;;  %v9832_v60 = vadd.f32 %v9815_v8, %v6712_v33  ;;  %v6713_v14 = vmul.f32 %v9818_v19, %v6676_v12  ;;  %6770 = vrot.lane.b32.xlu0 %v6746_v9, %s7707_s0  ;;  %v7622_v33 = vld [vmem:[%s10046_s10 + $0x18] sm:$0xff]   ;;  %v7623_v12 = vld [vmem:[%s10046_s10 + $0x10] sm:$0xff]  }
 0x6b8   : > { %v6748_v22 = vmax.f32 %v9832_v60, 0.0  ;;  %v6737_v37 = vadd.f32 %v9822_v41, %v6713_v14  ;;  %6772 = vrot.lane.b32.xlu1 %v6747_v35, %s7707_s0  ;;  %v7624_v35 = vld [vmem:[%s10046_s10 + $0x8] sm:$0xff]   ;;  %v7625_v14 = vld [vmem:[%s10046_s10] sm:$0xff]  }
 0x6ba   : > { %v6749_v50 = vmax.f32 %v6737_v37, 0.0  ;;  %6774 = vrot.lane.b32.xlu0 %v6748_v22, %s7707_s0  ;;  %v7626_v37 = vld [vmem:[%s10046_s10 + $0x68] ss:$0 sps:$4 sm:$0xff]  }
 0x6bc   : > { %6776 = vrot.lane.b32.xlu1 %v6749_v50, %s7707_s0  ;;  %v6969_v50 = vsel %vm6967_vm14, %v7626_v37, 0 }
 0x6c3   : > { %v6616_v52 = vpop.f32.mrf.mxu0 }
 0x6c5   : > { %v6618_v51 = vpop.f32.mrf.mxu0 }
 0x6c7   : > { %v6679_v13 = vpop.f32.mrf.mxu1  ;;  %v6620_v55 = vpop.f32.mrf.mxu0 }
 0x6c8   : > { %v6680_v10 = vadd.f32 %v6679_v13, %v6616_v52  ;;  %v7627_v52 = vld [vmem:[%s10046_s10 + $0x60] sm:$0xff]   ;;  %v7629_v13 = vld [vmem:[%s10046_s10 + $0x50] sm:$0xff]  }
 0x6c9   : > { %v6681_v56 = vpop.f32.mrf.mxu1  ;;  %v6622_v34 = vpop.f32.mrf.mxu0 }
 0x6ca   : > { %v6714_v58 = vmul.f32 %v9812_v43, %v6680_v10  ;;  %v6682_v30 = vadd.f32 %v6681_v56, %v6618_v51  ;;  %v7628_v51 = vld [vmem:[%s10046_s10 + $0x58] sm:$0xff]   ;;  %v7630_v10 = vld [vmem:[%s10046_s10 + $0x48] sm:$0xff]  }
 0x6cb   : > { %v6683_v21 = vpop.f32.mrf.mxu1 }
 0x6cc   : > { %v9847_v20 = vadd.f32 %v9815_v8, %v6714_v58  ;;  %v6715_v2 = vmul.f32 %v9818_v19, %v6682_v30  ;;  %v6684_v61 = vadd.f32 %v6683_v21, %v6620_v55 }
 0x6cd   : > { %v6685_v54 = vpop.f32.mrf.mxu1 }
 0x6ce   : > { %v6750_v1 = vmax.f32 %v9847_v20, 0.0  ;;  %v6739_v25 = vadd.f32 %v9822_v41, %v6715_v2  ;;  %v6716_v6 = vmul.f32 %v9812_v43, %v6684_v61  ;;  %v6686_v32 = vadd.f32 %v6685_v54, %v6622_v34 }
 0x6d0   : > { %v6751_v23 = vmax.f32 %v6739_v25, 0.0  ;;  %v9854_v48 = vadd.f32 %v9815_v8, %v6716_v6  ;;  %v6717_v26 = vmul.f32 %v9818_v19, %v6686_v32  ;;  %6778 = vrot.lane.b32.xlu0 %v6750_v1, %s7707_s0 }
 0x6d2   : > { %v6752_v27 = vmax.f32 %v9854_v48, 0.0  ;;  %v6741_v46 = vadd.f32 %v9822_v41, %v6717_v26  ;;  %6780 = vrot.lane.b32.xlu1 %v6751_v23, %s7707_s0 }
 0x6d4   : > { %v6753_v29 = vmax.f32 %v6741_v46, 0.0  ;;  %6782 = vrot.lane.b32.xlu0 %v6752_v27, %s7707_s0 }
 0x6d5   : > { %v6626_v7 = vpop.f32.mrf.mxu0 }
 0x6d6   : > { %6784 = vrot.lane.b32.xlu1 %v6753_v29, %s7707_s0 }
 0x6d7   : > { %v6628_v15 = vpop.f32.mrf.mxu0  ;;  %v6689_v11 = vpop.f32.mrf.mxu1 }
 0x6d8   : > { %v6690_v24 = vadd.f32 %v6689_v11, %v6626_v7 }
 0x6d9   : > { %v6630_v38 = vpop.f32.mrf.mxu0  ;;  %v6691_v3 = vpop.f32.mrf.mxu1 }
 0x6da   : > { %v6718_v18 = vmul.f32 %v9812_v43, %v6690_v24  ;;  %v6692_v28 = vadd.f32 %v6691_v3, %v6628_v15  ;;  %v7631_v3 = vld [vmem:[%s10046_s10 + $0x40] sm:$0xff]  }
 0x6db   : > { %v6693_v31 = vpop.f32.mrf.mxu1  ;;  %v6632_v40 = vpop.f32.mrf.mxu0 }
 0x6dc   : > { %v9869_v0 = vadd.f32 %v9815_v8, %v6718_v18  ;;  %v6719_v47 = vmul.f32 %v9818_v19, %v6692_v28  ;;  %v6694_v4 = vadd.f32 %v6693_v31, %v6630_v38 }
 0x6dd   : > { %v6695_v44 = vpop.f32.mrf.mxu1 }
 0x6de   : > { %v6754_v59 = vmax.f32 %v9869_v0, 0.0  ;;  %v6743_v17 = vadd.f32 %v9822_v41, %v6719_v47  ;;  %v6720_v16 = vmul.f32 %v9812_v43, %v6694_v4  ;;  %v6696_v45 = vadd.f32 %v6695_v44, %v6632_v40  ;;  %v7618_v43 = vld [vmem:[%s10046_s10 + $0x38] sm:$0xff]  }
 0x6df   : > { %6972 = vmatpush1.bf16.msra.mxu0 %v7618_v43 }
 0x6e0   : > { %v6755_v5 = vmax.f32 %v6743_v17, 0.0  ;;  %v9876_v53 = vadd.f32 %v9815_v8, %v6720_v16  ;;  %v6721_v36 = vmul.f32 %v9818_v19, %v6696_v45  ;;  %6786 = vrot.lane.b32.xlu0 %v6754_v59, %s7707_s0  ;;  %v7619_v8 = vld [vmem:[%s10046_s10 + $0x30] sm:$0xff]   ;;  %6973 = vmatprep.subr.bf16.mxu0 %v10091_v42  ;;  %v7620_v19 = vld [vmem:[%s10046_s10 + $0x28] sm:$0xff]  }
 0x6e2   : > { %v6756_v57 = vmax.f32 %v9876_v53, 0.0  ;;  %v6745_v62 = vadd.f32 %v9822_v41, %v6721_v36  ;;  %6788 = vrot.lane.b32.xlu1 %v6755_v5, %s7707_s0  ;;  %v7621_v41 = vld [vmem:[%s10046_s10 + $0x20] sm:$0xff]   ;;  %v7632_v5 = vld [vmem:[%s10048_s12 + $0x8] sm:$0xff]  }
 0x6e3   : > { %6974 = vmatpush1.bf16.msra.mxu0 %v7619_v8  ;;  %v7633_v53 = vld [vmem:[%s10048_s12] sm:$0xff]  }
 0x6e4   : > { %v6757_v49 = vmax.f32 %v6745_v62, 0.0  ;;  %6790 = vrot.lane.b32.xlu0 %v6756_v57, %s7707_s0  ;;  %6975 = vmatprep.subr.bf16.mxu0 %v10091_v42  ;;  %v7351_v36 = vld [vmem:[%s10047_s11] ss:$0 sm:$0xff] }
 0x6e6   : > { %6792 = vrot.lane.b32.xlu1 %v6757_v49, %s7707_s0  ;;  %s7081_s0 = scalar_lea.sflag [#allocation7], %s461_s27 }
 0x6e7   : > { %6976 = vmatpush1.bf16.msra.mxu0 %v7620_v19 }
 0x6e8   : > { %6977 = vmatprep.subr.bf16.mxu0 %v10091_v42 }
 0x6eb   : > { %6978 = vmatpush1.bf16.msra.mxu0 %v7621_v41 }
 0x6ec   : > { %6979 = vmatprep.subr.bf16.mxu0 %v10091_v42 }
 0x6ef   : > { %6980 = vmatpush1.bf16.msra.mxu0 %v7622_v33 }
 0x6f0   : > { %6981 = vmatprep.subr.bf16.mxu0 %v10091_v42 }
 0x6f3   : > { %6982 = vmatpush1.bf16.msra.mxu0 %v7623_v12 }
 0x6f4   : > { %6983 = vmatprep.subr.bf16.mxu0 %v10091_v42 }
 0x6f7   : > { %6984 = vmatpush1.bf16.msra.mxu0 %v7624_v35 }
 0x6f8   : > { %6985 = vmatprep.subr.bf16.mxu0 %v10091_v42 }
 0x6fb   : > { %6986 = vmatpush1.bf16.msra.mxu0 %v7625_v14 }
 0x6fc   : > { %6991 = vmatprep.subr.bf16.mxu0 %v10091_v42 }
 0x6ff   : > { %6992 = vmatpush2.bf16.msra.mxu0 %v6969_v50 }
 0x700   : > { %6993 = vmatprep.subr.bf16.mxu0 %v10091_v42 }
 0x703   : > { %6994 = vmatpush2.bf16.msra.mxu0 %v7627_v52 }
 0x704   : > { %6995 = vmatprep.subr.bf16.mxu0 %v10091_v42 }
 0x707   : > { %6996 = vmatpush2.bf16.msra.mxu0 %v7628_v51 }
 0x708   : > { %6997 = vmatprep.subr.bf16.mxu0 %v10091_v42 }
 0x70b   : > { %6998 = vmatpush2.bf16.msra.mxu0 %v7629_v13 }
 0x70c   : > { %6999 = vmatprep.subr.bf16.mxu0 %v10091_v42 }
 0x70f   : > { %7000 = vmatpush2.bf16.msra.mxu0 %v7630_v10 }
 0x710   : > { %7001 = vmatprep.subr.bf16.mxu0 %v10091_v42 }
 0x713   : > { %7002 = vmatpush2.bf16.msra.mxu0 %v7631_v3 }
 0x714   : > { %7379 = vmatprep.subr.bf16.mxu0 %v8190_v63 }
 0x728   : > { %v6771_v55 = vpop.permute.xlu0 %6770 }
 0x72a   : > { %v6773_v56 = vpop.permute.xlu1 %6772 }
 0x72b   : > { %v6795_v58 = vsel %vm6794_vm15, %v6771_v55, %v6773_v56 }
 0x72c   : > { %v6807_v30 = vmax.f32 %v6746_v9, %v6795_v58  ;;  %v6775_v21 = vpop.permute.xlu0 %6774 }
 0x72e   : > { %6814 = vst.msk [vmem:[#allocation5] sm:$0xff] %vm6813_vm0, %v6807_v30  ;;  %v6777_v2 = vpop.permute.xlu1 %6776 }
 0x72f   : > { %v6796_v61 = vsel %vm6794_vm15, %v6775_v21, %v6777_v2 }
 0x730   : > { %v6808_v34 = vmax.f32 %v6748_v22, %v6796_v61 }
 0x732   : > { %6815 = vst.msk [vmem:[#allocation5 + $0x8] sm:$0xff] %vm6813_vm0, %v6808_v34 }
 0x739   : > { %v6820_v42 = vld [vmem:[#allocation5] ss:$2 sm:$0xff]  ;;  %v6823_v54 = vld [vmem:[#allocation5 + $0x1] ss:$2 sm:$0xff] }
 0x73a   : > { %v6826_v25 = vmax.f32 %v6820_v42, %v6823_v54 }
 0x73c   : > { %6829 = vst.msk [vmem:[#allocation5] sm:$0xff] %vm6813_vm0, %v6826_v25 }
 0x742   : > { %v6779_v6 = vpop.permute.xlu0 %6778 }
 0x744   : > { %v6781_v32 = vpop.permute.xlu1 %6780 }
 0x745   : > { %v6797_v39 = vsel %vm6794_vm15, %v6779_v6, %v6781_v32 }
 0x746   : > { %v6809_v9 = vmax.f32 %v6750_v1, %v6797_v39  ;;  %v6783_v23 = vpop.permute.xlu0 %6782 }
 0x748   : > { %6816 = vst.msk [vmem:[#allocation5 + $0x10] sm:$0xff] %vm6813_vm0, %v6809_v9  ;;  %v6785_v26 = vpop.permute.xlu1 %6784 }
 0x749   : > { %v6798_v60 = vsel %vm6794_vm15, %v6783_v23, %v6785_v26 }
 0x74a   : > { %v6810_v22 = vmax.f32 %v6752_v27, %v6798_v60 }
 0x74c   : > { %6817 = vst.msk [vmem:[#allocation5 + $0x18] sm:$0xff] %vm6813_vm0, %v6810_v22 }
 0x752   : > { %v6787_v46 = vpop.permute.xlu0 %6786 }
 0x753   : > { %v6821_v7 = vld [vmem:[#allocation5 + $0x10] ss:$2 sm:$0xff]  ;;  %v6824_v15 = vld [vmem:[#allocation5 + $0x11] ss:$2 sm:$0xff] }
 0x754   : > { %v6789_v29 = vpop.permute.xlu1 %6788  ;;  %v6827_v24 = vmax.f32 %v6821_v7, %v6824_v15 }
 0x755   : > { %v6799_v11 = vsel %vm6794_vm15, %v6787_v46, %v6789_v29 }
 0x756   : > { %v6811_v20 = vmax.f32 %v6754_v59, %v6799_v11  ;;  %6830 = vst.msk [vmem:[#allocation5 + $0x8] sm:$0xff] %vm6813_vm0, %v6827_v24  ;;  %v6791_v1 = vpop.permute.xlu0 %6790 }
 0x758   : > { %6818 = vst.msk [vmem:[#allocation5 + $0x20] sm:$0xff] %vm6813_vm0, %v6811_v20  ;;  %v6793_v38 = vpop.permute.xlu1 %6792 }
 0x759   : > { %v6800_v48 = vsel %vm6794_vm15, %v6791_v1, %v6793_v38 }
 0x75a   : > { %v6812_v27 = vmax.f32 %v6756_v57, %v6800_v48 }
 0x75c   : > { %6819 = vst.msk [vmem:[#allocation5 + $0x28] sm:$0xff] %vm6813_vm0, %v6812_v27 }
 0x763   : > { %v6822_v18 = vld [vmem:[#allocation5 + $0x20] ss:$2 sm:$0xff]  ;;  %v6825_v28 = vld [vmem:[#allocation5 + $0x21] ss:$2 sm:$0xff] }
 0x764   : > { %v6828_v31 = vmax.f32 %v6822_v18, %v6825_v28 }
 0x766   : > { %6831 = vst.msk [vmem:[#allocation5 + $0x10] sm:$0xff] %vm6813_vm0, %v6828_v31 }
 0x76d   : > { %v6835_v0 = vld [vmem:[#allocation5 + $0x2] ss:$3 sm:$0xff]  ;;  %v6833_v47 = vld [vmem:[#allocation5 + $0x1] ss:$3 sm:$0xff]  ;;  %v6832_v44 = vld [vmem:[#allocation5] ss:$3 sm:$0xff] }
 0x76e   : > { %6841 = vrot.lane.b32.xlu1 %v6835_v0, %s10092_s1  ;;  %6837 = vrot.lane.b32.xlu0 %v6833_v47, %s7708_s20  ;;  %s463_s20 = scalar_lea.vmem [#allocation6], %s7157_s2  ;;  %s7639_s2 = sshll.u32 %s7710_s17, 4  ;;  %s7640_s2 = int_to_ptr.vmem [resolvable:$false] %s7639_s2 }
 0x76f   : > { %s7094_s25 = sshll.u32 %s463_s20, 4  ;;  %s7641_s18 = scalar_lea.vmem %s7640_s2, 256  ;;  %s9997_s25 = int_to_ptr.vmem [resolvable:$true] %s7094_s25 }
 0x770   : > { %s7635_s22 = scalar_lea.vmem %s9997_s25, 128  ;;  %p7642_p0 = scmp.lt.s32.totalorder %s9997_s25, %s7640_s2 }
 0x771   : > { %p7636_p11 = scmp.ne.s32.totalorder %s9997_s25, %s7635_s22  ;;  %p7643_p1 = scmp.lt.s32.totalorder %s7641_s18, %s7635_s22 }
 0x773   : > { %p7637_p12 = pnand %p7636_p11, %p7824_p5  ;;  %p7644_p2 = por %p7643_p1, %p7642_p0 }
 0x775   : > { %p7638_p13 = pneg %p7637_p12 }
 0x777   : > { %p7645_p3 = pnand %p7644_p2, %p7638_p13 }
 0x7e0   : > { %v6842_v4 = vpop.permute.xlu1 %6841  ;;  %v6838_v40 = vpop.permute.xlu0 %6837 }
 0x7e1   : > { %v6844_v59 = vsel %vm6813_vm0, %v6832_v44, %v6838_v40  ;;  %v6845_v17 = vsel %vm523_vm7, %v6838_v40, %v6842_v4 }
 0x7e2   : > { %v6846_v16 = vpack.c.bf16 %v6844_v59, %v6844_v59  ;;  %v6847_v45 = vpack.c.bf16 %v6845_v17, %v6845_v17 }
 0x7e4   : > { %7366 = vmatprep.mubr.msk.bf16.mxu0 %vm6963_vm1, %v6847_v45 }
 0x7e5   : > { %7004 = vmatmul.mubr.bf16.vlgmr.msra.gmra.mxu0 %v6846_v16 }
 0x7e6   : > { %7380 = vmatpush3.bf16.msra.mxu0 %v7632_v5  ;;  %7383 = vmatprep.mubr.msk.bf16.mxu0 %vm7709_vm2, %v8190_v63 }
 0x7e7   : > { %7381 = vmatprep.subr.bf16.mxu0 %v8190_v63  ;;  %v7367_v63 = vld [vmem:[%s10049_s13] ss:$0 sm:$0xff] }
 0x7ea   : > { %7382 = vmatpush3.bf16.msra.mxu0 %v7633_v53 }
 0x8a5   : > { %v7005_v57 = vpop.f32.mrf.mxu0 }
 0x8a6   : > { %v7006_v62 = vadd.f32 %v7351_v36, %v7005_v57 }
 0x8a7   : > { %v7007_v49 = vpop.f32.mrf.mxu0 }
 0x8a8   : > { %v7011_v43 = vmax.f32 %v7006_v62, 0.0 }
 0x8a9   : > { %v7008_v8 = vpop.f32.mrf.mxu0 }
 0x8aa   : > { %v7012_v19 = vpack.c.bf16 %v7011_v43, %v7011_v43 }
 0x8ab   : > { %v7009_v41 = vpop.f32.mrf.mxu0 }
 0x8ac   : > { %7384 = vmatmul.mubr.msk.bf16.vlgmr.msra.gmra.mxu0 %vm5649_vm12, %v7012_v19 }
 0x96c   : > { %v7073_v33 = vpop.f32.mrf.mxu0 }
 0x96d   : > { %v7074_v12 = vadd.f32 %v7367_v63, %v7073_v33 }
 0x96e   : > { %v7385_v35 = vpop.f32.mrf.mxu0 }
 0x96f   : > { %7079 = vst [vmem:[%s463_s20] sm:$0xff] %v7074_v12 }
 0x970   : > { %v7076_v14 = vpop.f32.mrf.mxu0 }
 0x971   : > { %7648 = shalt.err (!%p7645_p3)
}
 0x972   : > { %s7649_s15 = scalar_lea.hbm %s9995_s28, 128  ;;  %s7653_s20 = scalar_lea.hbm %s10050_s14, 256 }
 0x973   : > { %p7650_p4 = scmp.ne.s32.totalorder %s9995_s28, %s7649_s15  ;;  %p7654_p9 = scmp.lt.s32.totalorder %s9995_s28, %s10050_s14 }
 0x974   : > { %p7655_p10 = scmp.lt.s32.totalorder %s7653_s20, %s7649_s15 }
 0x975   : > { %p7651_p7 = pnand %p7650_p4, %p7824_p5 }
 0x976   : > { %p7656_p11 = por %p7655_p10, %p7654_p9 }
 0x977   : > { %p7652_p8 = pneg %p7651_p7 }
 0x979   : > { %p7657_p12 = pnand %p7656_p11, %p7652_p8 }
 0x97b   : > { %7660 = shalt.err (!%p7657_p12)
}
 0x97c   : > { %7387 = dma.vmem_to_hbm [thread:$0]  (%p7824_p5), %s9997_s25, 128, %s9995_s28, %s7081_s0   ;;  %v7386_v37 = vpop.f32.mrf.mxu0 }
 0x97d PF: > { %p7393_p13 = scmp.ge.s32.totalorder %s7695_s16, 2  ;;  %s7106_s22 = sand.u32 1, %s7683_s29  }
 0x97e   : > { %s7107_s17 = scalar_lea.sflag [#allocation7], %s7106_s22 }
 0x97f   : > { %p7390_p0 = pnand %p7393_p13, %p7828_p6 }
 0x981   : > { %p7391_p1 = pneg %p7390_p0 }
 0x983   : > { %7678 = dma.done.wait (%p7391_p1), %s7107_s17, 128  }
 0x984   : > { %7680 = vsyncadd (%p7391_p1), %s7107_s17, 4294967168  ;;  %s10094_s2 = sld [smem:[#allocation9_spill]]  ;;  %p24_p2 = scmp.ge.s32.totalorder %s7811_s19, 4  }
 0x985   : > { %s10095_s15 = sld [smem:[#allocation10_spill]]  ;;  %s10096_s29 = smov %s7687_s30 }
 0x986   : > { %s10098_s16 = smov %s7811_s19  ;;  %26 = sbr.rel (!%p24_p2) target bundleno = 7 (0x7), region = 139 }
 0x98a   : > { %s10097_s30 = smov %s10094_s2 }
 0x98b   :  { %7112 = vsyncpa [#allocation7], 1 }
 0x98c   :  { %7114 = vsyncpa [#allocation7 + $0x1], 1 }

</bundles_post_ra>
